<compile_context>
chip_gen: v5e
topology: v5e:2x2
jax: 0.10.0
libtpu: 0.0.40
codegen_flags: <defaults>
</compile_context>

<pallas_src>
import math
import functools

import numpy as np
import jax
import jax.numpy as jnp
from jax.experimental import pallas as pl
from jax.experimental.pallas import tpu as pltpu

LRELU_SLOPE = 0.2      # nn.LeakyReLU(0.2)
IN_EPS = 1e-5          # nn.InstanceNorm2d default eps


# ---------------------------------------------------------------------------
# In-kernel helpers (all operate on VMEM values / refs).
# ---------------------------------------------------------------------------
def _leaky_relu(v):
    return jnp.where(v > 0, v, LRELU_SLOPE * v)


def _instance_norm_2d(v, gamma, beta):
    # v: (H*W, C); per-channel biased mean/var over the spatial rows.
    mean = jnp.mean(v, axis=0, keepdims=True)
    var = jnp.mean(jnp.square(v - mean), axis=0, keepdims=True)
    return (v - mean) * jax.lax.rsqrt(var + IN_EPS) * gamma + beta


def _im2col(pad_ref, Hh, Ww, C):
    # pad_ref: (Hh+2, Ww+2, C) zero-padded activation in VMEM.
    # Returns the (Hh*Ww, 9*C) patch matrix for a 3x3 / stride-1 / pad-1 conv.
    taps = [pad_ref[pl.ds(dy, Hh), pl.ds(dx, Ww), :]
            for dy in range(3) for dx in range(3)]
    cols = jnp.concatenate(taps, axis=-1)          # (Hh, Ww, 9*C)
    return cols.reshape(Hh * Ww, 9 * C)


# ---------------------------------------------------------------------------
# Fused ResidualBlock kernel: one grid step == one batch element, everything
# stays in VMEM between HBM load of x and HBM store of the output.
# ---------------------------------------------------------------------------
def _residual_block_kernel(*refs, H, W, Cin, Cout, Hm, Wm,
                           normalize, downsample, learned_shortcut, mxu_dtype):
    it = iter(refs)
    x_ref = next(it)                 # (H, W, Cin) f32
    w1_ref = next(it)                # (9*Cin, Cin)  mxu_dtype
    b1_ref = next(it)                # (1, Cin)      f32
    w2_ref = next(it)                # (9*Cin, Cout) mxu_dtype
    b2_ref = next(it)                # (1, Cout)     f32
    ws_ref = next(it) if learned_shortcut else None   # (Cin, Cout) mxu_dtype
    if normalize:
        g1_ref = next(it); bt1_ref = next(it)          # (1, Cin) f32
        g2_ref = next(it); bt2_ref = next(it)          # (1, Cin) f32
    pool_ref = next(it) if downsample else None        # (Hm*Wm, H*W) f32
    o_ref = next(it)                 # (Hm, Wm, Cout) f32
    pad1_ref = next(it)              # (H+2,  W+2,  Cin) f32 scratch
    pad2_ref = next(it)              # (Hm+2, Wm+2, Cin) f32 scratch

    x2d = x_ref[...].reshape(H * W, Cin)               # (HW, Cin) f32

    # ------------------------- shortcut path ------------------------------
    if learned_shortcut:
        s2d = jnp.dot(x2d.astype(mxu_dtype), ws_ref[...],
                      preferred_element_type=jnp.float32)        # (HW, Cout)
    else:
        s2d = x2d                                                # Cout == Cin
    if downsample:
        # 2x2 avg-pool as a constant-weight matmul (rides the idle MXU).
        s2d = jnp.dot(pool_ref[...], s2d,
                      preferred_element_type=jnp.float32)        # (HmWm, Cout)

    # ------------------------- residual path ------------------------------
    r2d = x2d
    if normalize:
        r2d = _instance_norm_2d(r2d, g1_ref[...], bt1_ref[...])
    r2d = _leaky_relu(r2d)

    # conv1: 3x3, pad 1, Cin -> Cin  (single im2col matmul, f32 accumulate)
    pad1_ref[...] = jnp.zeros_like(pad1_ref)
    pad1_ref[pl.ds(1, H), pl.ds(1, W), :] = r2d.reshape(H, W, Cin)
    col1 = _im2col(pad1_ref, H, W, Cin)                          # (HW, 9Cin)
    r2d = jnp.dot(col1.astype(mxu_dtype), w1_ref[...],
                  preferred_element_type=jnp.float32) + b1_ref[...]

    if downsample:
        r2d = jnp.dot(pool_ref[...], r2d,
                      preferred_element_type=jnp.float32)        # (HmWm, Cin)
    if normalize:
        r2d = _instance_norm_2d(r2d, g2_ref[...], bt2_ref[...])
    r2d = _leaky_relu(r2d)

    # conv2: 3x3, pad 1, Cin -> Cout
    pad2_ref[...] = jnp.zeros_like(pad2_ref)
    pad2_ref[pl.ds(1, Hm), pl.ds(1, Wm), :] = r2d.reshape(Hm, Wm, Cin)
    col2 = _im2col(pad2_ref, Hm, Wm, Cin)                        # (HmWm, 9Cin)
    r2d = jnp.dot(col2.astype(mxu_dtype), w2_ref[...],
                  preferred_element_type=jnp.float32) + b2_ref[...]

    # ------------------------- combine & store -----------------------------
    out2d = (s2d + r2d) * (1.0 / math.sqrt(2.0))                 # (HmWm, Cout)
    o_ref[...] = out2d.reshape(Hm, Wm, Cout).astype(o_ref.dtype)


def _flatten_3x3(w_oihw):
    # (O, I, 3, 3) -> (3, 3, I, O) -> (9*I, O); tap (dy, dx) lives at rows
    # [(3*dy + dx)*I, (3*dy + dx + 1)*I)  -- matches _im2col's tap order.
    O, I, _, _ = w_oihw.shape
    return jnp.transpose(w_oihw, (2, 3, 1, 0)).reshape(9 * I, O)


def _pool_matrix(H, W):
    # Constant (Hp*Wp, H*W) matrix implementing F.avg_pool2d(x, 2) on
    # row-major-flattened (h, w) spatial indices.
    Hp, Wp = H // 2, W // 2
    P = np.zeros((Hp * Wp, H * W), np.float32)
    for hp in range(Hp):
        for wp in range(Wp):
            r = hp * Wp + wp
            for dy in range(2):
                for dx in range(2):
                    P[r, (2 * hp + dy) * W + (2 * wp + dx)] = 0.25
    return jnp.asarray(P)


# ---------------------------------------------------------------------------
# ResidualBlock forward (single fused Pallas kernel).  I/O is NCHW like torch.
# ---------------------------------------------------------------------------
def residual_block_pallas(x_nchw, params, *, normalize, downsample,
                          learned_shortcut, mxu_dtype=jnp.bfloat16):
    B, Cin, H, W = x_nchw.shape
    Cout = params["conv2_w"].shape[0]
    Hm, Wm = (H // 2, W // 2) if downsample else (H, W)

    # NCHW -> NHWC boundary glue (plain JAX).
    x = jnp.transpose(x_nchw, (0, 2, 3, 1)).astype(jnp.float32)

    w1 = _flatten_3x3(params["conv1_w"]).astype(mxu_dtype)       # (9Cin, Cin)
    b1 = params["conv1_b"].reshape(1, Cin).astype(jnp.float32)
    w2 = _flatten_3x3(params["conv2_w"]).astype(mxu_dtype)       # (9Cin, Cout)
    b2 = params["conv2_b"].reshape(1, Cout).astype(jnp.float32)

    inputs = [x, w1, b1, w2, b2]
    in_specs = [
        pl.BlockSpec((pl.Squeezed(), H, W, Cin), lambda b: (b, 0, 0, 0)),
        pl.BlockSpec((9 * Cin, Cin), lambda b: (0, 0)),
        pl.BlockSpec((1, Cin), lambda b: (0, 0)),
        pl.BlockSpec((9 * Cin, Cout), lambda b: (0, 0)),
        pl.BlockSpec((1, Cout), lambda b: (0, 0)),
    ]
    if learned_shortcut:
        ws = jnp.transpose(params["conv1x1_w"].reshape(Cout, Cin),
                           (1, 0)).astype(mxu_dtype)             # (Cin, Cout)
        inputs.append(ws)
        in_specs.append(pl.BlockSpec((Cin, Cout), lambda b: (0, 0)))
    if normalize:
        for gk, bk in (("norm1_g", "norm1_b"), ("norm2_g", "norm2_b")):
            inputs.append(params[gk].reshape(1, Cin).astype(jnp.float32))
            in_specs.append(pl.BlockSpec((1, Cin), lambda b: (0, 0)))
            inputs.append(params[bk].reshape(1, Cin).astype(jnp.float32))
            in_specs.append(pl.BlockSpec((1, Cin), lambda b: (0, 0)))
    if downsample:
        P = _pool_matrix(H, W)                                   # (HmWm, HW)
        inputs.append(P)
        in_specs.append(pl.BlockSpec((Hm * Wm, H * W), lambda b: (0, 0)))

    kernel = functools.partial(
        _residual_block_kernel,
        H=H, W=W, Cin=Cin, Cout=Cout, Hm=Hm, Wm=Wm,
        normalize=normalize, downsample=downsample,
        learned_shortcut=learned_shortcut, mxu_dtype=mxu_dtype)

    out = pl.pallas_call(
        kernel,
        out_shape=jax.ShapeDtypeStruct((B, Hm, Wm, Cout), jnp.float32),
        grid=(B,),
        in_specs=in_specs,
        out_specs=pl.BlockSpec((pl.Squeezed(), Hm, Wm, Cout),
                               lambda b: (b, 0, 0, 0)),
        scratch_shapes=[
            pltpu.VMEM((H + 2, W + 2, Cin), jnp.float32),    # conv1 halo pad
            pltpu.VMEM((Hm + 2, Wm + 2, Cin), jnp.float32),  # conv2 halo pad
        ],
        compiler_params=pltpu.CompilerParams(
            dimension_semantics=("parallel",)),
    )(*inputs)

    # NHWC -> NCHW boundary glue (plain JAX).
    return jnp.transpose(out, (0, 3, 1, 2))


# ---------------------------------------------------------------------------
# Deterministic parameter init (shapes per the module's __init__; PyTorch-like
# uniform(-1/sqrt(fan_in), 1/sqrt(fan_in)) for convs, ones/zeros for affine IN).
# ---------------------------------------------------------------------------
def init_params(key, dim_in, dim_out, *, normalize, learned_shortcut):
    keys = jax.random.split(key, 5)

    def conv_init(k, cout, cin, ksz):
        kw, kb = jax.random.split(k)
        bound = 1.0 / math.sqrt(cin * ksz * ksz)
        w = jax.random.uniform(kw, (cout, cin, ksz, ksz), jnp.float32, -bound, bound)
        b = jax.random.uniform(kb, (cout,), jnp.float32, -bound, bound)
        return w, b

    p = {}
    p["conv1_w"], p["conv1_b"] = conv_init(keys[0], dim_in, dim_in, 3)
    p["conv2_w"], p["conv2_b"] = conv_init(keys[1], dim_out, dim_in, 3)
    if learned_shortcut:
        bound = 1.0 / math.sqrt(dim_in)
        p["conv1x1_w"] = jax.random.uniform(keys[2], (dim_out, dim_in, 1, 1),
                                            jnp.float32, -bound, bound)
    if normalize:
        p["norm1_g"] = jnp.ones((dim_in,), jnp.float32)
        p["norm1_b"] = jnp.zeros((dim_in,), jnp.float32)
        p["norm2_g"] = jnp.ones((dim_in,), jnp.float32)
        p["norm2_b"] = jnp.zeros((dim_in,), jnp.float32)
    return p


# ---------------------------------------------------------------------------
# Pure-JAX (XLA) reference in NCHW, mirroring the PyTorch forward exactly.
# `matmul_cast` lets us emulate the kernel's bf16 MXU operands (f32 accumulate)
# for a tight numerical comparison; identity == exact module semantics.
# ---------------------------------------------------------------------------
def residual_block_reference(x, params, *, normalize, downsample,
                             learned_shortcut, matmul_cast=lambda a: a):
    cast = matmul_cast

    def actv(v):
        return jnp.where(v > 0, v, LRELU_SLOPE * v)

    def conv(v, w, b, pad):
        out = jax.lax.conv_general_dilated(
            cast(v), cast(w), (1, 1), ((pad, pad), (pad, pad)),
            dimension_numbers=("NCHW", "OIHW", "NCHW"),
            precision=jax.lax.Precision.HIGHEST)
        if b is not None:
            out = out + b[None, :, None, None]
        return out

    def inorm(v, g, bta):
        m = jnp.mean(v, axis=(2, 3), keepdims=True)
        var = jnp.mean((v - m) ** 2, axis=(2, 3), keepdims=True)
        return (v - m) * jax.lax.rsqrt(var + IN_EPS) * g[None, :, None, None] \
            + bta[None, :, None, None]

    def pool(v):
        B, C, H, W = v.shape
        return v.reshape(B, C, H // 2, 2, W // 2, 2).mean(axis=(3, 5))

    s = x
    if learned_shortcut:
        s = conv(s, params["conv1x1_w"], None, 0)
    if downsample:
        s = pool(s)

    r = x
    if normalize:
        r = inorm(r, params["norm1_g"], params["norm1_b"])
    r = conv(actv(r), params["conv1_w"], params["conv1_b"], 1)
    if downsample:
        r = pool(r)
    if normalize:
        r = inorm(r, params["norm2_g"], params["norm2_b"])
    r = conv(actv(r), params["conv2_w"], params["conv2_b"], 1)

    return (s + r) / math.sqrt(2.0)


if __name__ == "__main__":
    B, H, W = 2, 16, 16
    dim_in, dim_out = 4, 8
    normalize, downsample = True, True
    learned_shortcut = dim_in != dim_out

    key = jax.random.PRNGKey(0)
    kp, kx = jax.random.split(key)
    params = init_params(kp, dim_in, dim_out, normalize=normalize,
                         learned_shortcut=learned_shortcut)
    x = jax.random.normal(kx, (B, dim_in, H, W), jnp.float32)

    out = residual_block_pallas(x, params, normalize=normalize,
                                downsample=downsample,
                                learned_shortcut=learned_shortcut)
    out = jax.block_until_ready(out)
    assert out.shape == (B, dim_out, H // 2, W // 2), out.shape

    # Tight check: reference with the same bf16 MXU-operand rounding the
    # kernel uses (f32 accumulation) -> differences are accumulation order.
    bf16_cast = lambda a: a.astype(jnp.bfloat16).astype(jnp.float32)
    ref_bf16 = residual_block_reference(
        x, params, normalize=normalize, downsample=downsample,
        learned_shortcut=learned_shortcut, matmul_cast=bf16_cast)
    err_tight = float(jnp.max(jnp.abs(out - ref_bf16)))
    assert jnp.allclose(out, ref_bf16, rtol=2e-3, atol=2e-3), \
        f"max abs err vs bf16-operand reference = {err_tight}"

    # Loose check: exact f32 PyTorch-semantics reference (bounds the bf16
    # MXU-operand quantization error).
    ref_f32 = residual_block_reference(
        x, params, normalize=normalize, downsample=downsample,
        learned_shortcut=learned_shortcut)
    err_loose = float(jnp.max(jnp.abs(out - ref_f32)))
    assert jnp.allclose(out, ref_f32, rtol=5e-2, atol=5e-2), \
        f"max abs err vs f32 reference = {err_loose}"

    print("KERNEL_OK")
</pallas_src>

<mosaic_0001>
module attributes {stable_mosaic.version = 11 : i64} {
  func.func @_residual_block_kernel(%arg0: i32, %arg1: memref<1x16x16x4xf32, #tpu.memory_space<vmem>>, %arg2: memref<36x4xbf16, #tpu.memory_space<vmem>>, %arg3: memref<1x4xf32, #tpu.memory_space<vmem>>, %arg4: memref<36x8xbf16, #tpu.memory_space<vmem>>, %arg5: memref<1x8xf32, #tpu.memory_space<vmem>>, %arg6: memref<4x8xbf16, #tpu.memory_space<vmem>>, %arg7: memref<1x4xf32, #tpu.memory_space<vmem>>, %arg8: memref<1x4xf32, #tpu.memory_space<vmem>>, %arg9: memref<1x4xf32, #tpu.memory_space<vmem>>, %arg10: memref<1x4xf32, #tpu.memory_space<vmem>>, %arg11: memref<64x256xf32, #tpu.memory_space<vmem>>, %arg12: memref<1x8x8x8xf32, #tpu.memory_space<vmem>>, %arg13: memref<18x18x4xf32, #tpu.memory_space<vmem>>, %arg14: memref<10x10x4xf32, #tpu.memory_space<vmem>>) attributes {dimension_semantics = [#tpu.dimension_semantics<parallel>], iteration_bounds = array<i64: 2>, scalar_prefetch = 0 : i64, scratch_operands = 2 : i64, tpu.core_type = #tpu.core_type<tc>, window_params = [{transform_indices = @transform_0, window_bounds = array<i64: 1, 16, 16, 4>}, {pipeline_mode = #tpu.pipeline_mode<synchronous>, transform_indices = @transform_1, window_bounds = array<i64: 36, 4>}, {pipeline_mode = #tpu.pipeline_mode<synchronous>, transform_indices = @transform_2, window_bounds = array<i64: 1, 4>}, {pipeline_mode = #tpu.pipeline_mode<synchronous>, transform_indices = @transform_3, window_bounds = array<i64: 36, 8>}, {pipeline_mode = #tpu.pipeline_mode<synchronous>, transform_indices = @transform_4, window_bounds = array<i64: 1, 8>}, {pipeline_mode = #tpu.pipeline_mode<synchronous>, transform_indices = @transform_5, window_bounds = array<i64: 4, 8>}, {pipeline_mode = #tpu.pipeline_mode<synchronous>, transform_indices = @transform_6, window_bounds = array<i64: 1, 4>}, {pipeline_mode = #tpu.pipeline_mode<synchronous>, transform_indices = @transform_7, window_bounds = array<i64: 1, 4>}, {pipeline_mode = #tpu.pipeline_mode<synchronous>, transform_indices = @transform_8, window_bounds = array<i64: 1, 4>}, {pipeline_mode = #tpu.pipeline_mode<synchronous>, transform_indices = @transform_9, window_bounds = array<i64: 1, 4>}, {pipeline_mode = #tpu.pipeline_mode<synchronous>, transform_indices = @transform_10, window_bounds = array<i64: 64, 256>}, {transform_indices = @transform_11, window_bounds = array<i64: 1, 8, 8, 8>}]} {
    %c0 = arith.constant 0 : index
    %c0_0 = arith.constant 0 : index
    %c0_1 = arith.constant 0 : index
    %c0_2 = arith.constant 0 : index
    %0 = vector.load %arg1[%c0, %c0_0, %c0_1, %c0_2] : memref<1x16x16x4xf32, #tpu.memory_space<vmem>>, vector<1x16x16x4xf32>
    %1 = vector.shape_cast %0 : vector<1x16x16x4xf32> to vector<16x16x4xf32>
    %2 = vector.shape_cast %1 : vector<16x16x4xf32> to vector<256x4xf32>
    %3 = arith.truncf %2 : vector<256x4xf32> to vector<256x4xbf16>
    %c0_3 = arith.constant 0 : index
    %c0_4 = arith.constant 0 : index
    %4 = vector.load %arg6[%c0_3, %c0_4] : memref<4x8xbf16, #tpu.memory_space<vmem>>, vector<4x8xbf16>
    %cst = arith.constant dense<0.000000e+00> : vector<256x8xf32>
    %5 = tpu.matmul %3, %4, %cst {dimension_numbers = #tpu.dot_dimension_numbers<[1], [0], [0], [1], [0, 0, 1, 1], [], []>} : vector<256x4xbf16>, vector<4x8xbf16>, vector<256x8xf32> -> vector<256x8xf32>
    %c0_5 = arith.constant 0 : index
    %c0_6 = arith.constant 0 : index
    %6 = vector.load %arg11[%c0_5, %c0_6] : memref<64x256xf32, #tpu.memory_space<vmem>>, vector<64x256xf32>
    %cst_7 = arith.constant dense<0.000000e+00> : vector<64x8xf32>
    %7 = tpu.matmul %6, %5, %cst_7 {dimension_numbers = #tpu.dot_dimension_numbers<[1], [0], [0], [1], [0, 0, 1, 1], [], []>} : vector<64x256xf32>, vector<256x8xf32>, vector<64x8xf32> -> vector<64x8xf32>
    %c0_8 = arith.constant 0 : index
    %c0_9 = arith.constant 0 : index
    %8 = vector.load %arg7[%c0_8, %c0_9] : memref<1x4xf32, #tpu.memory_space<vmem>>, vector<1x4xf32>
    %c0_10 = arith.constant 0 : index
    %c0_11 = arith.constant 0 : index
    %9 = vector.load %arg8[%c0_10, %c0_11] : memref<1x4xf32, #tpu.memory_space<vmem>>, vector<1x4xf32>
    %cst_12 = arith.constant dense<0.000000e+00> : vector<4xf32>
    %10 = vector.multi_reduction <add>, %2, %cst_12 [0] : vector<256x4xf32> to vector<4xf32>
    %11 = vector.shape_cast %10 : vector<4xf32> to vector<1x4xf32>
    %cst_13 = arith.constant 2.560000e+02 : f32
    %12 = vector.broadcast %cst_13 : f32 to vector<1x4xf32>
    %13 = arith.divf %11, %12 : vector<1x4xf32>
    %14 = vector.broadcast %13 : vector<1x4xf32> to vector<256x4xf32>
    %15 = arith.subf %2, %14 : vector<256x4xf32>
    %16 = arith.mulf %15, %15 : vector<256x4xf32>
    %cst_14 = arith.constant dense<0.000000e+00> : vector<4xf32>
    %17 = vector.multi_reduction <add>, %16, %cst_14 [0] : vector<256x4xf32> to vector<4xf32>
    %18 = vector.shape_cast %17 : vector<4xf32> to vector<1x4xf32>
    %cst_15 = arith.constant 2.560000e+02 : f32
    %19 = vector.broadcast %cst_15 : f32 to vector<1x4xf32>
    %20 = arith.divf %18, %19 : vector<1x4xf32>
    %21 = vector.broadcast %13 : vector<1x4xf32> to vector<256x4xf32>
    %22 = arith.subf %2, %21 : vector<256x4xf32>
    %cst_16 = arith.constant 9.99999974E-6 : f32
    %23 = vector.broadcast %cst_16 : f32 to vector<1x4xf32>
    %24 = arith.addf %20, %23 : vector<1x4xf32>
    %25 = math.rsqrt %24 : vector<1x4xf32>
    %26 = vector.broadcast %25 : vector<1x4xf32> to vector<256x4xf32>
    %27 = arith.mulf %22, %26 : vector<256x4xf32>
    %28 = vector.broadcast %8 : vector<1x4xf32> to vector<256x4xf32>
    %29 = arith.mulf %27, %28 : vector<256x4xf32>
    %30 = vector.broadcast %9 : vector<1x4xf32> to vector<256x4xf32>
    %31 = arith.addf %29, %30 : vector<256x4xf32>
    %cst_17 = arith.constant 0.000000e+00 : f32
    %32 = vector.broadcast %cst_17 : f32 to vector<256x4xf32>
    %33 = arith.cmpf ogt, %31, %32 : vector<256x4xf32>
    %cst_18 = arith.constant 2.000000e-01 : f32
    %34 = vector.broadcast %cst_18 : f32 to vector<256x4xf32>
    %35 = arith.mulf %34, %31 : vector<256x4xf32>
    %36 = arith.select %33, %31, %35 : vector<256x4xi1>, vector<256x4xf32>
    %cst_19 = arith.constant 0.000000e+00 : f32
    %37 = vector.broadcast %cst_19 : f32 to vector<18x18x4xf32>
    %c0_20 = arith.constant 0 : index
    %c0_21 = arith.constant 0 : index
    %c0_22 = arith.constant 0 : index
    %38 = vector.load %arg13[%c0_20, %c0_21, %c0_22] : memref<18x18x4xf32, #tpu.memory_space<vmem>>, vector<18x18x4xf32>
    tpu.vector_store %arg13[%c0_20, %c0_21, %c0_22], %37 {strides = array<i32>} : memref<18x18x4xf32, #tpu.memory_space<vmem>>, vector<18x18x4xf32>,
    %39 = vector.shape_cast %36 : vector<256x4xf32> to vector<16x16x4xf32>
    %c1 = arith.constant 1 : index
    %c1_23 = arith.constant 1 : index
    %c0_24 = arith.constant 0 : index
    %40 = vector.load %arg13[%c1, %c1_23, %c0_24] : memref<18x18x4xf32, #tpu.memory_space<vmem>>, vector<16x16x4xf32>
    tpu.vector_store %arg13[%c1, %c1_23, %c0_24], %39 {strides = array<i32>} : memref<18x18x4xf32, #tpu.memory_space<vmem>>, vector<16x16x4xf32>,
    %c0_25 = arith.constant 0 : index
    %c0_26 = arith.constant 0 : index
    %c0_27 = arith.constant 0 : index
    %41 = vector.load %arg13[%c0_25, %c0_26, %c0_27] : memref<18x18x4xf32, #tpu.memory_space<vmem>>, vector<16x16x4xf32>
    %c0_28 = arith.constant 0 : index
    %c1_29 = arith.constant 1 : index
    %c0_30 = arith.constant 0 : index
    %42 = vector.load %arg13[%c0_28, %c1_29, %c0_30] : memref<18x18x4xf32, #tpu.memory_space<vmem>>, vector<16x16x4xf32>
    %c0_31 = arith.constant 0 : index
    %c2 = arith.constant 2 : index
    %c0_32 = arith.constant 0 : index
    %43 = vector.load %arg13[%c0_31, %c2, %c0_32] : memref<18x18x4xf32, #tpu.memory_space<vmem>>, vector<16x16x4xf32>
    %c1_33 = arith.constant 1 : index
    %c0_34 = arith.constant 0 : index
    %c0_35 = arith.constant 0 : index
    %44 = vector.load %arg13[%c1_33, %c0_34, %c0_35] : memref<18x18x4xf32, #tpu.memory_space<vmem>>, vector<16x16x4xf32>
    %c1_36 = arith.constant 1 : index
    %c1_37 = arith.constant 1 : index
    %c0_38 = arith.constant 0 : index
    %45 = vector.load %arg13[%c1_36, %c1_37, %c0_38] : memref<18x18x4xf32, #tpu.memory_space<vmem>>, vector<16x16x4xf32>
    %c1_39 = arith.constant 1 : index
    %c2_40 = arith.constant 2 : index
    %c0_41 = arith.constant 0 : index
    %46 = vector.load %arg13[%c1_39, %c2_40, %c0_41] : memref<18x18x4xf32, #tpu.memory_space<vmem>>, vector<16x16x4xf32>
    %c2_42 = arith.constant 2 : index
    %c0_43 = arith.constant 0 : index
    %c0_44 = arith.constant 0 : index
    %47 = vector.load %arg13[%c2_42, %c0_43, %c0_44] : memref<18x18x4xf32, #tpu.memory_space<vmem>>, vector<16x16x4xf32>
    %c2_45 = arith.constant 2 : index
    %c1_46 = arith.constant 1 : index
    %c0_47 = arith.constant 0 : index
    %48 = vector.load %arg13[%c2_45, %c1_46, %c0_47] : memref<18x18x4xf32, #tpu.memory_space<vmem>>, vector<16x16x4xf32>
    %c2_48 = arith.constant 2 : index
    %c2_49 = arith.constant 2 : index
    %c0_50 = arith.constant 0 : index
    %49 = vector.load %arg13[%c2_48, %c2_49, %c0_50] : memref<18x18x4xf32, #tpu.memory_space<vmem>>, vector<16x16x4xf32>
    %50 = tpu.concatenate %41, %42, %43, %44, %45, %46, %47, %48, %49 in 2 : vector<16x16x4xf32>, vector<16x16x4xf32>, vector<16x16x4xf32>, vector<16x16x4xf32>, vector<16x16x4xf32>, vector<16x16x4xf32>, vector<16x16x4xf32>, vector<16x16x4xf32>, vector<16x16x4xf32> -> vector<16x16x36xf32>
    %51 = vector.shape_cast %50 : vector<16x16x36xf32> to vector<256x36xf32>
    %52 = arith.truncf %51 : vector<256x36xf32> to vector<256x36xbf16>
    %c0_51 = arith.constant 0 : index
    %c0_52 = arith.constant 0 : index
    %53 = vector.load %arg2[%c0_51, %c0_52] : memref<36x4xbf16, #tpu.memory_space<vmem>>, vector<36x4xbf16>
    %cst_53 = arith.constant dense<0.000000e+00> : vector<256x4xf32>
    %54 = tpu.matmul %52, %53, %cst_53 {dimension_numbers = #tpu.dot_dimension_numbers<[1], [0], [0], [1], [0, 0, 1, 1], [], []>} : vector<256x36xbf16>, vector<36x4xbf16>, vector<256x4xf32> -> vector<256x4xf32>
    %c0_54 = arith.constant 0 : index
    %c0_55 = arith.constant 0 : index
    %55 = vector.load %arg3[%c0_54, %c0_55] : memref<1x4xf32, #tpu.memory_space<vmem>>, vector<1x4xf32>
    %56 = vector.broadcast %55 : vector<1x4xf32> to vector<256x4xf32>
    %57 = arith.addf %54, %56 : vector<256x4xf32>
    %c0_56 = arith.constant 0 : index
    %c0_57 = arith.constant 0 : index
    %58 = vector.load %arg11[%c0_56, %c0_57] : memref<64x256xf32, #tpu.memory_space<vmem>>, vector<64x256xf32>
    %cst_58 = arith.constant dense<0.000000e+00> : vector<64x4xf32>
    %59 = tpu.matmul %58, %57, %cst_58 {dimension_numbers = #tpu.dot_dimension_numbers<[1], [0], [0], [1], [0, 0, 1, 1], [], []>} : vector<64x256xf32>, vector<256x4xf32>, vector<64x4xf32> -> vector<64x4xf32>
    %c0_59 = arith.constant 0 : index
    %c0_60 = arith.constant 0 : index
    %60 = vector.load %arg9[%c0_59, %c0_60] : memref<1x4xf32, #tpu.memory_space<vmem>>, vector<1x4xf32>
    %c0_61 = arith.constant 0 : index
    %c0_62 = arith.constant 0 : index
    %61 = vector.load %arg10[%c0_61, %c0_62] : memref<1x4xf32, #tpu.memory_space<vmem>>, vector<1x4xf32>
    %cst_63 = arith.constant dense<0.000000e+00> : vector<4xf32>
    %62 = vector.multi_reduction <add>, %59, %cst_63 [0] : vector<64x4xf32> to vector<4xf32>
    %63 = vector.shape_cast %62 : vector<4xf32> to vector<1x4xf32>
    %cst_64 = arith.constant 6.400000e+01 : f32
    %64 = vector.broadcast %cst_64 : f32 to vector<1x4xf32>
    %65 = arith.divf %63, %64 : vector<1x4xf32>
    %66 = vector.broadcast %65 : vector<1x4xf32> to vector<64x4xf32>
    %67 = arith.subf %59, %66 : vector<64x4xf32>
    %68 = arith.mulf %67, %67 : vector<64x4xf32>
    %cst_65 = arith.constant dense<0.000000e+00> : vector<4xf32>
    %69 = vector.multi_reduction <add>, %68, %cst_65 [0] : vector<64x4xf32> to vector<4xf32>
    %70 = vector.shape_cast %69 : vector<4xf32> to vector<1x4xf32>
    %cst_66 = arith.constant 6.400000e+01 : f32
    %71 = vector.broadcast %cst_66 : f32 to vector<1x4xf32>
    %72 = arith.divf %70, %71 : vector<1x4xf32>
    %73 = vector.broadcast %65 : vector<1x4xf32> to vector<64x4xf32>
    %74 = arith.subf %59, %73 : vector<64x4xf32>
    %cst_67 = arith.constant 9.99999974E-6 : f32
    %75 = vector.broadcast %cst_67 : f32 to vector<1x4xf32>
    %76 = arith.addf %72, %75 : vector<1x4xf32>
    %77 = math.rsqrt %76 : vector<1x4xf32>
    %78 = vector.broadcast %77 : vector<1x4xf32> to vector<64x4xf32>
    %79 = arith.mulf %74, %78 : vector<64x4xf32>
    %80 = vector.broadcast %60 : vector<1x4xf32> to vector<64x4xf32>
    %81 = arith.mulf %79, %80 : vector<64x4xf32>
    %82 = vector.broadcast %61 : vector<1x4xf32> to vector<64x4xf32>
    %83 = arith.addf %81, %82 : vector<64x4xf32>
    %cst_68 = arith.constant 0.000000e+00 : f32
    %84 = vector.broadcast %cst_68 : f32 to vector<64x4xf32>
    %85 = arith.cmpf ogt, %83, %84 : vector<64x4xf32>
    %cst_69 = arith.constant 2.000000e-01 : f32
    %86 = vector.broadcast %cst_69 : f32 to vector<64x4xf32>
    %87 = arith.mulf %86, %83 : vector<64x4xf32>
    %88 = arith.select %85, %83, %87 : vector<64x4xi1>, vector<64x4xf32>
    %cst_70 = arith.constant 0.000000e+00 : f32
    %89 = vector.broadcast %cst_70 : f32 to vector<10x10x4xf32>
    %c0_71 = arith.constant 0 : index
    %c0_72 = arith.constant 0 : index
    %c0_73 = arith.constant 0 : index
    %90 = vector.load %arg14[%c0_71, %c0_72, %c0_73] : memref<10x10x4xf32, #tpu.memory_space<vmem>>, vector<10x10x4xf32>
    tpu.vector_store %arg14[%c0_71, %c0_72, %c0_73], %89 {strides = array<i32>} : memref<10x10x4xf32, #tpu.memory_space<vmem>>, vector<10x10x4xf32>,
    %91 = vector.shape_cast %88 : vector<64x4xf32> to vector<8x8x4xf32>
    %c1_74 = arith.constant 1 : index
    %c1_75 = arith.constant 1 : index
    %c0_76 = arith.constant 0 : index
    %92 = vector.load %arg14[%c1_74, %c1_75, %c0_76] : memref<10x10x4xf32, #tpu.memory_space<vmem>>, vector<8x8x4xf32>
    tpu.vector_store %arg14[%c1_74, %c1_75, %c0_76], %91 {strides = array<i32>} : memref<10x10x4xf32, #tpu.memory_space<vmem>>, vector<8x8x4xf32>,
    %c0_77 = arith.constant 0 : index
    %c0_78 = arith.constant 0 : index
    %c0_79 = arith.constant 0 : index
    %93 = vector.load %arg14[%c0_77, %c0_78, %c0_79] : memref<10x10x4xf32, #tpu.memory_space<vmem>>, vector<8x8x4xf32>
    %c0_80 = arith.constant 0 : index
    %c1_81 = arith.constant 1 : index
    %c0_82 = arith.constant 0 : index
    %94 = vector.load %arg14[%c0_80, %c1_81, %c0_82] : memref<10x10x4xf32, #tpu.memory_space<vmem>>, vector<8x8x4xf32>
    %c0_83 = arith.constant 0 : index
    %c2_84 = arith.constant 2 : index
    %c0_85 = arith.constant 0 : index
    %95 = vector.load %arg14[%c0_83, %c2_84, %c0_85] : memref<10x10x4xf32, #tpu.memory_space<vmem>>, vector<8x8x4xf32>
    %c1_86 = arith.constant 1 : index
    %c0_87 = arith.constant 0 : index
    %c0_88 = arith.constant 0 : index
    %96 = vector.load %arg14[%c1_86, %c0_87, %c0_88] : memref<10x10x4xf32, #tpu.memory_space<vmem>>, vector<8x8x4xf32>
    %c1_89 = arith.constant 1 : index
    %c1_90 = arith.constant 1 : index
    %c0_91 = arith.constant 0 : index
    %97 = vector.load %arg14[%c1_89, %c1_90, %c0_91] : memref<10x10x4xf32, #tpu.memory_space<vmem>>, vector<8x8x4xf32>
    %c1_92 = arith.constant 1 : index
    %c2_93 = arith.constant 2 : index
    %c0_94 = arith.constant 0 : index
    %98 = vector.load %arg14[%c1_92, %c2_93, %c0_94] : memref<10x10x4xf32, #tpu.memory_space<vmem>>, vector<8x8x4xf32>
    %c2_95 = arith.constant 2 : index
    %c0_96 = arith.constant 0 : index
    %c0_97 = arith.constant 0 : index
    %99 = vector.load %arg14[%c2_95, %c0_96, %c0_97] : memref<10x10x4xf32, #tpu.memory_space<vmem>>, vector<8x8x4xf32>
    %c2_98 = arith.constant 2 : index
    %c1_99 = arith.constant 1 : index
    %c0_100 = arith.constant 0 : index
    %100 = vector.load %arg14[%c2_98, %c1_99, %c0_100] : memref<10x10x4xf32, #tpu.memory_space<vmem>>, vector<8x8x4xf32>
    %c2_101 = arith.constant 2 : index
    %c2_102 = arith.constant 2 : index
    %c0_103 = arith.constant 0 : index
    %101 = vector.load %arg14[%c2_101, %c2_102, %c0_103] : memref<10x10x4xf32, #tpu.memory_space<vmem>>, vector<8x8x4xf32>
    %102 = tpu.concatenate %93, %94, %95, %96, %97, %98, %99, %100, %101 in 2 : vector<8x8x4xf32>, vector<8x8x4xf32>, vector<8x8x4xf32>, vector<8x8x4xf32>, vector<8x8x4xf32>, vector<8x8x4xf32>, vector<8x8x4xf32>, vector<8x8x4xf32>, vector<8x8x4xf32> -> vector<8x8x36xf32>
    %103 = vector.shape_cast %102 : vector<8x8x36xf32> to vector<64x36xf32>
    %104 = arith.truncf %103 : vector<64x36xf32> to vector<64x36xbf16>
    %c0_104 = arith.constant 0 : index
    %c0_105 = arith.constant 0 : index
    %105 = vector.load %arg4[%c0_104, %c0_105] : memref<36x8xbf16, #tpu.memory_space<vmem>>, vector<36x8xbf16>
    %cst_106 = arith.constant dense<0.000000e+00> : vector<64x8xf32>
    %106 = tpu.matmul %104, %105, %cst_106 {dimension_numbers = #tpu.dot_dimension_numbers<[1], [0], [0], [1], [0, 0, 1, 1], [], []>} : vector<64x36xbf16>, vector<36x8xbf16>, vector<64x8xf32> -> vector<64x8xf32>
    %c0_107 = arith.constant 0 : index
    %c0_108 = arith.constant 0 : index
    %107 = vector.load %arg5[%c0_107, %c0_108] : memref<1x8xf32, #tpu.memory_space<vmem>>, vector<1x8xf32>
    %108 = vector.broadcast %107 : vector<1x8xf32> to vector<64x8xf32>
    %109 = arith.addf %106, %108 : vector<64x8xf32>
    %110 = arith.addf %7, %109 : vector<64x8xf32>
    %cst_109 = arith.constant 0.707106769 : f32
    %111 = vector.broadcast %cst_109 : f32 to vector<64x8xf32>
    %112 = arith.mulf %110, %111 : vector<64x8xf32>
    %113 = vector.shape_cast %112 : vector<64x8xf32> to vector<8x8x8xf32>
    %c0_110 = arith.constant 0 : index
    %c0_111 = arith.constant 0 : index
    %c0_112 = arith.constant 0 : index
    %c0_113 = arith.constant 0 : index
    %114 = vector.load %arg12[%c0_110, %c0_111, %c0_112, %c0_113] : memref<1x8x8x8xf32, #tpu.memory_space<vmem>>, vector<1x8x8x8xf32>
    %115 = vector.shape_cast %114 : vector<1x8x8x8xf32> to vector<8x8x8xf32>
    %116 = vector.shape_cast %113 : vector<8x8x8xf32> to vector<1x8x8x8xf32>
    tpu.vector_store %arg12[%c0_110, %c0_111, %c0_112, %c0_113], %116 {strides = array<i32>} : memref<1x8x8x8xf32, #tpu.memory_space<vmem>>, vector<1x8x8x8xf32>,
    return
  }
  func.func @transform_0(%arg0: i32) -> (i32, i32, i32, i32) {
    %c0_i32 = arith.constant 0 : i32
    %c0_i32_0 = arith.constant 0 : i32
    %c0_i32_1 = arith.constant 0 : i32
    %c0_i32_2 = arith.constant 0 : i32
    return %arg0, %c0_i32, %c0_i32_0, %c0_i32_1 : i32, i32, i32, i32
  }
  func.func @transform_1(%arg0: i32) -> (i32, i32) {
    %c0_i32 = arith.constant 0 : i32
    %c0_i32_0 = arith.constant 0 : i32
    %c0_i32_1 = arith.constant 0 : i32
    return %c0_i32, %c0_i32_0 : i32, i32
  }
  func.func @transform_2(%arg0: i32) -> (i32, i32) {
    %c0_i32 = arith.constant 0 : i32
    %c0_i32_0 = arith.constant 0 : i32
    %c0_i32_1 = arith.constant 0 : i32
    return %c0_i32, %c0_i32_0 : i32, i32
  }
  func.func @transform_3(%arg0: i32) -> (i32, i32) {
    %c0_i32 = arith.constant 0 : i32
    %c0_i32_0 = arith.constant 0 : i32
    %c0_i32_1 = arith.constant 0 : i32
    return %c0_i32, %c0_i32_0 : i32, i32
  }
  func.func @transform_4(%arg0: i32) -> (i32, i32) {
    %c0_i32 = arith.constant 0 : i32
    %c0_i32_0 = arith.constant 0 : i32
    %c0_i32_1 = arith.constant 0 : i32
    return %c0_i32, %c0_i32_0 : i32, i32
  }
  func.func @transform_5(%arg0: i32) -> (i32, i32) {
    %c0_i32 = arith.constant 0 : i32
    %c0_i32_0 = arith.constant 0 : i32
    %c0_i32_1 = arith.constant 0 : i32
    return %c0_i32, %c0_i32_0 : i32, i32
  }
  func.func @transform_6(%arg0: i32) -> (i32, i32) {
    %c0_i32 = arith.constant 0 : i32
    %c0_i32_0 = arith.constant 0 : i32
    %c0_i32_1 = arith.constant 0 : i32
    return %c0_i32, %c0_i32_0 : i32, i32
  }
  func.func @transform_7(%arg0: i32) -> (i32, i32) {
    %c0_i32 = arith.constant 0 : i32
    %c0_i32_0 = arith.constant 0 : i32
    %c0_i32_1 = arith.constant 0 : i32
    return %c0_i32, %c0_i32_0 : i32, i32
  }
  func.func @transform_8(%arg0: i32) -> (i32, i32) {
    %c0_i32 = arith.constant 0 : i32
    %c0_i32_0 = arith.constant 0 : i32
    %c0_i32_1 = arith.constant 0 : i32
    return %c0_i32, %c0_i32_0 : i32, i32
  }
  func.func @transform_9(%arg0: i32) -> (i32, i32) {
    %c0_i32 = arith.constant 0 : i32
    %c0_i32_0 = arith.constant 0 : i32
    %c0_i32_1 = arith.constant 0 : i32
    return %c0_i32, %c0_i32_0 : i32, i32
  }
  func.func @transform_10(%arg0: i32) -> (i32, i32) {
    %c0_i32 = arith.constant 0 : i32
    %c0_i32_0 = arith.constant 0 : i32
    %c0_i32_1 = arith.constant 0 : i32
    return %c0_i32, %c0_i32_0 : i32, i32
  }
  func.func @transform_11(%arg0: i32) -> (i32, i32, i32, i32) {
    %c0_i32 = arith.constant 0 : i32
    %c0_i32_0 = arith.constant 0 : i32
    %c0_i32_1 = arith.constant 0 : i32
    %c0_i32_2 = arith.constant 0 : i32
    return %arg0, %c0_i32, %c0_i32_0, %c0_i32_1 : i32, i32, i32, i32
  }
}

</mosaic_0001>

<bundles_post_ra>
// kernel: tpu_custom_call.1
= control target key start
LH: loop header
LB: loop body
LE: loop exit
PB: predicated region body
PF: predicated region fallthrough
CT: control target
= control target key end

     0   :  { %s6977_s0 = inlined_call_operand.vmem [shape: f32[2,16,16,4], index: 0, kind: input, shape index: {}]   ;;  %s6978_s1 = inlined_call_operand.vmem [shape: bf16[36,4], index: 1, kind: input, shape index: {}]   ;;  %s6979_s2 = inlined_call_operand.vmem [shape: f32[1,4], index: 2, kind: input, shape index: {}]   ;;  %s6980_s3 = inlined_call_operand.vmem [shape: bf16[36,8], index: 3, kind: input, shape index: {}]   ;;  %s6981_s4 = inlined_call_operand.vmem [shape: f32[1,8], index: 4, kind: input, shape index: {}]   ;;  %s6982_s5 = inlined_call_operand.vmem [shape: bf16[4,8], index: 5, kind: input, shape index: {}]   ;;  %s6983_s6 = inlined_call_operand.vmem [shape: f32[1,4], index: 6, kind: input, shape index: {}]   ;;  %s6984_s7 = inlined_call_operand.vmem [shape: f32[1,4], index: 7, kind: input, shape index: {}]   ;;  %s6985_s8 = inlined_call_operand.vmem [shape: f32[1,4], index: 8, kind: input, shape index: {}]   ;;  %s6986_s9 = inlined_call_operand.vmem [shape: f32[1,4], index: 9, kind: input, shape index: {}]   ;;  %s6987_s10 = inlined_call_operand.vmem [shape: f32[64,256], index: 10, kind: input, shape index: {}]   ;;  %s6988_s11 = inlined_call_operand.hbm [shape: f32[2,8,8,8], index: 11, kind: output, shape index: {}]  }
   0x1   :  { %7006 = sst [smem:[#allocation7_spill]] %s6977_s0 }
   0x2   :  { %7007 = sst [smem:[#allocation8_spill]] %s6978_s1 }
   0x3   :  { %7008 = sst [smem:[#allocation9_spill]] %s6979_s2 }
   0x4   :  { %16 = vsyncpa [#allocation5], 0 }
   0x5   :  { %18 = vsyncpa [#allocation5 + $0x1], 0  ;;  %s4873_s17 = smov 0   ;;  %s4875_s18 = smov 0  }
   0x6   :  { %s4877_s19 = smov 0   ;;  %s4879_s20 = smov 0  }
   0x7 LB: > { %s4894_s21 = sadd.s32 4294967295, %s4799_s20   ;;  %s3762_s22 = sadd.s32 4294967294, %s4799_s20   ;;  %s4799_s20 = sphi %s4879_s20, %s7029_s20   ;;  %s4795_s19 = sphi %s4877_s19, %s7028_s19   ;;  %s4791_s18 = sphi %s4875_s18, %s7027_s18   ;;  %s4787_s17 = sphi %s4873_s17, %s7026_s17  }
   0x8   : > { %s4898_s23 = sadd.s32 1, %s4799_s20   ;;  %s267_s24 = sadd.s32 1, %s4795_s19 }
   0x9   : > { %s264_s25 = ssub.s32 %s4799_s20, %s4898_s23  ;;  %p277_p0 = scmp.ne.s32.totalorder %s4795_s19, %s4791_s18 }
   0xa   : > { %p265_p1 = scmp.eq.s32.totalorder %s264_s25, 0  ;;  %p278_p2 = scmp.eq.s32.totalorder %s4894_s21, 1 }
   0xb   : > { %p283_p3 = scmp.ne.s32.totalorder %s4791_s18, %s4787_s17  ;;  %p284_p4 = scmp.eq.s32.totalorder %s3762_s22, 1 }
   0xc   : > { %s4909_s26 = scalar_select %p265_p1, %s4795_s19, %s267_s24  }
   0xd   : > { %p4911_p5 = por %p278_p2, %p277_p0  ;;  %p4915_p6 = por %p284_p4, %p283_p3 }
   0xe   : > { %p3765_p7 = scmp.ge.s32.totalorder %s4799_s20, 1  ;;  %p340_p8 = scmp.lt.s32.totalorder %s4799_s20, 3 }
  0x10   : > { %p341_p9 = pnand %p3765_p7, %p340_p8 }
  0x11   : > { %p380_p10 = scmp.lt.s32.totalorder (!%p341_p9), %s4894_s21, 1  ;;  %s7011_s0 = sld [smem:[#allocation7_spill]] (!%p341_p9) }
  0x12   : > { %344 = sbr.rel (%p341_p9) target bundleno = 1533 (0x5fd), region = 64  ;;  %s6995_s15 = smov (!%p341_p9), 4  }
  0x13   : > { %s7003_s16 = smov (!%p341_p9), 8   ;;  %s6993_s12 = smov (!%p341_p9), 20  }
  0x14   : > { %s6989_s13 = smov (!%p341_p9), 28   ;;  %s6997_s22 = smov (!%p341_p9), 16  }
  0x15   : > { %s6999_s24 = smov (!%p341_p9), 24   ;;  %s6991_s25 = smov (!%p341_p9), 32  }
  0x16   : > { %s7012_s1 = sld [smem:[#allocation8_spill]] (!%p341_p9) }
  0x17   : > { %vm435_vm0 = vcmask 31744   ;;  %vm1017_vm1 = vcmask 25600   ;;  %v4801_v0 = vmov 0.0   ;;  %s381_s29 = scalar_select %p380_p10, %s4894_s21, 1 }
  0x18   : > { %1015 = vst.msk [vmem:[#allocation2] sm:$0xff] %vm435_vm0, %v4801_v0  ;;  %s7017_s2 = sld [smem:[#allocation9_spill]] }
  0x19   : > { %1016 = vst.msk [vmem:[#allocation2 + $0x8] sm:$0xff] %vm435_vm0, %v4801_v0  ;;  %s3826_s30 = sshll.u32 %s381_s29, 8  ;;  %s7015_s29 = smov 32  }
  0x1a   : > { %1018 = vst.msk [vmem:[#allocation2 + $0x10] sm:$0x3] %vm1017_vm1, %v4801_v0  ;;  %s4938_s14 = scalar_lea.vmem %s7011_s0, %s3826_s30  ;;  %s7001_s30 = smov 12  }
  0x1b   : > { %1019 = vst.msk [vmem:[#allocation2 + $0x18] sm:$0xff] %vm435_vm0, %v4801_v0  ;;  %v4943_v1 = vld [vmem:[%s4938_s14] sm:$0xff]  ;;  %v4946_v2 = vld [vmem:[%s4938_s14 + $0x8] sm:$0xff]  ;;  %v4949_v3 = vld [vmem:[%s4938_s14 + $0x10] sm:$0xff]  ;;  %s7021_s0 = smov 24  }
  0x1c   : > { %1020 = vst.msk [vmem:[#allocation2 + $0x20] sm:$0xff] %vm435_vm0, %v4801_v0  ;;  %v4954_v4 = vld [vmem:[%s4938_s14 + $0x18] sm:$0xff]  ;;  %v595_v5 = vsel %vm435_vm0, %v4943_v1, 0.0  ;;  %v596_v6 = vsel %vm435_vm0, %v4946_v2, 0.0  ;;  %v4963_v8 = vld [vmem:[%s4938_s14 + $0x20] sm:$0xff]  ;;  %v598_v10 = vsel %vm435_vm0, %v4949_v3, 0.0 }
  0x1d   : > { %1021 = vst.msk [vmem:[#allocation2 + $0x28] sm:$0x3] %vm1017_vm1, %v4801_v0  ;;  %v597_v9 = vadd.f32 %v596_v6, %v595_v5  ;;  %v600_v12 = vsel %vm435_vm0, %v4954_v4, 0.0  ;;  %v4974_v14 = vld [vmem:[%s4938_s14 + $0x28] sm:$0xff]  ;;  %v602_v16 = vsel %vm435_vm0, %v4963_v8, 0.0  ;;  %v4984_v17 = vld [vmem:[%s4938_s14 + $0x30] sm:$0xff] }
  0x1e   : > { %1022 = vst.msk [vmem:[#allocation2 + $0x30] sm:$0xff] %vm435_vm0, %v4801_v0  ;;  %v604_v19 = vsel %vm435_vm0, %v4974_v14, 0.0  ;;  %v4993_v20 = vld [vmem:[%s4938_s14 + $0x38] sm:$0xff]  ;;  %v606_v22 = vsel %vm435_vm0, %v4984_v17, 0.0  ;;  %v5002_v23 = vld [vmem:[%s4938_s14 + $0x40] sm:$0xff]  ;;  %v5011_v26 = vld [vmem:[%s4938_s14 + $0x48] sm:$0xff] }
  0x1f   : > { %1023 = vst.msk [vmem:[#allocation2 + $0x38] sm:$0xff] %vm435_vm0, %v4801_v0  ;;  %v599_v15 = vadd.f32 %v598_v10, %v597_v9  ;;  %v608_v25 = vsel %vm435_vm0, %v4993_v20, 0.0  ;;  %v610_v28 = vsel %vm435_vm0, %v5002_v23, 0.0  ;;  %v5020_v29 = vld [vmem:[%s4938_s14 + $0x50] sm:$0xff]  ;;  %v612_v31 = vsel %vm435_vm0, %v5011_v26, 0.0  ;;  %v5029_v32 = vld [vmem:[%s4938_s14 + $0x58] sm:$0xff] }
  0x20   : > { %v1135_v7 = vld [vmem:[#allocation2 + $0x1] sm:$0xff]  ;;  %1024 = vst.msk [vmem:[#allocation2 + $0x40] sm:$0x3] %vm1017_vm1, %v4801_v0  ;;  %v614_v34 = vsel %vm435_vm0, %v5020_v29, 0.0  ;;  %v616_v37 = vsel %vm435_vm0, %v5029_v32, 0.0  ;;  %v5056_v41 = vld [vmem:[%s4938_s14 + $0x70] sm:$0xff] }
  0x21   : > { %v1136_v11 = vld [vmem:[#allocation2 + $0x9] sm:$0xff]  ;;  %1025 = vst.msk [vmem:[#allocation2 + $0x48] sm:$0xff] %vm435_vm0, %v4801_v0  ;;  %v601_v18 = vadd.f32 %v600_v12, %v599_v15  ;;  %v5038_v35 = vld [vmem:[%s4938_s14 + $0x60] sm:$0xff]  ;;  %v5065_v44 = vld [vmem:[%s4938_s14 + $0x78] sm:$0xff]  ;;  %v622_v46 = vsel %vm435_vm0, %v5056_v41, 0.0 }
  0x22   : > { %v3887_v13 = vpack.i.bf16 %v1136_v11, %v1135_v7  ;;  %1026 = vst.msk [vmem:[#allocation2 + $0x50] sm:$0xff] %vm435_vm0, %v4801_v0  ;;  %v5047_v38 = vld [vmem:[%s4938_s14 + $0x68] sm:$0xff]  ;;  %v618_v40 = vsel %vm435_vm0, %v5038_v35, 0.0  ;;  %v5074_v47 = vld [vmem:[%s4938_s14 + $0x80] sm:$0xff]  ;;  %v624_v49 = vsel %vm435_vm0, %v5065_v44, 0.0  ;;  %v5092_v53 = vld [vmem:[%s4938_s14 + $0x90] sm:$0xff] }
  0x23   : > { %1027 = vst.msk [vmem:[#allocation2 + $0x58] sm:$0x3] %vm1017_vm1, %v4801_v0  ;;  %v603_v21 = vadd.f32 %v602_v16, %v601_v18  ;;  %v620_v43 = vsel %vm435_vm0, %v5047_v38, 0.0  ;;  %v5083_v50 = vld [vmem:[%s4938_s14 + $0x88] sm:$0xff]  ;;  %v626_v52 = vsel %vm435_vm0, %v5074_v47, 0.0  ;;  %v5101_v56 = vld [vmem:[%s4938_s14 + $0x98] sm:$0xff] }
  0x24   : > { %3888 = vrot.lane.b32.xlu0 %v3887_v13, %s6995_s15  ;;  %1028 = vst.msk [vmem:[#allocation2 + $0x60] sm:$0xff] %vm435_vm0, %v4801_v0  ;;  %v628_v55 = vsel %vm435_vm0, %v5083_v50, 0.0  ;;  %v630_v58 = vsel %vm435_vm0, %v5092_v53, 0.0  ;;  %v5110_v59 = vld [vmem:[%s4938_s14 + $0xa0] sm:$0xff]  ;;  %v1168_v62 = vld [vmem:[#allocation2 + $0xa] sm:$0xff]  ;;  %v632_v63 = vsel %vm435_vm0, %v5101_v56, 0.0 }
  0x25   : > { %1029 = vst.msk [vmem:[#allocation2 + $0x68] sm:$0xff] %vm435_vm0, %v4801_v0  ;;  %v605_v24 = vadd.f32 %v604_v19, %v603_v21  ;;  %v1167_v61 = vld [vmem:[#allocation2 + $0x2] sm:$0xff]  ;;  %v634_v9 = vsel %vm435_vm0, %v5110_v59, 0.0  ;;  %v5129_v10 = vld [vmem:[%s4938_s14 + $0xb0] sm:$0xff]  ;;  %v5138_v13 = vld [vmem:[%s4938_s14 + $0xb8] sm:$0xff] }
  0x26   : > { %1030 = vst.msk [vmem:[#allocation2 + $0x70] sm:$0x3] %vm1017_vm1, %v4801_v0  ;;  %v3892_v5 = vpack.i.bf16 %v1168_v62, %v1167_v61  ;;  %v5119_v6 = vld [vmem:[%s4938_s14 + $0xa8] sm:$0xff]  ;;  %v638_v16 = vsel %vm435_vm0, %v5129_v10, 0.0  ;;  %v5147_v18 = vld [vmem:[%s4938_s14 + $0xc0] sm:$0xff]  ;;  %v640_v21 = vsel %vm435_vm0, %v5138_v13, 0.0 }
  0x27   : > { %1031 = vst.msk [vmem:[#allocation2 + $0x78] sm:$0xff] %vm435_vm0, %v4801_v0  ;;  %v607_v27 = vadd.f32 %v606_v22, %v605_v24  ;;  %v636_v12 = vsel %vm435_vm0, %v5119_v6, 0.0  ;;  %v5156_v22 = vld [vmem:[%s4938_s14 + $0xc8] sm:$0xff] }
  0x28   : > { %1032 = vst.msk [vmem:[#allocation2 + $0x80] sm:$0xff] %vm435_vm0, %v4801_v0 }
  0x29   : > { %1033 = vst.msk [vmem:[#allocation2 + $0x88] sm:$0x3] %vm1017_vm1, %v4801_v0  ;;  %v609_v30 = vadd.f32 %v608_v25, %v607_v27  ;;  %v642_v25 = vsel %vm435_vm0, %v5147_v18, 0.0  ;;  %v5165_v27 = vld [vmem:[%s4938_s14 + $0xd0] sm:$0xff] }
  0x2a   : > { %1034 = vst.msk [vmem:[#allocation2 + $0x90] sm:$0xff] %vm435_vm0, %v4801_v0 }
  0x2b   : > { %1035 = vst.msk [vmem:[#allocation2 + $0x98] sm:$0xff] %vm435_vm0, %v4801_v0  ;;  %v611_v33 = vadd.f32 %v610_v28, %v609_v30  ;;  %v644_v30 = vsel %vm435_vm0, %v5156_v22, 0.0 }
  0x2c   : > { %1036 = vst.msk [vmem:[#allocation2 + $0xa0] sm:$0x3] %vm1017_vm1, %v4801_v0  ;;  %3893 = vrot.lane.b32.xlu0 %v3892_v5, %s7003_s16 }
  0x2d   : > { %1037 = vst.msk [vmem:[#allocation2 + $0xa8] sm:$0xff] %vm435_vm0, %v4801_v0  ;;  %v613_v36 = vadd.f32 %v612_v31, %v611_v33  ;;  %v5174_v31 = vld [vmem:[%s4938_s14 + $0xd8] sm:$0xff] }
  0x2e   : > { %1038 = vst.msk [vmem:[#allocation2 + $0xb0] sm:$0xff] %vm435_vm0, %v4801_v0 }
  0x2f   : > { %1039 = vst.msk [vmem:[#allocation2 + $0xb8] sm:$0x3] %vm1017_vm1, %v4801_v0  ;;  %v615_v39 = vadd.f32 %v614_v34, %v613_v36  ;;  %v646_v34 = vsel %vm435_vm0, %v5165_v27, 0.0  ;;  %v5183_v36 = vld [vmem:[%s4938_s14 + $0xe0] sm:$0xff] }
  0x30   : > { %1040 = vst.msk [vmem:[#allocation2 + $0xc0] sm:$0xff] %vm435_vm0, %v4801_v0 }
  0x31   : > { %1041 = vst.msk [vmem:[#allocation2 + $0xc8] sm:$0xff] %vm435_vm0, %v4801_v0  ;;  %v617_v42 = vadd.f32 %v616_v37, %v615_v39  ;;  %v648_v39 = vsel %vm435_vm0, %v5174_v31, 0.0 }
  0x32   : > { %1042 = vst.msk [vmem:[#allocation2 + $0xd0] sm:$0x3] %vm1017_vm1, %v4801_v0 }
  0x33   : > { %1043 = vst.msk [vmem:[#allocation2 + $0xd8] sm:$0xff] %vm435_vm0, %v4801_v0  ;;  %v619_v45 = vadd.f32 %v618_v40, %v617_v42  ;;  %v5192_v40 = vld [vmem:[%s4938_s14 + $0xe8] sm:$0xff] }
  0x34   : > { %1044 = vst.msk [vmem:[#allocation2 + $0xe0] sm:$0xff] %vm435_vm0, %v4801_v0 }
  0x35   : > { %1045 = vst.msk [vmem:[#allocation2 + $0xe8] sm:$0x3] %vm1017_vm1, %v4801_v0  ;;  %v621_v48 = vadd.f32 %v620_v43, %v619_v45  ;;  %v650_v43 = vsel %vm435_vm0, %v5183_v36, 0.0  ;;  %v5201_v45 = vld [vmem:[%s4938_s14 + $0xf0] sm:$0xff] }
  0x36   : > { %1046 = vst.msk [vmem:[#allocation2 + $0xf0] sm:$0xff] %vm435_vm0, %v4801_v0 }
  0x37   : > { %1047 = vst.msk [vmem:[#allocation2 + $0xf8] sm:$0xff] %vm435_vm0, %v4801_v0  ;;  %v623_v51 = vadd.f32 %v622_v46, %v621_v48  ;;  %v4804_v48 = vmov 256.0  }
  0x38   : > { %1048 = vst.msk [vmem:[#allocation2 + $0x100] sm:$0x3] %vm1017_vm1, %v4801_v0  ;;  %4693 = vrcp.f32 %v4804_v48 }
  0x39   : > { %1049 = vst.msk [vmem:[#allocation2 + $0x108] sm:$0xff] %vm435_vm0, %v4801_v0  ;;  %v625_v54 = vadd.f32 %v624_v49, %v623_v51  ;;  %v652_v49 = vsel %vm435_vm0, %v5192_v40, 0.0  ;;  %v5210_v51 = vld [vmem:[%s4938_s14 + $0xf8] sm:$0xff] }
  0x3a   : > { %1050 = vst.msk [vmem:[#allocation2 + $0x110] sm:$0xff] %vm435_vm0, %v4801_v0 }
  0x3b   : > { %1051 = vst.msk [vmem:[#allocation2 + $0x118] sm:$0x3] %vm1017_vm1, %v4801_v0  ;;  %v627_v57 = vadd.f32 %v626_v52, %v625_v54  ;;  %v654_v54 = vsel %vm435_vm0, %v5201_v45, 0.0 }
  0x3c   : > { %1052 = vst.msk [vmem:[#allocation2 + $0x120] sm:$0xff] %vm435_vm0, %v4801_v0 }
  0x3d   : > { %1053 = vst.msk [vmem:[#allocation2 + $0x128] sm:$0xff] %vm435_vm0, %v4801_v0  ;;  %v629_v60 = vadd.f32 %v628_v55, %v627_v57  ;;  %v656_v57 = vsel %vm435_vm0, %v5210_v51, 0.0 }
  0x3e   : > { %1054 = vst.msk [vmem:[#allocation2 + $0x130] sm:$0x3] %vm1017_vm1, %v4801_v0 }
  0x3f   : > { %1055 = vst.msk [vmem:[#allocation2 + $0x138] sm:$0xff] %vm435_vm0, %v4801_v0  ;;  %v631_v7 = vadd.f32 %v630_v58, %v629_v60  ;;  %v4694_v58 = vpop.eup %4693 }
  0x40   : > { %1056 = vst.msk [vmem:[#allocation2 + $0x140] sm:$0xff] %vm435_vm0, %v4801_v0  ;;  %v665_v62 = vmul.f32 256.0, %v4694_v58  ;;  %vm669_vm2 = vweird.f32 %v4694_v58 }
  0x41   : > { %1057 = vst.msk [vmem:[#allocation2 + $0x148] sm:$0x3] %vm1017_vm1, %v4801_v0  ;;  %v633_v11 = vadd.f32 %v632_v63, %v631_v7 }
  0x42   : > { %1058 = vst.msk [vmem:[#allocation2 + $0x150] sm:$0xff] %vm435_vm0, %v4801_v0  ;;  %v666_v7 = vsub.f32 1.0, %v665_v62 }
  0x43   : > { %1059 = vst.msk [vmem:[#allocation2 + $0x158] sm:$0xff] %vm435_vm0, %v4801_v0  ;;  %v635_v15 = vadd.f32 %v634_v9, %v633_v11 }
  0x44   : > { %1060 = vst.msk [vmem:[#allocation2 + $0x160] sm:$0x3] %vm1017_vm1, %v4801_v0 }
  0x45   : > { %1061 = vst.msk [vmem:[#allocation2 + $0x168] sm:$0xff] %vm435_vm0, %v4801_v0  ;;  %v637_v19 = vadd.f32 %v636_v12, %v635_v15  ;;  %v667_v12 = vmul.f32 %v4694_v58, %v666_v7 }
  0x46   : > { %1062 = vst.msk [vmem:[#allocation2 + $0x170] sm:$0xff] %vm435_vm0, %v4801_v0 }
  0x47   : > { %1063 = vst.msk [vmem:[#allocation2 + $0x178] sm:$0x3] %vm1017_vm1, %v4801_v0  ;;  %v639_v24 = vadd.f32 %v638_v16, %v637_v19  ;;  %v668_v16 = vadd.f32 %v4694_v58, %v667_v12 }
  0x48   : > { %1064 = vst.msk [vmem:[#allocation2 + $0x180] sm:$0xff] %vm435_vm0, %v4801_v0 }
  0x49   : > { %1065 = vst.msk [vmem:[#allocation2 + $0x188] sm:$0xff] %vm435_vm0, %v4801_v0  ;;  %v641_v28 = vadd.f32 %v640_v21, %v639_v24  ;;  %v5238_v21 = vsel %vm669_vm2, %v4694_v58, %v668_v16 }
  0x4a   : > { %1066 = vst.msk [vmem:[#allocation2 + $0x190] sm:$0x3] %vm1017_vm1, %v4801_v0 }
  0x4b   : > { %1067 = vst.msk [vmem:[#allocation2 + $0x198] sm:$0xff] %vm435_vm0, %v4801_v0  ;;  %v643_v33 = vadd.f32 %v642_v25, %v641_v28 }
  0x4c   : > { %1068 = vst.msk [vmem:[#allocation2 + $0x1a0] sm:$0xff] %vm435_vm0, %v4801_v0 }
  0x4d   : > { %1069 = vst.msk [vmem:[#allocation2 + $0x1a8] sm:$0x3] %vm1017_vm1, %v4801_v0  ;;  %v645_v37 = vadd.f32 %v644_v30, %v643_v33 }
  0x4e   : > { %3092 = vst.msk [vmem:[#allocation3] sm:$0xff] %vm435_vm0, %v4801_v0 }
  0x4f   : > { %3093 = vst.msk [vmem:[#allocation3 + $0x8] sm:$0x3] %vm1017_vm1, %v4801_v0  ;;  %v647_v42 = vadd.f32 %v646_v34, %v645_v37 }
  0x50   : > { %3094 = vst.msk [vmem:[#allocation3 + $0x10] sm:$0xff] %vm435_vm0, %v4801_v0 }
  0x51   : > { %3095 = vst.msk [vmem:[#allocation3 + $0x18] sm:$0x3] %vm1017_vm1, %v4801_v0  ;;  %v649_v46 = vadd.f32 %v648_v39, %v647_v42 }
  0x52   : > { %3096 = vst.msk [vmem:[#allocation3 + $0x20] sm:$0xff] %vm435_vm0, %v4801_v0 }
  0x53   : > { %3097 = vst.msk [vmem:[#allocation3 + $0x28] sm:$0x3] %vm1017_vm1, %v4801_v0  ;;  %v651_v52 = vadd.f32 %v650_v43, %v649_v46 }
  0x54   : > { %3098 = vst.msk [vmem:[#allocation3 + $0x30] sm:$0xff] %vm435_vm0, %v4801_v0 }
  0x55   : > { %3099 = vst.msk [vmem:[#allocation3 + $0x38] sm:$0x3] %vm1017_vm1, %v4801_v0  ;;  %v653_v55 = vadd.f32 %v652_v49, %v651_v52 }
  0x56   : > { %3100 = vst.msk [vmem:[#allocation3 + $0x40] sm:$0xff] %vm435_vm0, %v4801_v0 }
  0x57   : > { %3101 = vst.msk [vmem:[#allocation3 + $0x48] sm:$0x3] %vm1017_vm1, %v4801_v0  ;;  %v655_v60 = vadd.f32 %v654_v54, %v653_v55 }
  0x58   : > { %3102 = vst.msk [vmem:[#allocation3 + $0x50] sm:$0xff] %vm435_vm0, %v4801_v0 }
  0x59   : > { %3103 = vst.msk [vmem:[#allocation3 + $0x58] sm:$0x3] %vm1017_vm1, %v4801_v0  ;;  %v657_v61 = vadd.f32 %v656_v57, %v655_v60 }
  0x5a   : > { %3104 = vst.msk [vmem:[#allocation3 + $0x60] sm:$0xff] %vm435_vm0, %v4801_v0 }
  0x5b   : > { %3105 = vst.msk [vmem:[#allocation3 + $0x68] sm:$0x3] %vm1017_vm1, %v4801_v0  ;;  %v658_v63 = vrot.slane %v657_v61, 4 }
  0x5c   : > { %3106 = vst.msk [vmem:[#allocation3 + $0x70] sm:$0xff] %vm435_vm0, %v4801_v0 }
  0x5d   : > { %3107 = vst.msk [vmem:[#allocation3 + $0x78] sm:$0x3] %vm1017_vm1, %v4801_v0  ;;  %v659_v5 = vadd.f32 %v658_v63, %v657_v61 }
  0x5e   : > { %3108 = vst.msk [vmem:[#allocation3 + $0x80] sm:$0xff] %vm435_vm0, %v4801_v0 }
  0x5f   : > { %3109 = vst.msk [vmem:[#allocation3 + $0x88] sm:$0x3] %vm1017_vm1, %v4801_v0  ;;  %v660_v9 = vrot.slane %v659_v5, 2 }
  0x60   : > { %3110 = vst.msk [vmem:[#allocation3 + $0x90] sm:$0xff] %vm435_vm0, %v4801_v0 }
  0x61   : > { %3111 = vst.msk [vmem:[#allocation3 + $0x98] sm:$0x3] %vm1017_vm1, %v4801_v0  ;;  %v661_v11 = vadd.f32 %v660_v9, %v659_v5 }
  0x63   : > { %v662_v15 = vrot.slane %v661_v11, 1 }
  0x65   : > { %v663_v19 = vadd.f32 %v662_v15, %v661_v11 }
  0x67   : > { %v5241_v24 = vmul.f32 %v5238_v21, %v663_v19 }
  0x69   : > { %v5245_v25 = vsub.f32 %v4943_v1, %v5241_v24  ;;  %v5249_v0 = vsub.f32 %v4946_v2, %v5241_v24  ;;  %v5253_v28 = vsub.f32 %v4949_v3, %v5241_v24  ;;  %v5257_v30 = vsub.f32 %v4954_v4, %v5241_v24 }
  0x6a   : > { %v5261_v33 = vsub.f32 %v4963_v8, %v5241_v24  ;;  %v5271_v3 = vsub.f32 %v4974_v14, %v5241_v24  ;;  %v5277_v8 = vsub.f32 %v4984_v17, %v5241_v24  ;;  %v5286_v14 = vsub.f32 %v4993_v20, %v5241_v24 }
  0x6b   : > { %v704_v1 = vmul.f32 %v5245_v25, %v5245_v25  ;;  %v705_v34 = vmul.f32 %v5249_v0, %v5249_v0  ;;  %v706_v2 = vmul.f32 %v5253_v28, %v5253_v28  ;;  %v707_v4 = vmul.f32 %v5257_v30, %v5257_v30 }
  0x6c   : > { %v708_v37 = vmul.f32 %v5261_v33, %v5261_v33  ;;  %v709_v48 = vmul.f32 %v5271_v3, %v5271_v3  ;;  %v5293_v52 = vsub.f32 %v5002_v23, %v5241_v24  ;;  %v710_v54 = vmul.f32 %v5277_v8, %v5277_v8 }
  0x6d   : > { %v736_v39 = vsel %vm435_vm0, %v704_v1, 0.0  ;;  %v737_v42 = vsel %vm435_vm0, %v705_v34, 0.0  ;;  %v739_v43 = vsel %vm435_vm0, %v706_v2, 0.0  ;;  %v741_v17 = vsel %vm435_vm0, %v707_v4, 0.0 }
  0x6e   : > { %v738_v46 = vadd.f32 %v737_v42, %v736_v39  ;;  %v743_v55 = vsel %vm435_vm0, %v708_v37, 0.0  ;;  %v5300_v20 = vsub.f32 %v5011_v26, %v5241_v24  ;;  %v711_v58 = vmul.f32 %v5286_v14, %v5286_v14 }
  0x6f   : > { %v745_v60 = vsel %vm435_vm0, %v709_v48, 0.0  ;;  %v5307_v23 = vsub.f32 %v5020_v29, %v5241_v24  ;;  %v712_v62 = vmul.f32 %v5293_v52, %v5293_v52  ;;  %v747_v63 = vsel %vm435_vm0, %v710_v54, 0.0 }
  0x70   : > { %v740_v49 = vadd.f32 %v739_v43, %v738_v46  ;;  %v5314_v26 = vsub.f32 %v5029_v32, %v5241_v24  ;;  %v713_v7 = vmul.f32 %v5300_v20, %v5300_v20  ;;  %v749_v9 = vsel %vm435_vm0, %v711_v58, 0.0 }
  0x71   : > { %v5321_v29 = vsub.f32 %v5038_v35, %v5241_v24  ;;  %v714_v12 = vmul.f32 %v5307_v23, %v5307_v23  ;;  %v751_v15 = vsel %vm435_vm0, %v712_v62, 0.0  ;;  %v5328_v32 = vsub.f32 %v5047_v38, %v5241_v24 }
  0x72   : > { %v742_v57 = vadd.f32 %v741_v17, %v740_v49  ;;  %v715_v19 = vmul.f32 %v5314_v26, %v5314_v26  ;;  %v753_v1 = vsel %vm435_vm0, %v713_v7, 0.0  ;;  %v5335_v35 = vsub.f32 %v5056_v41, %v5241_v24 }
  0x73   : > { %v716_v2 = vmul.f32 %v5321_v29, %v5321_v29  ;;  %v755_v4 = vsel %vm435_vm0, %v714_v12, 0.0  ;;  %v5342_v38 = vsub.f32 %v5065_v44, %v5241_v24  ;;  %v717_v39 = vmul.f32 %v5328_v32, %v5328_v32 }
  0x74   : > { %v744_v61 = vadd.f32 %v743_v55, %v742_v57  ;;  %v757_v42 = vsel %vm435_vm0, %v715_v19, 0.0  ;;  %v5349_v41 = vsub.f32 %v5074_v47, %v5241_v24  ;;  %v718_v46 = vmul.f32 %v5335_v35, %v5335_v35 }
  0x75   : > { %v759_v48 = vsel %vm435_vm0, %v716_v2, 0.0  ;;  %v5356_v44 = vsub.f32 %v5083_v50, %v5241_v24  ;;  %v719_v49 = vmul.f32 %v5342_v38, %v5342_v38  ;;  %v761_v54 = vsel %vm435_vm0, %v717_v39, 0.0 }
  0x76   : > { %v746_v5 = vadd.f32 %v745_v60, %v744_v61  ;;  %v5363_v47 = vsub.f32 %v5092_v53, %v5241_v24  ;;  %v720_v57 = vmul.f32 %v5349_v41, %v5349_v41  ;;  %v763_v58 = vsel %vm435_vm0, %v718_v46, 0.0 }
  0x77   : > { %v5370_v50 = vsub.f32 %v5101_v56, %v5241_v24  ;;  %v721_v61 = vmul.f32 %v5356_v44, %v5356_v44  ;;  %v765_v62 = vsel %vm435_vm0, %v719_v49, 0.0  ;;  %v5377_v53 = vsub.f32 %v5110_v59, %v5241_v24 }
  0x78   : > { %v748_v11 = vadd.f32 %v747_v63, %v746_v5  ;;  %v722_v5 = vmul.f32 %v5363_v47, %v5363_v47  ;;  %v767_v7 = vsel %vm435_vm0, %v720_v57, 0.0  ;;  %v5384_v56 = vsub.f32 %v5119_v6, %v5241_v24 }
  0x79   : > { %v769_v12 = vsel %vm435_vm0, %v721_v61, 0.0  ;;  %v5391_v59 = vsub.f32 %v5129_v10, %v5241_v24  ;;  %v5398_v6 = vsub.f32 %v5138_v13, %v5241_v24  ;;  %v5405_v10 = vsub.f32 %v5147_v18, %v5241_v24 }
  0x7a   : > { %v750_v16 = vadd.f32 %v749_v9, %v748_v11  ;;  %v723_v11 = vmul.f32 %v5370_v50, %v5370_v50  ;;  %v771_v19 = vsel %vm435_vm0, %v722_v5, 0.0  ;;  %v5412_v13 = vsub.f32 %v5156_v22, %v5241_v24 }
  0x7b   : > { %v5419_v18 = vsub.f32 %v5165_v27, %v5241_v24  ;;  %v5426_v22 = vsub.f32 %v5174_v31, %v5241_v24  ;;  %v5433_v27 = vsub.f32 %v5183_v36, %v5241_v24  ;;  %v5440_v31 = vsub.f32 %v5192_v40, %v5241_v24 }
  0x7c   : > { %v752_v34 = vadd.f32 %v751_v15, %v750_v16  ;;  %v724_v16 = vmul.f32 %v5377_v53, %v5377_v53  ;;  %v773_v2 = vsel %vm435_vm0, %v723_v11, 0.0  ;;  %v5447_v36 = vsub.f32 %v5201_v45, %v5241_v24 }
  0x7d   : > { %v5454_v40 = vsub.f32 %v5210_v51, %v5241_v24 }
  0x7e   : > { %v754_v37 = vadd.f32 %v753_v1, %v752_v34  ;;  %v725_v34 = vmul.f32 %v5384_v56, %v5384_v56  ;;  %v775_v39 = vsel %vm435_vm0, %v724_v16, 0.0  ;;  %v734_v45 = vmul.f32 %v5447_v36, %v5447_v36 }
  0x80   : > { %v756_v43 = vadd.f32 %v755_v4, %v754_v37  ;;  %v726_v37 = vmul.f32 %v5391_v59, %v5391_v59  ;;  %v777_v46 = vsel %vm435_vm0, %v725_v34, 0.0  ;;  %v795_v51 = vsel %vm435_vm0, %v734_v45, 0.0 }
  0x82   : > { %v758_v17 = vadd.f32 %v757_v42, %v756_v43  ;;  %v727_v43 = vmul.f32 %v5398_v6, %v5398_v6  ;;  %v779_v49 = vsel %vm435_vm0, %v726_v37, 0.0 }
  0x84   : > { %v760_v55 = vadd.f32 %v759_v48, %v758_v17  ;;  %v728_v17 = vmul.f32 %v5405_v10, %v5405_v10  ;;  %v781_v57 = vsel %vm435_vm0, %v727_v43, 0.0 }
  0x86   : > { %v762_v60 = vadd.f32 %v761_v54, %v760_v55  ;;  %v729_v55 = vmul.f32 %v5412_v13, %v5412_v13  ;;  %v783_v61 = vsel %vm435_vm0, %v728_v17, 0.0 }
  0x88   : > { %v764_v63 = vadd.f32 %v763_v58, %v762_v60  ;;  %v730_v60 = vmul.f32 %v5419_v18, %v5419_v18  ;;  %v785_v5 = vsel %vm435_vm0, %v729_v55, 0.0 }
  0x8a   : > { %v766_v9 = vadd.f32 %v765_v62, %v764_v63  ;;  %v731_v63 = vmul.f32 %v5426_v22, %v5426_v22  ;;  %v787_v11 = vsel %vm435_vm0, %v730_v60, 0.0 }
  0x8c   : > { %v768_v15 = vadd.f32 %v767_v7, %v766_v9  ;;  %v732_v9 = vmul.f32 %v5433_v27, %v5433_v27  ;;  %v789_v16 = vsel %vm435_vm0, %v731_v63, 0.0 }
  0x8e   : > { %v770_v1 = vadd.f32 %v769_v12, %v768_v15  ;;  %v733_v15 = vmul.f32 %v5440_v31, %v5440_v31 }
  0x90   : > { %v772_v4 = vadd.f32 %v771_v19, %v770_v1  ;;  %v791_v1 = vsel %vm435_vm0, %v732_v9, 0.0  ;;  %v5471_v9 = vld [vmem:[%s6983_s6] ss:$0 sm:$0xff] }
  0x92   : > { %v774_v42 = vadd.f32 %v773_v2, %v772_v4  ;;  %v735_v2 = vmul.f32 %v5454_v40, %v5454_v40  ;;  %v793_v4 = vsel %vm435_vm0, %v733_v15, 0.0  ;;  %v5482_v15 = vld [vmem:[%s6984_s7] ss:$0 sm:$0xff] }
  0x94   : > { %v776_v48 = vadd.f32 %v775_v39, %v774_v42  ;;  %v797_v39 = vsel %vm435_vm0, %v735_v2, 0.0 }
  0x96   : > { %v778_v54 = vadd.f32 %v777_v46, %v776_v48 }
  0x98   : > { %v780_v58 = vadd.f32 %v779_v49, %v778_v54 }
  0x9a   : > { %v782_v62 = vadd.f32 %v781_v57, %v780_v58 }
  0x9c   : > { %v784_v7 = vadd.f32 %v783_v61, %v782_v62 }
  0x9e   : > { %v786_v12 = vadd.f32 %v785_v5, %v784_v7 }
  0xa0   : > { %v788_v19 = vadd.f32 %v787_v11, %v786_v12 }
  0xa2   : > { %v790_v34 = vadd.f32 %v789_v16, %v788_v19 }
  0xa4   : > { %v792_v37 = vadd.f32 %v791_v1, %v790_v34 }
  0xa6   : > { %v794_v24 = vadd.f32 %v793_v4, %v792_v37 }
  0xa8   : > { %v796_v42 = vadd.f32 %v795_v51, %v794_v24 }
  0xaa   : > { %v798_v43 = vadd.f32 %v797_v39, %v796_v42 }
  0xac   : > { %v799_v46 = vrot.slane %v798_v43, 4 }
  0xae   : > { %v800_v48 = vadd.f32 %v799_v46, %v798_v43 }
  0xb0   : > { %v801_v17 = vrot.slane %v800_v48, 2 }
  0xb2   : > { %v802_v49 = vadd.f32 %v801_v17, %v800_v48 }
  0xb4   : > { %v803_v54 = vrot.slane %v802_v49, 1 }
  0xb6   : > { %v804_v55 = vadd.f32 %v803_v54, %v802_v49 }
  0xb8   : > { %v805_v57 = vmul.f32 %v804_v55, %v5238_v21 }
  0xba   : > { %v806_v58 = vadd.f32 1e-05, %v805_v57 }
  0xbc   : > { %4695 = vrsqrt.f32 %v806_v58  ;;  %vm813_vm3 = vweird.f32 %v806_v58 }
  0xc2   : > { %v4696_v60 = vpop.eup %4695 }
  0xc3   : > { %v808_v61 = vmul.f32 %v4696_v60, %v806_v58  ;;  %vm814_vm4 = vweird.f32 %v4696_v60 }
  0xc4   : > { %vm815_vm5 = vmor %vm813_vm3, %vm814_vm4 }
  0xc5   : > { %v809_v62 = vmul.f32 %v4696_v60, %v808_v61 }
  0xc7   : > { %v810_v63 = vmul.f32 0.5, %v809_v62 }
  0xc9   : > { %v811_v5 = vsub.f32 1.5, %v810_v63 }
  0xcb   : > { %v812_v7 = vmul.f32 %v4696_v60, %v811_v5 }
  0xcd   : > { %v5473_v11 = vsel %vm815_vm5, %v4696_v60, %v812_v7  ;;  %vm484_vm5 = vcmask 1041408  }
  0xce   : > { %v817_v21 = vmul.f32 %v5473_v11, %v5245_v25  ;;  %v818_v12 = vmul.f32 %v5473_v11, %v5249_v0  ;;  %v819_v16 = vmul.f32 %v5473_v11, %v5253_v28  ;;  %v820_v19 = vmul.f32 %v5473_v11, %v5257_v30 }
  0xcf   : > { %v821_v45 = vmul.f32 %v5473_v11, %v5261_v33  ;;  %v822_v25 = vmul.f32 %v5473_v11, %v5271_v3 }
  0xd0   : > { %v852_v1 = vmul.f32 %v5471_v9, %v817_v21  ;;  %v853_v0 = vmul.f32 %v5471_v9, %v818_v12  ;;  %v854_v34 = vmul.f32 %v5471_v9, %v819_v16  ;;  %v855_v2 = vmul.f32 %v5471_v9, %v820_v19 }
  0xd1   : > { %v856_v4 = vmul.f32 %v5471_v9, %v821_v45  ;;  %v857_v28 = vmul.f32 %v5471_v9, %v822_v25  ;;  %v823_v12 = vmul.f32 %v5473_v11, %v5277_v8  ;;  %v824_v16 = vmul.f32 %v5473_v11, %v5286_v14 }
  0xd2   : > { %v887_v30 = vadd.f32 %v5482_v15, %v852_v1  ;;  %v888_v37 = vadd.f32 %v5482_v15, %v853_v0  ;;  %v889_v33 = vadd.f32 %v5482_v15, %v854_v34  ;;  %v890_v3 = vadd.f32 %v5482_v15, %v855_v2 }
  0xd3   : > { %v891_v51 = vadd.f32 %v5482_v15, %v856_v4  ;;  %v892_v24 = vadd.f32 %v5482_v15, %v857_v28  ;;  %v858_v1 = vmul.f32 %v5471_v9, %v823_v12  ;;  %v859_v0 = vmul.f32 %v5471_v9, %v824_v16 }
  0xd4   : > { %vm919_vm6 = vcmp.gt.f32.partialorder %v887_v30, 0.0  ;;  %vm920_vm7 = vcmp.gt.f32.partialorder %v888_v37, 0.0  ;;  %v951_v39 = vmul.f32 0.2, %v887_v30  ;;  %v952_v42 = vmul.f32 0.2, %v888_v37 }
  0xd5   : > { %vm921_vm8 = vcmp.gt.f32.partialorder %v889_v33, 0.0  ;;  %vm922_vm9 = vcmp.gt.f32.partialorder %v890_v3, 0.0  ;;  %v953_v43 = vmul.f32 0.2, %v889_v33  ;;  %v954_v46 = vmul.f32 0.2, %v890_v3 }
  0xd6   : > { %v983_v48 = vsel %vm919_vm6, %v887_v30, %v951_v39  ;;  %v984_v17 = vsel %vm920_vm7, %v888_v37, %v952_v42  ;;  %vm923_vm10 = vcmp.gt.f32.partialorder %v891_v51, 0.0  ;;  %vm924_vm11 = vcmp.gt.f32.partialorder %v892_v24, 0.0 }
  0xd7   : > { %1071 = vst.msk [vmem:[#allocation2 + $0x19] sm:$0xff] %vm435_vm0, %v983_v48  ;;  %v985_v49 = vsel %vm921_vm8, %v889_v33, %v953_v43  ;;  %v986_v54 = vsel %vm922_vm9, %v890_v3, %v954_v46  ;;  %v955_v55 = vmul.f32 0.2, %v891_v51  ;;  %v956_v57 = vmul.f32 0.2, %v892_v24 }
  0xd8   : > { %1072 = vst.msk [vmem:[#allocation2 + $0x21] sm:$0xff] %vm435_vm0, %v984_v17  ;;  %v893_v8 = vadd.f32 %v5482_v15, %v858_v1  ;;  %v894_v14 = vadd.f32 %v5482_v15, %v859_v0 }
  0xd9   : > { %1073 = vst.msk [vmem:[#allocation2 + $0x31] sm:$0xff] %vm435_vm0, %v985_v49  ;;  %v987_v58 = vsel %vm923_vm10, %v891_v51, %v955_v55  ;;  %v988_v60 = vsel %vm924_vm11, %v892_v24, %v956_v57  ;;  %v825_v49 = vmul.f32 %v5473_v11, %v5293_v52  ;;  %vm2448_vm10 = vcmask 64512  }
  0xda   : > { %1074 = vst.msk [vmem:[#allocation2 + $0x39] sm:$0xff] %vm435_vm0, %v986_v54  ;;  %v957_v37 = vmul.f32 0.2, %v893_v8  ;;  %v958_v33 = vmul.f32 0.2, %v894_v14  ;;  %vm925_vm12 = vcmp.gt.f32.partialorder %v893_v8, 0.0  ;;  %v826_v54 = vmul.f32 %v5473_v11, %v5300_v20 }
  0xdb   : > { %1075 = vst.msk [vmem:[#allocation2 + $0x49] sm:$0xff] %vm435_vm0, %v987_v58  ;;  %vm926_vm13 = vcmp.gt.f32.partialorder %v894_v14, 0.0  ;;  %v860_v55 = vmul.f32 %v5471_v9, %v825_v49  ;;  %vm2481_vm11 = vcmask 97280  }
  0xdc   : > { %1076 = vst.msk [vmem:[#allocation2 + $0x51] sm:$0xff] %vm435_vm0, %v988_v60  ;;  %v989_v3 = vsel %vm925_vm12, %v893_v8, %v957_v37  ;;  %v990_v51 = vsel %vm926_vm13, %v894_v14, %v958_v33  ;;  %v861_v57 = vmul.f32 %v5471_v9, %v826_v54  ;;  %v828_v8 = vmul.f32 %v5473_v11, %v5314_v26 }
  0xdd   : > { %1077 = vst.msk [vmem:[#allocation2 + $0x61] sm:$0xff] %vm435_vm0, %v989_v3  ;;  %v895_v52 = vadd.f32 %v5482_v15, %v860_v55  ;;  %v829_v55 = vmul.f32 %v5473_v11, %v5321_v29  ;;  %vm2514_vm12 = vcmask 130048   ;;  %vm2547_vm13 = vcmask 162816  }
  0xde   : > { %v5510_v61 = vld [vmem:[#allocation2 + $0x18] sm:$0xff]  ;;  %1078 = vst.msk [vmem:[#allocation2 + $0x69] sm:$0xff] %vm435_vm0, %v990_v51  ;;  %v896_v20 = vadd.f32 %v5482_v15, %v861_v57  ;;  %v830_v57 = vmul.f32 %v5473_v11, %v5328_v32 }
  0xdf   : > { %v5512_v62 = vld [vmem:[#allocation2 + $0x20] sm:$0xff]  ;;  %vm927_vm14 = vcmp.gt.f32.partialorder %v895_v52, 0.0 }
  0xe0   : > { %v1169_v63 = vld [vmem:[#allocation2 + $0x1a] sm:$0xff]  ;;  %v3897_v5 = vpack.i.bf16 %v5512_v62, %v5510_v61  ;;  %v1328_v7 = vld [vmem:[#allocation2 + $0x31] sm:$0xff]  ;;  %v1170_v21 = vld [vmem:[#allocation2 + $0x22] sm:$0xff]  ;;  %v960_v12 = vmul.f32 0.2, %v896_v20  ;;  %vm928_vm15 = vcmp.gt.f32.partialorder %v896_v20, 0.0 }
  0xe1   : > { %v1329_v19 = vld [vmem:[#allocation2 + $0x39] sm:$0xff]  ;;  %v3932_v45 = vpack.i.bf16 %v1170_v21, %v1169_v63  ;;  %v1232_v2 = vld [vmem:[#allocation2 + $0x21] sm:$0xff]  ;;  %v5530_v28 = vld [vmem:[#allocation2 + $0x30] sm:$0xff]  ;;  %v959_v21 = vmul.f32 0.2, %v895_v52 }
  0xe2   : > { %3898 = vrot.lane.b32.xlu1 %v3897_v5, %s7001_s30  ;;  %v5521_v25 = vpack.i.bf16 %v1329_v19, %v1328_v7  ;;  %v1231_v34 = vld [vmem:[#allocation2 + $0x19] sm:$0xff]  ;;  %v5553_v58 = vld [vmem:[#allocation2 + $0x48] sm:$0xff]  ;;  %v992_v19 = vsel %vm928_vm15, %v896_v20, %v960_v12  ;;  %v865_v20 = vmul.f32 %v5471_v9, %v830_v57  ;;  %vm2613_vm15 = vcmask 228352  }
  0xe3   : > { %3908 = vrot.lane.b32.xlu2 %v3932_v45, %s6993_s12  ;;  %v3902_v4 = vpack.i.bf16 %v1232_v2, %v1231_v34  ;;  %v5532_v30 = vld [vmem:[#allocation2 + $0x38] sm:$0xff]  ;;  %v1362_v46 = vld [vmem:[#allocation2 + $0x4a] sm:$0xff]  ;;  %v991_v16 = vsel %vm927_vm14, %v895_v52, %v959_v21  ;;  %1080 = vst.msk [vmem:[#allocation2 + $0x81] sm:$0xff] %vm435_vm0, %v992_v19  ;;  %v827_v2 = vmul.f32 %v5473_v11, %v5307_v23  ;;  %vm2580_vm14 = vcmask 195584  }
  0xe4   : > { %3918 = vrot.lane.b32.xlu0 %v5521_v25, %s6989_s13  ;;  %v3937_v24 = vpack.i.bf16 %v5532_v30, %v5530_v28  ;;  %v1360_v39 = vld [vmem:[#allocation2 + $0x32] sm:$0xff]  ;;  %v1361_v42 = vld [vmem:[#allocation2 + $0x3a] sm:$0xff]  ;;  %v1235_v5 = vld [vmem:[#allocation2 + $0x49] sm:$0xff]  ;;  %1079 = vst.msk [vmem:[#allocation2 + $0x79] sm:$0xff] %vm435_vm0, %v991_v16  ;;  %v864_v52 = vmul.f32 %v5471_v9, %v829_v55 }
  0xe5   : > { %v3922_v43 = vpack.i.bf16 %v1361_v42, %v1360_v39  ;;  %v1363_v48 = vld [vmem:[#allocation2 + $0x52] sm:$0xff]  ;;  %v5570_v1 = vld [vmem:[#allocation2 + $0x60] sm:$0xff]  ;;  %v5572_v0 = vld [vmem:[#allocation2 + $0x68] sm:$0xff]  ;;  %v862_v14 = vmul.f32 %v5471_v9, %v827_v2 }
  0xe6   : > { %v5544_v17 = vpack.i.bf16 %v1363_v48, %v1362_v46  ;;  %v5555_v60 = vld [vmem:[#allocation2 + $0x50] sm:$0xff]  ;;  %v3992_v34 = vpack.i.bf16 %v5572_v0, %v5570_v1  ;;  %v1332_v37 = vld [vmem:[#allocation2 + $0x61] sm:$0xff] }
  0xe7   : > { %v3952_v63 = vpack.i.bf16 %v5555_v60, %v5553_v58  ;;  %v1236_v7 = vld [vmem:[#allocation2 + $0x51] sm:$0xff]  ;;  %v1333_v33 = vld [vmem:[#allocation2 + $0x69] sm:$0xff] }
  0xe8   : > { %v3997_v26 = vpack.i.bf16 %v1333_v33, %v1332_v37  ;;  %v1270_v39 = vld [vmem:[#allocation2 + $0x6a] sm:$0xff]  ;;  %v832_v37 = vmul.f32 %v5473_v11, %v5342_v38 }
  0xe9   : > { %v2699_v33 = vld [vmem:[%s7012_s1 + $0x10] sm:$0x3] }
  0xea   : > { %3903 = vrot.lane.b32.xlu1 %v3902_v4, %s6997_s22  ;;  %v1335_v49 = vld [vmem:[#allocation2 + $0x81] sm:$0xff] }
  0xeb   : > { %3913 = vrot.lane.b32.xlu2 %v3937_v24, %s6999_s24  ;;  %v1334_v48 = vld [vmem:[#allocation2 + $0x79] sm:$0xff] }
  0xec   : > { %3933 = vrot.lane.b32.xlu0 %v3932_v45, %s7003_s16  ;;  %v3982_v45 = vpack.i.bf16 %v1236_v7, %v1235_v5  ;;  %v5597_v54 = vpack.i.bf16 %v1335_v49, %v1334_v48  ;;  %v900_v5 = vadd.f32 %v5482_v15, %v865_v20  ;;  %v1207_v29 = vld [vmem:[#allocation2 + $0x78] sm:$0xff]  ;;  %v1208_v7 = vld [vmem:[#allocation2 + $0x80] sm:$0xff]  ;;  %v3828_v20 = vld [vmem:[%s7012_s1 + $0x8] sm:$0xff] }
  0xed   : > { %v4057_v16 = vpack.i.bf16 %v1208_v7, %v1207_v29  ;;  %v1366_v19 = vld [vmem:[#allocation2 + $0x7a] sm:$0xff] }
  0xee   : > { %v964_v32 = vmul.f32 0.2, %v900_v5  ;;  %vm932_vm4 = vcmp.gt.f32.partialorder %v900_v5, 0.0 }
  0xf0   : > { %v996_v12 = vsel %vm932_vm4, %v900_v5, %v964_v32  ;;  %v3889_v5 = vpop.permute.xlu0 %3888  ;;  %v3827_v32 = vld [vmem:[%s7012_s1] sm:$0xff] }
  0xf1   : > { %1084 = vst.msk [vmem:[#allocation2 + $0xb1] sm:$0xff] %vm435_vm0, %v996_v12 }
  0xf2   : > { %3923 = vrot.lane.b32.xlu1 %v3922_v43, %s6991_s25 }
  0xf3   : > { %3928 = vrot.lane.b32.xlu2 %v3902_v4, %s6995_s15  ;;  %v863_v4 = vmul.f32 %v5471_v9, %v828_v8 }
  0xf4   : > { %3948 = vrot.lane.b32.xlu0 %v3922_v43, %s6993_s12 }
  0xf5   : > { %v898_v3 = vadd.f32 %v5482_v15, %v863_v4  ;;  %v831_v4 = vmul.f32 %v5473_v11, %v5335_v35 }
  0xf7   : > { %v962_v51 = vmul.f32 0.2, %v898_v3  ;;  %vm930_vm2 = vcmp.gt.f32.partialorder %v898_v3, 0.0 }
  0xfa   : > { %3938 = vrot.lane.b32.xlu1 %v3937_v24, %s7001_s30  ;;  %v1269_v24 = vld [vmem:[#allocation2 + $0x62] sm:$0xff] }
  0xfb   : > { %3943 = vrot.lane.b32.xlu2 %v5521_v25, %s6997_s22  ;;  %v4027_v46 = vpack.i.bf16 %v1270_v39, %v1269_v24 }
  0xfc   : > { %3963 = vrot.lane.b32.xlu0 %v5544_v17, %s6991_s25 }
 0x102   : > { %3953 = vrot.lane.b32.xlu1 %v3952_v63, %s6999_s24 }
 0x103   : > { %3958 = vrot.lane.b32.xlu2 %v3982_v45, %s6989_s13 }
 0x104   : > { %3978 = vrot.lane.b32.xlu0 %v3952_v63, %s7001_s30  ;;  %v899_v63 = vadd.f32 %v5482_v15, %v864_v52 }
 0x106   : > { %v963_v21 = vmul.f32 0.2, %v899_v63  ;;  %vm931_vm3 = vcmp.gt.f32.partialorder %v899_v63, 0.0 }
 0x10a   : > { %3968 = vrot.lane.b32.xlu1 %v5521_v25, %s6995_s15  ;;  %v897_v25 = vadd.f32 %v5482_v15, %v862_v14 }
 0x10b   : > { %3973 = vrot.lane.b32.xlu2 %v3922_v43, %s7003_s16  ;;  %v994_v43 = vsel %vm930_vm2, %v898_v3, %v962_v51  ;;  %v866_v3 = vmul.f32 %v5471_v9, %v831_v4  ;;  %v1339_v4 = vld [vmem:[#allocation2 + $0xb1] sm:$0xff]  ;;  %vm7005_vm2 = vcmask 293888  }
 0x10c   : > { %3993 = vrot.lane.b32.xlu0 %v3992_v34, %s6999_s24  ;;  %v961_v23 = vmul.f32 0.2, %v897_v25  ;;  %vm929_vm1 = vcmp.gt.f32.partialorder %v897_v25, 0.0  ;;  %1082 = vst.msk [vmem:[#allocation2 + $0x99] sm:$0xff] %vm435_vm0, %v994_v43 }
 0x10d   : > { %v901_v38 = vadd.f32 %v5482_v15, %v866_v3 }
 0x10e   : > { %v993_v42 = vsel %vm929_vm1, %v897_v25, %v961_v23  ;;  %v2713_v25 = vunpack.c.l.b16 %v2699_v33  ;;  %vm2646_vm1 = vcmask 261120  }
 0x10f   : > { %1081 = vst.msk [vmem:[#allocation2 + $0x91] sm:$0xff] %vm435_vm0, %v993_v42  ;;  %v965_v49 = vmul.f32 0.2, %v901_v38  ;;  %vm933_vm6 = vcmp.gt.f32.partialorder %v901_v38, 0.0 }
 0x110   : > { %v2716_v35 = vpack.c.b16 %v2713_v25, %v2713_v25  ;;  %v3890_v25 = vunpack.i.l.bf16 %v3889_v5 }
 0x111   : > { %v997_v57 = vsel %vm933_vm6, %v901_v38, %v965_v49 }
 0x112   : > { %3983 = vrot.lane.b32.xlu1 %v3982_v45, %s6997_s22  ;;  %v5641_v48 = vsel %vm484_vm5, %v2716_v35, 0  ;;  %1085 = vst.msk [vmem:[#allocation2 + $0xc1] sm:$0xff] %vm435_vm0, %v997_v57 }
 0x113   : > { %3988 = vrot.lane.b32.xlu2 %v5544_v17, %s6993_s12  ;;  %v1369_v8 = vld [vmem:[#allocation2 + $0x9a] sm:$0xff]  ;;  %2776 = vmatpush.bf16.msra.mxu1 %v5641_v48 }
 0x114   : > { %4008 = vrot.lane.b32.xlu0 %v3982_v45, %s6995_s15  ;;  %v1367_v45 = vld [vmem:[#allocation2 + $0x82] sm:$0xff] }
 0x116   : > { %v1368_v2 = vld [vmem:[#allocation2 + $0x92] sm:$0xff] }
 0x117   : > { %v5620_v14 = vpack.i.bf16 %v1369_v8, %v1368_v2  ;;  %v1304_v23 = vld [vmem:[#allocation2 + $0x90] sm:$0xff]  ;;  %v1305_v51 = vld [vmem:[#allocation2 + $0x98] sm:$0xff]  ;;  %2777 = vmatpush.bf16.msra.mxu1 %v3828_v20 }
 0x118   : > { %v4072_v42 = vpack.i.bf16 %v1305_v51, %v1304_v23  ;;  %v1241_v43 = vld [vmem:[#allocation2 + $0x91] sm:$0xff] }
 0x11a   : > { %3998 = vrot.lane.b32.xlu1 %v3997_v26, %s6989_s13 }
 0x11b   : > { %4003 = vrot.lane.b32.xlu2 %v4027_v46, %s6991_s25  ;;  %2778 = vmatpush.bf16.msra.mxu1 %v3827_v32 }
 0x11c   : > { %4023 = vrot.lane.b32.xlu0 %v3997_v26, %s6997_s22 }
 0x122   : > { %4013 = vrot.lane.b32.xlu1 %v5544_v17, %s7003_s16  ;;  %v995_v17 = vsel %vm931_vm3, %v899_v63, %v963_v21 }
 0x123   : > { %4018 = vrot.lane.b32.xlu2 %v3992_v34, %s7001_s30  ;;  %1083 = vst.msk [vmem:[#allocation2 + $0xa9] sm:$0xff] %vm435_vm0, %v995_v17  ;;  %v4042_v34 = vpack.i.bf16 %v1367_v45, %v1366_v19  ;;  %v833_v19 = vmul.f32 %v5473_v11, %v5349_v41  ;;  %v834_v45 = vmul.f32 %v5473_v11, %v5356_v44  ;;  %v1104_v41 = vld [vmem:[#allocation2 + $0x8] sm:$0xff]  ;;  %v1103_v44 = vld [vmem:[#allocation2] sm:$0xff] }
 0x124   : > { %4038 = vrot.lane.b32.xlu0 %v5597_v54, %s6989_s13  ;;  %s7020_s13 = smov 16  }
 0x125   : > { %v868_v2 = vmul.f32 %v5471_v9, %v833_v19  ;;  %v869_v8 = vmul.f32 %v5471_v9, %v834_v45 }
 0x127   : > { %v904_v33 = vadd.f32 %v5482_v15, %v869_v8 }
 0x129   : > { %vm936_vm9 = vcmp.gt.f32.partialorder %v904_v33, 0.0 }
 0x12a   : > { %4028 = vrot.lane.b32.xlu1 %v4027_v46, %s6993_s12  ;;  %v1306_v29 = vld [vmem:[#allocation2 + $0xa8] sm:$0xff]  ;;  %v1307_v7 = vld [vmem:[#allocation2 + $0xb0] sm:$0xff] }
 0x12b   : > { %4033 = vrot.lane.b32.xlu2 %v4057_v16, %s6999_s24  ;;  %v5657_v17 = vpack.i.bf16 %v1307_v7, %v1306_v29 }
 0x12c   : > { %4053 = vrot.lane.b32.xlu0 %v4027_v46, %s7003_s16  ;;  %v1242_v46 = vld [vmem:[#allocation2 + $0x99] sm:$0xff] }
 0x12d   : > { %v4102_v52 = vpack.i.bf16 %v1242_v46, %v1241_v43 }
 0x132   : > { %4043 = vrot.lane.b32.xlu1 %v4042_v34, %s6991_s25 }
 0x133   : > { %4048 = vrot.lane.b32.xlu2 %v3997_v26, %s6995_s15  ;;  %v867_v26 = vmul.f32 %v5471_v9, %v832_v37  ;;  %v903_v37 = vadd.f32 %v5482_v15, %v868_v2 }
 0x134   : > { %4068 = vrot.lane.b32.xlu0 %v4042_v34, %s6993_s12  ;;  %s7014_s12 = smov 20  }
 0x135   : > { %v902_v39 = vadd.f32 %v5482_v15, %v867_v26  ;;  %v967_v51 = vmul.f32 0.2, %v903_v37  ;;  %v968_v26 = vmul.f32 0.2, %v904_v33  ;;  %vm935_vm8 = vcmp.gt.f32.partialorder %v903_v37, 0.0 }
 0x137   : > { %vm934_vm7 = vcmp.gt.f32.partialorder %v902_v39, 0.0  ;;  %v966_v55 = vmul.f32 0.2, %v902_v39  ;;  %v999_v57 = vsel %vm935_vm8, %v903_v37, %v967_v51 }
 0x138   : > { %1087 = vst.msk [vmem:[#allocation2 + $0xd9] sm:$0xff] %vm435_vm0, %v999_v57 }
 0x139   : > { %v998_v63 = vsel %vm934_vm7, %v902_v39, %v966_v55  ;;  %v1275_v39 = vld [vmem:[#allocation2 + $0xaa] sm:$0xff]  ;;  %v2416_v55 = vsel %vm435_vm0, %v1103_v44, %v3890_v25 }
 0x13a   : > { %4058 = vrot.lane.b32.xlu1 %v4057_v16, %s7001_s30  ;;  %1086 = vst.msk [vmem:[#allocation2 + $0xc9] sm:$0xff] %vm435_vm0, %v998_v63  ;;  %v3894_v16 = vpop.permute.xlu0 %3893 }
 0x13b   : > { %4063 = vrot.lane.b32.xlu2 %v5597_v54, %s6997_s22  ;;  %v3896_v46 = vunpack.i.h.bf16 %v3894_v16  ;;  %v3895_v49 = vunpack.i.l.bf16 %v3894_v16  ;;  %v1340_v16 = vld [vmem:[#allocation2 + $0xc1] sm:$0xff] }
 0x13c   : > { %4083 = vrot.lane.b32.xlu0 %v5620_v14, %s6991_s25  ;;  %s7013_s25 = smov 28  }
 0x13d   : > { %v5637_v24 = vpop.permute.xlu2 %3908  ;;  %v2449_v29 = vsel %vm2448_vm10, %v2416_v55, %v3895_v49 }
 0x13e   : > { %v3911_v45 = vunpack.i.h.bf16 %v5637_v24  ;;  %v3910_v2 = vunpack.i.l.bf16 %v5637_v24 }
 0x141   : > { %v1341_v19 = vld [vmem:[#allocation2 + $0xc9] sm:$0xff] }
 0x142   : > { %4073 = vrot.lane.b32.xlu1 %v4072_v42, %s6999_s24  ;;  %v5708_v51 = vpack.i.bf16 %v1341_v19, %v1340_v16  ;;  %v1213_v16 = vld [vmem:[#allocation2 + $0xc0] sm:$0xff]  ;;  %v1214_v19 = vld [vmem:[#allocation2 + $0xc8] sm:$0xff] }
 0x143   : > { %4078 = vrot.lane.b32.xlu2 %v4102_v52, %s7013_s25 }
 0x144   : > { %4098 = vrot.lane.b32.xlu0 %v4072_v42, %s7001_s30  ;;  %v1276_v42 = vld [vmem:[#allocation2 + $0xb2] sm:$0xff] }
 0x145   : > { %v5652_v21 = vpop.permute.xlu2 %3913  ;;  %v5686_v20 = vpack.i.bf16 %v1276_v42, %v1275_v39  ;;  %v835_v39 = vmul.f32 %v5473_v11, %v5363_v47  ;;  %v836_v42 = vmul.f32 %v5473_v11, %v5370_v50 }
 0x146   : > { %v3915_v25 = vunpack.i.l.bf16 %v5652_v21 }
 0x147   : > { %v870_v47 = vmul.f32 %v5471_v9, %v835_v39  ;;  %v871_v55 = vmul.f32 %v5471_v9, %v836_v42 }
 0x14a   : > { %4088 = vrot.lane.b32.xlu1 %v5597_v54, %s6995_s15  ;;  %v3891_v54 = vunpack.i.h.bf16 %v3889_v5 }
 0x14b   : > { %4093 = vrot.lane.b32.xlu2 %v4042_v34, %s7003_s16  ;;  %v1338_v34 = vld [vmem:[#allocation2 + $0xa9] sm:$0xff] }
 0x14c   : > { %4113 = vrot.lane.b32.xlu0 %v5657_v17, %s6999_s24  ;;  %v5680_v35 = vpack.i.bf16 %v1339_v4, %v1338_v34  ;;  %v2417_v43 = vsel %vm435_vm0, %v1104_v41, %v3891_v54 }
 0x14d   : > { %v5664_v12 = vpop.permute.xlu2 %3928  ;;  %v2450_v7 = vsel %vm2448_vm10, %v2417_v43, %v3896_v46 }
 0x152   : > { %4103 = vrot.lane.b32.xlu1 %v4102_v52, %s6997_s22 }
 0x153   : > { %4108 = vrot.lane.b32.xlu2 %v5620_v14, %s7014_s12 }
 0x154   : > { %v3899_v3 = vpop.permute.xlu1 %3898  ;;  %4128 = vrot.lane.b32.xlu0 %v4102_v52, %s6995_s15  ;;  %v1000_v52 = vsel %vm936_vm9, %v904_v33, %v968_v26  ;;  %v3916_v33 = vunpack.i.h.bf16 %v5652_v21 }
 0x155   : > { %v5678_v23 = vpop.permute.xlu2 %3943  ;;  %v3901_v63 = vunpack.i.h.bf16 %v3899_v3  ;;  %v3900_v5 = vunpack.i.l.bf16 %v3899_v3  ;;  %1088 = vst.msk [vmem:[#allocation2 + $0xe1] sm:$0xff] %vm435_vm0, %v1000_v52  ;;  %v905_v52 = vadd.f32 %v5482_v15, %v870_v47 }
 0x156   : > { %v5682_v38 = vpop.permute.xlu0 %3918  ;;  %v3946_v47 = vunpack.i.h.bf16 %v5678_v23 }
 0x157   : > { %v2483_v4 = vsel %vm2481_vm11, %v2450_v7, %v3901_v63  ;;  %v2482_v37 = vsel %vm2481_vm11, %v2449_v29, %v3900_v5  ;;  %v3921_v43 = vunpack.i.h.bf16 %v5682_v38  ;;  %v3920_v21 = vunpack.i.l.bf16 %v5682_v38 }
 0x158   : > { %v906_v63 = vadd.f32 %v5482_v15, %v871_v55  ;;  %v3931_v5 = vunpack.i.h.bf16 %v5664_v12  ;;  %vm937_vm3 = vcmp.gt.f32.partialorder %v905_v52, 0.0  ;;  %v3945_v55 = vunpack.i.l.bf16 %v5678_v23 }
 0x15a   : > { %4118 = vrot.lane.b32.xlu1 %v5680_v35, %s7013_s25  ;;  %vm938_vm4 = vcmp.gt.f32.partialorder %v906_v63, 0.0 }
 0x15b   : > { %4123 = vrot.lane.b32.xlu2 %v5686_v20, %s7015_s29 }
 0x15c   : > { %v3904_v32 = vpop.permute.xlu1 %3903  ;;  %4143 = vrot.lane.b32.xlu0 %v5680_v35, %s6997_s22 }
 0x15d   : > { %v3906_v8 = vunpack.i.h.bf16 %v3904_v32  ;;  %v3905_v54 = vunpack.i.l.bf16 %v3904_v32  ;;  %v5700_v34 = vpop.permute.xlu2 %3958 }
 0x15e   : > { %v3934_v41 = vpop.permute.xlu0 %3933  ;;  %v3960_v23 = vunpack.i.l.bf16 %v5700_v34 }
 0x15f   : > { %v2515_v3 = vsel %vm2514_vm12, %v2482_v37, %v3905_v54  ;;  %v2516_v44 = vsel %vm2514_vm12, %v2483_v4, %v3906_v8  ;;  %v969_v54 = vmul.f32 0.2, %v905_v52  ;;  %v3936_v4 = vunpack.i.h.bf16 %v3934_v41 }
 0x160   : > { %v2548_v24 = vsel %vm2547_vm13, %v2515_v3, %v3910_v2  ;;  %v2549_v26 = vsel %vm2547_vm13, %v2516_v44, %v3911_v45  ;;  %v3935_v37 = vunpack.i.l.bf16 %v3934_v41  ;;  %v2419_v3 = vsel %vm435_vm0, %v5512_v62, %v3931_v5 }
 0x161   : > { %v2581_v46 = vsel %vm2580_vm14, %v2548_v24, %v3915_v25  ;;  %v2582_v49 = vsel %vm2580_vm14, %v2549_v26, %v3916_v33  ;;  %v4177_v33 = vpack.i.bf16 %v1214_v19, %v1213_v16  ;;  %v1001_v44 = vsel %vm937_vm3, %v905_v52, %v969_v54  ;;  %v1372_v24 = vld [vmem:[#allocation2 + $0xc2] sm:$0xff]  ;;  %v1373_v26 = vld [vmem:[#allocation2 + $0xca] sm:$0xff]  ;;  %v1374_v19 = vld [vmem:[#allocation2 + $0xda] sm:$0xff] }
 0x162   : > { %4133 = vrot.lane.b32.xlu1 %v5620_v14, %s7003_s16  ;;  %v2614_v29 = vsel %vm2613_vm15, %v2581_v46, %v3920_v21  ;;  %v2615_v7 = vsel %vm2613_vm15, %v2582_v49, %v3921_v43  ;;  %1089 = vst.msk [vmem:[#allocation2 + $0xf1] sm:$0xff] %vm435_vm0, %v1001_v44  ;;  %v2452_v62 = vsel %vm2448_vm10, %v2419_v3, %v3936_v4  ;;  %v3961_v5 = vunpack.i.h.bf16 %v5700_v34 }
 0x163   : > { %4138 = vrot.lane.b32.xlu2 %v5657_v17, %s7001_s30  ;;  %v3930_v17 = vunpack.i.l.bf16 %v5664_v12  ;;  %v970_v12 = vmul.f32 0.2, %v906_v63  ;;  %v5754_v46 = vpack.i.bf16 %v1373_v26, %v1372_v24  ;;  %v837_v3 = vmul.f32 %v5473_v11, %v5377_v53 }
 0x164   : > { %v3924_v50 = vpop.permute.xlu1 %3923  ;;  %4158 = vrot.lane.b32.xlu0 %v5708_v51, %s7013_s25  ;;  %v838_v26 = vmul.f32 %v5473_v11, %v5384_v56 }
 0x165   : > { %v3926_v38 = vunpack.i.h.bf16 %v3924_v50  ;;  %v3925_v57 = vunpack.i.l.bf16 %v3924_v50  ;;  %v5728_v14 = vpop.permute.xlu2 %3973  ;;  %v2418_v25 = vsel %vm435_vm0, %v5510_v61, %v3930_v17  ;;  %v1002_v39 = vsel %vm938_vm4, %v906_v63, %v970_v12 }
 0x166   : > { %v3949_v32 = vpop.permute.xlu0 %3948  ;;  %1090 = vst.msk [vmem:[#allocation2 + $0xf9] sm:$0xff] %vm435_vm0, %v1002_v39  ;;  %v2451_v61 = vsel %vm2448_vm10, %v2418_v25, %v3935_v37 }
 0x167   : > { %v2647_v45 = vsel %vm2646_vm1, %v2614_v29, %v3925_v57  ;;  %v2648_v2 = vsel %vm2646_vm1, %v2615_v7, %v3926_v38  ;;  %v3951_v38 = vunpack.i.h.bf16 %v3949_v32  ;;  %v3950_v57 = vunpack.i.l.bf16 %v3949_v32 }
 0x168   : > { %v2679_v8 = vpack.c.bf16 %v2648_v2, %v2647_v45  ;;  %v1375_v45 = vld [vmem:[#allocation2 + $0xe2] sm:$0xff] }
 0x169   : > { %v5778_v25 = vpack.i.bf16 %v1375_v45, %v1374_v19 }
 0x16a   : > { %4148 = vrot.lane.b32.xlu1 %v5686_v20, %s7014_s12  ;;  %3793 = vmatmul.msk.bf16.vlgmr.msra.gmra.mxu1 %vm7005_vm2, %v2679_v8 }
 0x16b   : > { %4153 = vrot.lane.b32.xlu2 %v4177_v33, %s6999_s24 }
 0x16c   : > { %v3939_v41 = vpop.permute.xlu1 %3938  ;;  %4173 = vrot.lane.b32.xlu0 %v5686_v20, %s7003_s16 }
 0x16d   : > { %v3941_v42 = vunpack.i.h.bf16 %v3939_v41  ;;  %v3940_v43 = vunpack.i.l.bf16 %v3939_v41  ;;  %v5752_v21 = vpop.permute.xlu2 %3988  ;;  %v872_v41 = vmul.f32 %v5471_v9, %v837_v3 }
 0x16e   : > { %v3964_v49 = vpop.permute.xlu0 %3963  ;;  %v3991_v3 = vunpack.i.h.bf16 %v5752_v21 }
 0x16f   : > { %v2484_v50 = vsel %vm2481_vm11, %v2451_v61, %v3940_v43  ;;  %v2485_v20 = vsel %vm2481_vm11, %v2452_v62, %v3941_v42  ;;  %v3966_v32 = vunpack.i.h.bf16 %v3964_v49  ;;  %v3965_v16 = vunpack.i.l.bf16 %v3964_v49  ;;  %v1310_v61 = vld [vmem:[#allocation2 + $0xd8] sm:$0xff]  ;;  %v1311_v62 = vld [vmem:[#allocation2 + $0xe0] sm:$0xff] }
 0x170   : > { %v2517_v52 = vsel %vm2514_vm12, %v2484_v50, %v3945_v55  ;;  %v2518_v63 = vsel %vm2514_vm12, %v2485_v20, %v3946_v47  ;;  %v873_v42 = vmul.f32 %v5471_v9, %v838_v26  ;;  %v907_v56 = vadd.f32 %v5482_v15, %v872_v41  ;;  %v1247_v47 = vld [vmem:[#allocation2 + $0xd9] sm:$0xff]  ;;  %v1248_v55 = vld [vmem:[#allocation2 + $0xe1] sm:$0xff] }
 0x171   : > { %v2550_v8 = vsel %vm2547_vm13, %v2517_v52, %v3950_v57  ;;  %v4192_v20 = vpack.i.bf16 %v1311_v62, %v1310_v61  ;;  %v3976_v52 = vunpack.i.h.bf16 %v5728_v14 }
 0x172   : > { %4163 = vrot.lane.b32.xlu1 %v5754_v46, %s7015_s29  ;;  %v908_v50 = vadd.f32 %v5482_v15, %v873_v42  ;;  %v971_v57 = vmul.f32 0.2, %v907_v56  ;;  %vm939_vm6 = vcmp.gt.f32.partialorder %v907_v56, 0.0 }
 0x173   : > { %4168 = vrot.lane.b32.xlu2 %v5680_v35, %s6995_s15  ;;  %v2551_v35 = vsel %vm2547_vm13, %v2518_v63, %v3951_v38  ;;  %v3975_v63 = vunpack.i.l.bf16 %v5728_v14 }
 0x174   : > { %v3954_v17 = vpop.permute.xlu1 %3953  ;;  %4188 = vrot.lane.b32.xlu0 %v5754_v46, %s7014_s12  ;;  %vm940_vm7 = vcmp.gt.f32.partialorder %v908_v50, 0.0 }
 0x175   : > { %v3956_v29 = vunpack.i.h.bf16 %v3954_v17  ;;  %v3955_v7 = vunpack.i.l.bf16 %v3954_v17  ;;  %v5770_v2 = vpop.permute.xlu2 %4003 }
 0x176   : > { %v3979_v54 = vpop.permute.xlu0 %3978 }
 0x177   : > { %v2583_v4 = vsel %vm2580_vm14, %v2550_v8, %v3955_v7  ;;  %v2584_v34 = vsel %vm2580_vm14, %v2551_v35, %v3956_v29  ;;  %v972_v29 = vmul.f32 0.2, %v908_v50  ;;  %v1003_v7 = vsel %vm939_vm6, %v907_v56, %v971_v57  ;;  %v1312_v35 = vld [vmem:[#allocation2 + $0xf0] sm:$0xff] }
 0x178   : > { %v2616_v37 = vsel %vm2613_vm15, %v2583_v4, %v3960_v23  ;;  %v2617_v12 = vsel %vm2613_vm15, %v2584_v34, %v3961_v5  ;;  %v5800_v5 = vpack.i.bf16 %v1248_v55, %v1247_v47  ;;  %1091 = vst.msk [vmem:[#allocation2 + $0x109] sm:$0xff] %vm435_vm0, %v1003_v7  ;;  %v1313_v4 = vld [vmem:[#allocation2 + $0xf8] sm:$0xff] }
 0x179   : > { %v2649_v44 = vsel %vm2646_vm1, %v2616_v37, %v3965_v16  ;;  %v2650_v24 = vsel %vm2646_vm1, %v2617_v12, %v3966_v32  ;;  %v3981_v32 = vunpack.i.h.bf16 %v3979_v54  ;;  %v3980_v16 = vunpack.i.l.bf16 %v3979_v54  ;;  %v1345_v7 = vld [vmem:[#allocation2 + $0xf9] sm:$0xff] }
 0x17a   : > { %4178 = vrot.lane.b32.xlu1 %v4177_v33, %s7001_s30  ;;  %v2680_v39 = vpack.c.bf16 %v2650_v24, %v2649_v44  ;;  %v1004_v14 = vsel %vm940_vm7, %v908_v50, %v972_v29  ;;  %v3990_v44 = vunpack.i.l.bf16 %v5752_v21  ;;  %v4006_v21 = vunpack.i.h.bf16 %v5770_v2  ;;  %v1344_v29 = vld [vmem:[#allocation2 + $0xf1] sm:$0xff] }
 0x17b   : > { %4183 = vrot.lane.b32.xlu2 %v5708_v51, %s6997_s22  ;;  %1092 = vst.msk [vmem:[#allocation2 + $0x111] sm:$0xff] %vm435_vm0, %v1004_v14 }
 0x17c   : > { %v3969_v53 = vpop.permute.xlu1 %3968  ;;  %3794 = vmatmul.msk.bf16.gmra.mxu1 %vm7005_vm2, %v2680_v39  ;;  %4203 = vrot.lane.b32.xlu0 %v5778_v25, %s7015_s29  ;;  %v5822_v39 = vpack.i.bf16 %v1313_v4, %v1312_v35  ;;  %v5865_v35 = vpack.i.bf16 %v1345_v7, %v1344_v29 }
 0x17d   : > { %v3971_v43 = vunpack.i.h.bf16 %v3969_v53  ;;  %v3970_v33 = vunpack.i.l.bf16 %v3969_v53  ;;  %v5795_v49 = vpop.permute.xlu2 %4018  ;;  %v4005_v53 = vunpack.i.l.bf16 %v5770_v2 }
 0x17e   : > { %v3994_v38 = vpop.permute.xlu0 %3993 }
 0x17f   : > { %v2421_v23 = vsel %vm435_vm0, %v5532_v30, %v3971_v43  ;;  %v2420_v17 = vsel %vm435_vm0, %v5530_v28, %v3970_v33  ;;  %v3996_v41 = vunpack.i.h.bf16 %v3994_v38  ;;  %v3995_v61 = vunpack.i.l.bf16 %v3994_v38 }
 0x180   : > { %v2453_v19 = vsel %vm2448_vm10, %v2420_v17, %v3975_v63  ;;  %v2454_v45 = vsel %vm2448_vm10, %v2421_v23, %v3976_v52  ;;  %v839_v23 = vmul.f32 %v5473_v11, %v5391_v59  ;;  %v840_v17 = vmul.f32 %v5473_v11, %v5398_v6 }
 0x181   : > { %v2486_v37 = vsel %vm2481_vm11, %v2453_v19, %v3980_v16  ;;  %v2487_v12 = vsel %vm2481_vm11, %v2454_v45, %v3981_v32 }
 0x182   : > { %4193 = vrot.lane.b32.xlu1 %v4192_v20, %s6999_s24  ;;  %v874_v32 = vmul.f32 %v5471_v9, %v839_v23  ;;  %v875_v16 = vmul.f32 %v5471_v9, %v840_v17 }
 0x183   : > { %4198 = vrot.lane.b32.xlu2 %v5800_v5, %s7013_s25 }
 0x184   : > { %v3984_v30 = vpop.permute.xlu1 %3983  ;;  %4218 = vrot.lane.b32.xlu0 %v4192_v20, %s7001_s30 }
 0x185   : > { %v3986_v28 = vunpack.i.h.bf16 %v3984_v30  ;;  %v3985_v8 = vunpack.i.l.bf16 %v3984_v30  ;;  %v5814_v34 = vpop.permute.xlu2 %4033 }
 0x186   : > { %v4009_v54 = vpop.permute.xlu0 %4008 }
 0x187   : > { %v2519_v24 = vsel %vm2514_vm12, %v2486_v37, %v3985_v8  ;;  %v2520_v26 = vsel %vm2514_vm12, %v2487_v12, %v3986_v28  ;;  %v4011_v38 = vunpack.i.h.bf16 %v4009_v54  ;;  %v4010_v2 = vunpack.i.l.bf16 %v4009_v54  ;;  %v1282_v54 = vld [vmem:[#allocation2 + $0xfa] sm:$0xff] }
 0x188   : > { %v2552_v62 = vsel %vm2547_vm13, %v2519_v24, %v3990_v44  ;;  %v2553_v42 = vsel %vm2547_vm13, %v2520_v26, %v3991_v3  ;;  %v909_v28 = vadd.f32 %v5482_v15, %v874_v32  ;;  %v910_v8 = vadd.f32 %v5482_v15, %v875_v16 }
 0x189   : > { %v2586_v55 = vsel %vm2580_vm14, %v2553_v42, %v3996_v41  ;;  %v2423_v59 = vsel %vm435_vm0, %v5555_v60, %v4011_v38  ;;  %v2422_v6 = vsel %vm435_vm0, %v5553_v58, %v4010_v2  ;;  %v1281_v60 = vld [vmem:[#allocation2 + $0xf2] sm:$0xff]  ;;  %v4021_v58 = vunpack.i.h.bf16 %v5795_v49 }
 0x18a   : > { %4208 = vrot.lane.b32.xlu1 %v5708_v51, %s6995_s15  ;;  %v2585_v51 = vsel %vm2580_vm14, %v2552_v62, %v3995_v61  ;;  %v4020_v37 = vunpack.i.l.bf16 %v5795_v49  ;;  %vm941_vm8 = vcmp.gt.f32.partialorder %v909_v28, 0.0  ;;  %v5873_v3 = vpack.i.bf16 %v1282_v54, %v1281_v60 }
 0x18b   : > { %4213 = vrot.lane.b32.xlu2 %v5754_v46, %s7003_s16  ;;  %vm942_vm9 = vcmp.gt.f32.partialorder %v910_v8, 0.0  ;;  %v973_v44 = vmul.f32 0.2, %v909_v28  ;;  %v974_v24 = vmul.f32 0.2, %v910_v8  ;;  %v843_v26 = vmul.f32 %v5473_v11, %v5419_v18 }
 0x18c   : > { %v3999_v56 = vpop.permute.xlu1 %3998  ;;  %4233 = vrot.lane.b32.xlu0 %v5822_v39, %s6999_s24  ;;  %v844_v49 = vmul.f32 %v5473_v11, %v5426_v22 }
 0x18d   : > { %v4001_v43 = vunpack.i.h.bf16 %v3999_v56  ;;  %v4000_v33 = vunpack.i.l.bf16 %v3999_v56  ;;  %v5834_v47 = vpop.permute.xlu2 %4048  ;;  %v1005_v42 = vsel %vm941_vm8, %v909_v28, %v973_v44  ;;  %v878_v18 = vmul.f32 %v5471_v9, %v843_v26 }
 0x18e   : > { %v5838_v50 = vpop.permute.xlu0 %4023  ;;  %1093 = vst.msk [vmem:[#allocation2 + $0x121] sm:$0xff] %vm435_vm0, %v1005_v42  ;;  %v879_v22 = vmul.f32 %v5471_v9, %v844_v49  ;;  %v1379_v42 = vld [vmem:[#allocation2 + $0x112] sm:$0xff] }
 0x18f   : > { %v2618_v46 = vsel %vm2613_vm15, %v2585_v51, %v4000_v33  ;;  %v2619_v20 = vsel %vm2613_vm15, %v2586_v55, %v4001_v43  ;;  %v4026_v15 = vunpack.i.h.bf16 %v5838_v50  ;;  %v4025_v41 = vunpack.i.l.bf16 %v5838_v50  ;;  %v1346_v33 = vld [vmem:[#allocation2 + $0x109] sm:$0xff]  ;;  %v1347_v51 = vld [vmem:[#allocation2 + $0x111] sm:$0xff] }
 0x190   : > { %v2651_v57 = vsel %vm2646_vm1, %v2618_v46, %v4005_v53  ;;  %v2652_v52 = vsel %vm2646_vm1, %v2619_v20, %v4006_v21  ;;  %v1006_v53 = vsel %vm942_vm9, %v910_v8, %v974_v24  ;;  %v5898_v46 = vld [vmem:[%s6984_s7] ss:$0 sm:$0xff]  ;;  %v5908_v17 = vpack.i.bf16 %v1347_v51, %v1346_v33 }
 0x191   : > { %v2681_v63 = vpack.c.bf16 %v2652_v52, %v2651_v57  ;;  %1094 = vst.msk [vmem:[#allocation2 + $0x129] sm:$0xff] %vm435_vm0, %v1006_v53  ;;  %v913_v20 = vadd.f32 %v5898_v46, %v878_v18  ;;  %v914_v38 = vadd.f32 %v5898_v46, %v879_v22  ;;  %v4036_v57 = vunpack.i.h.bf16 %v5814_v34 }
 0x192   : > { %4223 = vrot.lane.b32.xlu1 %v5800_v5, %s6997_s22  ;;  %v4035_v52 = vunpack.i.l.bf16 %v5814_v34  ;;  %v846_v24 = vmul.f32 %v5473_v11, %v5440_v31 }
 0x193   : > { %3795 = vmatmul.msk.bf16.gmra.mxu1 %vm7005_vm2, %v2681_v63  ;;  %4228 = vrot.lane.b32.xlu2 %v5778_v25, %s7014_s12  ;;  %vm945_vm3 = vcmp.gt.f32.partialorder %v913_v20, 0.0  ;;  %vm946_vm4 = vcmp.gt.f32.partialorder %v914_v38, 0.0  ;;  %v977_v32 = vmul.f32 0.2, %v913_v20  ;;  %v978_v16 = vmul.f32 0.2, %v914_v38 }
 0x194   : > { %v4014_v14 = vpop.permute.xlu1 %4013  ;;  %4248 = vrot.lane.b32.xlu0 %v5800_v5, %s6995_s15  ;;  %s7016_s15 = smov 4  }
 0x195   : > { %v4016_v19 = vunpack.i.h.bf16 %v4014_v14  ;;  %v4015_v45 = vunpack.i.l.bf16 %v4014_v14  ;;  %v5861_v30 = vpop.permute.xlu2 %4063  ;;  %v1009_v14 = vsel %vm945_vm3, %v913_v20, %v977_v32 }
 0x196   : > { %v5867_v4 = vpop.permute.xlu0 %4038  ;;  %1097 = vst.msk [vmem:[#allocation2 + $0x151] sm:$0xff] %vm435_vm0, %v1009_v14  ;;  %v4066_v20 = vunpack.i.h.bf16 %v5861_v30 }
 0x197   : > { %v2455_v5 = vsel %vm2448_vm10, %v2422_v6, %v4015_v45  ;;  %v2456_v12 = vsel %vm2448_vm10, %v2423_v59, %v4016_v19  ;;  %v4041_v29 = vunpack.i.h.bf16 %v5867_v4  ;;  %v4040_v7 = vunpack.i.l.bf16 %v5867_v4 }
 0x198   : > { %v2488_v61 = vsel %vm2481_vm11, %v2455_v5, %v4020_v37  ;;  %v2489_v62 = vsel %vm2481_vm11, %v2456_v12, %v4021_v58  ;;  %v1010_v19 = vsel %vm946_vm4, %v914_v38, %v978_v16  ;;  %v4051_v45 = vunpack.i.h.bf16 %v5834_v47  ;;  %v1219_v58 = vld [vmem:[#allocation2 + $0x108] sm:$0xff]  ;;  %v1220_v37 = vld [vmem:[#allocation2 + $0x110] sm:$0xff] }
 0x199   : > { %v2521_v9 = vsel %vm2514_vm12, %v2488_v61, %v4025_v41  ;;  %v2522_v2 = vsel %vm2514_vm12, %v2489_v62, %v4026_v15  ;;  %1098 = vst.msk [vmem:[#allocation2 + $0x159] sm:$0xff] %vm435_vm0, %v1010_v19  ;;  %v845_v15 = vmul.f32 %v5473_v11, %v5433_v27  ;;  %v5938_v41 = vpack.i.bf16 %v1220_v37, %v1219_v58  ;;  %v5948_v27 = vld [vmem:[%s6983_s6] ss:$0 sm:$0xff]  ;;  %v1378_v62 = vld [vmem:[#allocation2 + $0x10a] sm:$0xff] }
 0x19a   : > { %4238 = vrot.lane.b32.xlu1 %v5865_v35, %s7013_s25  ;;  %v5962_v51 = vpack.i.bf16 %v1379_v42, %v1378_v62  ;;  %v4065_v38 = vunpack.i.l.bf16 %v5861_v30  ;;  %v842_v30 = vmul.f32 %v5473_v11, %v5412_v13  ;;  %v1381_v13 = vld [vmem:[#allocation2 + $0x12a] sm:$0xff]  ;;  %v1316_v62 = vld [vmem:[#allocation2 + $0x120] sm:$0xff] }
 0x19b   : > { %4243 = vrot.lane.b32.xlu2 %v5873_v3, %s7015_s29  ;;  %v880_v31 = vmul.f32 %v5948_v27, %v845_v15  ;;  %v1317_v42 = vld [vmem:[#allocation2 + $0x128] sm:$0xff] }
 0x19c   : > { %v4029_v21 = vpop.permute.xlu1 %4028  ;;  %4263 = vrot.lane.b32.xlu0 %v5865_v35, %s6997_s22  ;;  %v877_v19 = vmul.f32 %v5948_v27, %v842_v30 }
 0x19d   : > { %v4031_v56 = vunpack.i.h.bf16 %v4029_v21  ;;  %v4030_v43 = vunpack.i.l.bf16 %v4029_v21  ;;  %v5892_v55 = vpop.permute.xlu2 %4078  ;;  %v915_v21 = vadd.f32 %v5898_v46, %v880_v31  ;;  %v847_v31 = vmul.f32 %v5473_v11, %v5447_v36 }
 0x19e   : > { %v4054_v50 = vpop.permute.xlu0 %4053  ;;  %v912_v58 = vadd.f32 %v5898_v46, %v877_v19 }
 0x19f   : > { %v2554_v63 = vsel %vm2547_vm13, %v2521_v9, %v4030_v43  ;;  %v2555_v23 = vsel %vm2547_vm13, %v2522_v2, %v4031_v56  ;;  %v4056_v26 = vunpack.i.h.bf16 %v4054_v50  ;;  %v4055_v49 = vunpack.i.l.bf16 %v4054_v50 }
 0x1a0   : > { %v2587_v59 = vsel %vm2580_vm14, %v2554_v63, %v4035_v52  ;;  %v2588_v34 = vsel %vm2580_vm14, %v2555_v23, %v4036_v57  ;;  %vm947_vm6 = vcmp.gt.f32.partialorder %v915_v21, 0.0  ;;  %v979_v2 = vmul.f32 0.2, %v915_v21 }
 0x1a1   : > { %v2620_v4 = vsel %vm2613_vm15, %v2587_v59, %v4040_v7  ;;  %v2621_v60 = vsel %vm2613_vm15, %v2588_v34, %v4041_v29  ;;  %v841_v29 = vmul.f32 %v5473_v11, %v5405_v10  ;;  %v4081_v59 = vunpack.i.h.bf16 %v5892_v55  ;;  %v1380_v10 = vld [vmem:[#allocation2 + $0x122] sm:$0xff] }
 0x1a2   : > { %4253 = vrot.lane.b32.xlu1 %v5778_v25, %s7003_s16  ;;  %v1011_v23 = vsel %vm947_vm6, %v915_v21, %v979_v2  ;;  %v4080_v34 = vunpack.i.l.bf16 %v5892_v55  ;;  %vm944_vm9 = vcmp.gt.f32.partialorder %v912_v58, 0.0  ;;  %v882_v36 = vmul.f32 %v5948_v27, %v847_v31 }
 0x1a3   : > { %4258 = vrot.lane.b32.xlu2 %v5822_v39, %s7001_s30  ;;  %v4050_v39 = vunpack.i.l.bf16 %v5834_v47  ;;  %v2425_v47 = vsel %vm435_vm0, %v5572_v0, %v4051_v45  ;;  %v881_v0 = vmul.f32 %v5948_v27, %v846_v24  ;;  %1099 = vst.msk [vmem:[#allocation2 + $0x169] sm:$0xff] %vm435_vm0, %v1011_v23  ;;  %v876_v14 = vmul.f32 %v5948_v27, %v841_v29 }
 0x1a4   : > { %v4044_v6 = vpop.permute.xlu1 %4043  ;;  %4278 = vrot.lane.b32.xlu0 %v5908_v17, %s7013_s25  ;;  %v2458_v22 = vsel %vm2448_vm10, %v2425_v47, %v4056_v26  ;;  %v917_v2 = vadd.f32 %v5898_v46, %v882_v36  ;;  %v1115_v36 = vld [vmem:[#allocation2 + $0x90] sm:$0xff] }
 0x1a5   : > { %v4046_v28 = vunpack.i.h.bf16 %v4044_v6  ;;  %v4045_v8 = vunpack.i.l.bf16 %v4044_v6  ;;  %v5921_v25 = vpop.permute.xlu2 %4093  ;;  %v2424_v61 = vsel %vm435_vm0, %v5570_v1, %v4050_v39  ;;  %v916_v53 = vadd.f32 %v5898_v46, %v881_v0 }
 0x1a6   : > { %v5927_v54 = vpop.permute.xlu0 %4068  ;;  %v2457_v18 = vsel %vm2448_vm10, %v2424_v61, %v4055_v49  ;;  %v976_v49 = vmul.f32 0.2, %v912_v58  ;;  %v848_v0 = vmul.f32 %v5473_v11, %v5454_v40  ;;  %vm949_vm3 = vcmp.gt.f32.partialorder %v917_v2, 0.0 }
 0x1a7   : > { %v2653_v5 = vsel %vm2646_vm1, %v2620_v4, %v4045_v8  ;;  %v2654_v12 = vsel %vm2646_vm1, %v2621_v60, %v4046_v28  ;;  %vm948_vm7 = vcmp.gt.f32.partialorder %v916_v53, 0.0  ;;  %v4071_v57 = vunpack.i.h.bf16 %v5927_v54 }
 0x1a8   : > { %v2682_v44 = vpack.c.bf16 %v2654_v12, %v2653_v5  ;;  %v980_v52 = vmul.f32 0.2, %v916_v53  ;;  %v4070_v63 = vunpack.i.l.bf16 %v5927_v54  ;;  %v911_v54 = vadd.f32 %v5898_v46, %v876_v14 }
 0x1a9   : > { %v5998_v12 = vpack.i.bf16 %v1381_v13, %v1380_v10  ;;  %v1008_v21 = vsel %vm944_vm9, %v912_v58, %v976_v49 }
 0x1aa   : > { %4268 = vrot.lane.b32.xlu1 %v5873_v3, %s7014_s12  ;;  %3796 = vmatmul.msk.bf16.gmra.mxu1 %vm7005_vm2, %v2682_v44  ;;  %v1012_v16 = vsel %vm948_vm7, %v916_v53, %v980_v52  ;;  %vm943_vm8 = vcmp.gt.f32.partialorder %v911_v54, 0.0  ;;  %v975_v26 = vmul.f32 0.2, %v911_v54  ;;  %1096 = vst.msk [vmem:[#allocation2 + $0x141] sm:$0xff] %vm435_vm0, %v1008_v21 }
 0x1ab   : > { %4273 = vrot.lane.b32.xlu2 %v5938_v41, %s6999_s24  ;;  %1100 = vst.msk [vmem:[#allocation2 + $0x171] sm:$0xff] %vm435_vm0, %v1012_v16 }
 0x1ac   : > { %v4059_v1 = vpop.permute.xlu1 %4058  ;;  %4293 = vrot.lane.b32.xlu0 %v5873_v3, %s7003_s16 }
 0x1ad   : > { %v4061_v56 = vunpack.i.h.bf16 %v4059_v1  ;;  %v4060_v43 = vunpack.i.l.bf16 %v4059_v1  ;;  %v5960_v33 = vpop.permute.xlu2 %4108  ;;  %v1007_v1 = vsel %vm943_vm8, %v911_v54, %v975_v26 }
 0x1ae   : > { %v4084_v50 = vpop.permute.xlu0 %4083  ;;  %1095 = vst.msk [vmem:[#allocation2 + $0x139] sm:$0xff] %vm435_vm0, %v1007_v1 }
 0x1af   : > { %v2490_v3 = vsel %vm2481_vm11, %v2457_v18, %v4060_v43  ;;  %v2491_v9 = vsel %vm2481_vm11, %v2458_v22, %v4061_v56  ;;  %v4086_v28 = vunpack.i.h.bf16 %v4084_v50  ;;  %v4085_v8 = vunpack.i.l.bf16 %v4084_v50  ;;  %v1254_v18 = vld [vmem:[#allocation2 + $0x129] sm:$0xff]  ;;  %v1163_v22 = vld [vmem:[#allocation2 + $0x151] sm:$0xff]  ;;  %v1164_v56 = vld [vmem:[#allocation2 + $0x159] sm:$0xff] }
 0x1b0   : > { %v2523_v7 = vsel %vm2514_vm12, %v2490_v3, %v4065_v38  ;;  %v2524_v32 = vsel %vm2514_vm12, %v2491_v9, %v4066_v20  ;;  %v883_v50 = vmul.f32 %v5948_v27, %v848_v0  ;;  %v1113_v20 = vld [vmem:[#allocation2 + $0x78] sm:$0xff]  ;;  %v1114_v38 = vld [vmem:[#allocation2 + $0x80] sm:$0xff]  ;;  %v6021_v3 = vpack.i.bf16 %v1317_v42, %v1316_v62 }
 0x1b1   : > { %v2556_v55 = vsel %vm2547_vm13, %v2523_v7, %v4070_v63  ;;  %v2557_v60 = vsel %vm2547_vm13, %v2524_v32, %v4071_v57  ;;  %v4096_v57 = vunpack.i.h.bf16 %v5921_v25  ;;  %v4095_v63 = vunpack.i.l.bf16 %v5921_v25 }
 0x1b2   : > { %4283 = vrot.lane.b32.xlu1 %v5962_v51, %s7015_s29  ;;  %v6028_v23 = vpack.i.bf16 %v1164_v56, %v1163_v22  ;;  %v918_v29 = vadd.f32 %v5898_v46, %v883_v50  ;;  %v981_v7 = vmul.f32 0.2, %v917_v2  ;;  %v1116_v22 = vld [vmem:[#allocation2 + $0x98] sm:$0xff]  ;;  %v6078_v56 = vld [vmem:[#allocation2 + $0x168] sm:$0xff]  ;;  %v6080_v50 = vld [vmem:[#allocation2 + $0x170] sm:$0xff] }
 0x1b3   : > { %4288 = vrot.lane.b32.xlu2 %v5865_v35, %s7016_s15 }
 0x1b4   : > { %v4074_v6 = vpop.permute.xlu1 %4073  ;;  %4308 = vrot.lane.b32.xlu0 %v5962_v51, %s7014_s12  ;;  %vm950_vm4 = vcmp.gt.f32.partialorder %v918_v29, 0.0  ;;  %v982_v32 = vmul.f32 0.2, %v918_v29  ;;  %v1013_v25 = vsel %vm949_vm3, %v917_v2, %v981_v7 }
 0x1b5   : > { %v4076_v35 = vunpack.i.h.bf16 %v4074_v6  ;;  %v4075_v45 = vunpack.i.l.bf16 %v4074_v6  ;;  %v5988_v4 = vpop.permute.xlu2 %4123  ;;  %1101 = vst.msk [vmem:[#allocation2 + $0x181] sm:$0xff] %vm435_vm0, %v1013_v25  ;;  %v1350_v2 = vld [vmem:[#allocation2 + $0x139] sm:$0xff] }
 0x1b6   : > { %v5992_v39 = vpop.permute.xlu0 %4098  ;;  %v1014_v10 = vsel %vm950_vm4, %v918_v29, %v982_v32 }
 0x1b7   : > { %v2589_v37 = vsel %vm2580_vm14, %v2556_v55, %v4075_v45  ;;  %v2590_v5 = vsel %vm2580_vm14, %v2557_v60, %v4076_v35  ;;  %v4101_v16 = vunpack.i.h.bf16 %v5992_v39  ;;  %1102 = vst.msk [vmem:[#allocation2 + $0x189] sm:$0xff] %vm435_vm0, %v1014_v10  ;;  %v4110_v55 = vunpack.i.l.bf16 %v5960_v33  ;;  %v1319_v10 = vld [vmem:[#allocation2 + $0x140] sm:$0xff] }
 0x1b8   : > { %v2622_v44 = vsel %vm2613_vm15, %v2589_v37, %v4080_v34  ;;  %v2623_v15 = vsel %vm2613_vm15, %v2590_v5, %v4081_v59  ;;  %v4100_v59 = vunpack.i.l.bf16 %v5992_v39 }
 0x1b9   : > { %v2655_v24 = vsel %vm2646_vm1, %v2622_v44, %v4085_v8  ;;  %v2656_v47 = vsel %vm2646_vm1, %v2623_v15, %v4086_v28  ;;  %v4111_v8 = vunpack.i.h.bf16 %v5960_v33  ;;  %v4126_v44 = vunpack.i.h.bf16 %v5988_v4 }
 0x1ba   : > { %4298 = vrot.lane.b32.xlu1 %v5938_v41, %s7001_s30  ;;  %v2683_v61 = vpack.c.bf16 %v2656_v47, %v2655_v24  ;;  %v1253_v41 = vld [vmem:[#allocation2 + $0x121] sm:$0xff]  ;;  %v4125_v33 = vunpack.i.l.bf16 %v5988_v4  ;;  %v1195_v24 = vld [vmem:[#allocation2 + $0x152] sm:$0xff] }
 0x1bb   : > { %4303 = vrot.lane.b32.xlu2 %v5908_v17, %s6997_s22  ;;  %v6025_v52 = vpack.i.bf16 %v1254_v18, %v1253_v41  ;;  %v1196_v47 = vld [vmem:[#allocation2 + $0x15a] sm:$0xff] }
 0x1bc   : > { %v4089_v53 = vpop.permute.xlu1 %4088  ;;  %3797 = vmatmul.msk.bf16.gmra.mxu1 %vm7005_vm2, %v2683_v61  ;;  %4323 = vrot.lane.b32.xlu0 %v5998_v12, %s7015_s29  ;;  %v1260_v61 = vld [vmem:[#allocation2 + $0x171] sm:$0xff]  ;;  %v6069_v1 = vpack.i.bf16 %v1196_v47, %v1195_v24 }
 0x1bd   : > { %v4091_v40 = vunpack.i.h.bf16 %v4089_v53  ;;  %v4090_v11 = vunpack.i.l.bf16 %v4089_v53  ;;  %v6017_v43 = vpop.permute.xlu2 %4138 }
 0x1be   : > { %v4114_v9 = vpop.permute.xlu0 %4113  ;;  %v4141_v7 = vunpack.i.h.bf16 %v6017_v43  ;;  %v4140_v32 = vunpack.i.l.bf16 %v6017_v43 }
 0x1bf   : > { %v2427_v27 = vsel %vm435_vm0, %v1114_v38, %v4091_v40  ;;  %v2426_v30 = vsel %vm435_vm0, %v1113_v20, %v4090_v11  ;;  %v4116_v54 = vunpack.i.h.bf16 %v4114_v9  ;;  %v4115_v58 = vunpack.i.l.bf16 %v4114_v9 }
 0x1c0   : > { %v2459_v46 = vsel %vm2448_vm10, %v2426_v30, %v4095_v63  ;;  %v2460_v34 = vsel %vm2448_vm10, %v2427_v27, %v4096_v57  ;;  %v1351_v57 = vld [vmem:[#allocation2 + $0x141] sm:$0xff]  ;;  %v6092_v27 = vpack.i.bf16 %v6080_v50, %v6078_v56 }
 0x1c1   : > { %v2492_v45 = vsel %vm2481_vm11, %v2459_v46, %v4100_v59  ;;  %v2493_v28 = vsel %vm2481_vm11, %v2460_v34, %v4101_v16  ;;  %v6096_v16 = vpack.i.bf16 %v1351_v57, %v1350_v2  ;;  %v1118_v2 = vld [vmem:[#allocation2 + $0xb0] sm:$0xff] }
 0x1c2   : > { %4313 = vrot.lane.b32.xlu1 %v6021_v3, %s6999_s24 }
 0x1c3   : > { %4318 = vrot.lane.b32.xlu2 %v6025_v52, %s7013_s25 }
 0x1c4   : > { %v4104_v6 = vpop.permute.xlu1 %4103  ;;  %4338 = vrot.lane.b32.xlu0 %v6028_v23, %s7016_s15 }
 0x1c5   : > { %v4106_v13 = vunpack.i.h.bf16 %v4104_v6  ;;  %v4105_v14 = vunpack.i.l.bf16 %v4104_v6  ;;  %v6044_v19 = vpop.permute.xlu2 %4153  ;;  %v1318_v6 = vld [vmem:[#allocation2 + $0x138] sm:$0xff] }
 0x1c6   : > { %v4129_v35 = vpop.permute.xlu0 %4128 }
 0x1c7   : > { %v2525_v60 = vsel %vm2514_vm12, %v2492_v45, %v4105_v14  ;;  %v2526_v39 = vsel %vm2514_vm12, %v2493_v28, %v4106_v13  ;;  %v4131_v40 = vunpack.i.h.bf16 %v4129_v35  ;;  %v4130_v11 = vunpack.i.l.bf16 %v4129_v35  ;;  %v1291_v35 = vld [vmem:[#allocation2 + $0x16a] sm:$0xff]  ;;  %v1292_v45 = vld [vmem:[#allocation2 + $0x172] sm:$0xff] }
 0x1c8   : > { %v2558_v37 = vsel %vm2547_vm13, %v2525_v60, %v4110_v55  ;;  %v2559_v5 = vsel %vm2547_vm13, %v2526_v39, %v4111_v8  ;;  %v1356_v55 = vld [vmem:[#allocation2 + $0x181] sm:$0xff]  ;;  %v1357_v60 = vld [vmem:[#allocation2 + $0x189] sm:$0xff] }
 0x1c9   : > { %v2591_v0 = vsel %vm2580_vm14, %v2558_v37, %v4115_v58  ;;  %v2428_v29 = vsel %vm435_vm0, %v1115_v36, %v4130_v11  ;;  %v6111_v58 = vpack.i.bf16 %v1319_v10, %v1318_v6 }
 0x1ca   : > { %4328 = vrot.lane.b32.xlu1 %v5908_v17, %s7016_s15  ;;  %v1259_v17 = vld [vmem:[#allocation2 + $0x169] sm:$0xff] }
 0x1cb   : > { %4333 = vrot.lane.b32.xlu2 %v5962_v51, %s7003_s16  ;;  %v2592_v51 = vsel %vm2580_vm14, %v2559_v5, %v4116_v54  ;;  %v6073_v41 = vpack.i.bf16 %v1260_v61, %v1259_v17  ;;  %v4156_v54 = vunpack.i.h.bf16 %v6044_v19  ;;  %v1324_v61 = vld [vmem:[#allocation2 + $0x180] sm:$0xff] }
 0x1cc   : > { %v4119_v15 = vpop.permute.xlu1 %4118  ;;  %4353 = vrot.lane.b32.xlu0 %v6025_v52, %s6997_s22 }
 0x1cd   : > { %v4121_v26 = vunpack.i.h.bf16 %v4119_v15  ;;  %v4120_v49 = vunpack.i.l.bf16 %v4119_v15  ;;  %v6063_v31 = vpop.permute.xlu2 %4168  ;;  %v6116_v15 = vpack.i.bf16 %v1292_v45, %v1291_v35 }
 0x1ce   : > { %v4144_v62 = vpop.permute.xlu0 %4143 }
 0x1cf   : > { %v2624_v42 = vsel %vm2613_vm15, %v2591_v0, %v4120_v49  ;;  %v2625_v4 = vsel %vm2613_vm15, %v2592_v51, %v4121_v26  ;;  %v4146_v46 = vunpack.i.h.bf16 %v4144_v62  ;;  %v4145_v34 = vunpack.i.l.bf16 %v4144_v62  ;;  %v1325_v0 = vld [vmem:[#allocation2 + $0x188] sm:$0xff] }
 0x1d0   : > { %v2657_v21 = vsel %vm2646_vm1, %v2624_v42, %v4125_v33  ;;  %v2658_v53 = vsel %vm2646_vm1, %v2625_v4, %v4126_v44  ;;  %v4155_v33 = vunpack.i.l.bf16 %v6044_v19  ;;  %v6120_v26 = vpack.i.bf16 %v1357_v60, %v1356_v55  ;;  %v1382_v42 = vld [vmem:[#allocation2 + $0x13a] sm:$0xff]  ;;  %v1383_v4 = vld [vmem:[#allocation2 + $0x142] sm:$0xff] }
 0x1d1   : > { %v2684_v18 = vpack.c.bf16 %v2658_v53, %v2657_v21 }
 0x1d2   : > { %4343 = vrot.lane.b32.xlu1 %v6021_v3, %s7001_s30  ;;  %v2429_v3 = vsel %vm435_vm0, %v1116_v22, %v4131_v40  ;;  %v4171_v22 = vunpack.i.h.bf16 %v6063_v31 }
 0x1d3   : > { %3798 = vmatmul.msk.bf16.gmra.mxu1 %vm7005_vm2, %v2684_v18  ;;  %4348 = vrot.lane.b32.xlu2 %v6069_v1, %s7003_s16  ;;  %v6130_v18 = vpack.i.bf16 %v1325_v0, %v1324_v61 }
 0x1d4   : > { %v4134_v20 = vpop.permute.xlu1 %4133  ;;  %4368 = vrot.lane.b32.xlu0 %v6073_v41, %s6997_s22 }
 0x1d5   : > { %v4136_v38 = vunpack.i.h.bf16 %v4134_v20  ;;  %v4135_v9 = vunpack.i.l.bf16 %v4134_v20  ;;  %v6086_v63 = vpop.permute.xlu2 %4183  ;;  %v4170_v20 = vunpack.i.l.bf16 %v6063_v31  ;;  %v1388_v31 = vld [vmem:[#allocation2 + $0x182] sm:$0xff] }
 0x1d6   : > { %v4159_v30 = vpop.permute.xlu0 %4158 }
 0x1d7   : > { %v2461_v59 = vsel %vm2448_vm10, %v2428_v29, %v4135_v9  ;;  %v2462_v25 = vsel %vm2448_vm10, %v2429_v3, %v4136_v38  ;;  %v4161_v49 = vunpack.i.h.bf16 %v4159_v30  ;;  %v4160_v17 = vunpack.i.l.bf16 %v4159_v30  ;;  %v1117_v9 = vld [vmem:[#allocation2 + $0xa8] sm:$0xff] }
 0x1d8   : > { %v2494_v13 = vsel %vm2481_vm11, %v2461_v59, %v4140_v32  ;;  %v2495_v43 = vsel %vm2481_vm11, %v2462_v25, %v4141_v7  ;;  %v6140_v29 = vpack.i.bf16 %v1383_v4, %v1382_v42  ;;  %v2431_v59 = vsel %vm435_vm0, %v1118_v2, %v4171_v22  ;;  %v1120_v2 = vld [vmem:[#allocation2 + $0xc8] sm:$0xff] }
 0x1d9   : > { %v2527_v5 = vsel %vm2514_vm12, %v2494_v13, %v4145_v34  ;;  %v2528_v44 = vsel %vm2514_vm12, %v2495_v43, %v4146_v46  ;;  %v2430_v25 = vsel %vm435_vm0, %v1117_v9, %v4170_v20  ;;  %v1389_v46 = vld [vmem:[#allocation2 + $0x18a] sm:$0xff]  ;;  %v1119_v9 = vld [vmem:[#allocation2 + $0xc0] sm:$0xff] }
 0x1da   : > { %4358 = vrot.lane.b32.xlu1 %v6092_v27, %s7001_s30  ;;  %v4402_v35 = vpack.i.bf16 %v1389_v46, %v1388_v31 }
 0x1db   : > { %4363 = vrot.lane.b32.xlu2 %v5998_v12, %s7014_s12 }
 0x1dc   : > { %v4149_v14 = vpop.permute.xlu1 %4148  ;;  %4383 = vrot.lane.b32.xlu0 %v6096_v16, %s7013_s25 }
 0x1dd   : > { %v4151_v28 = vunpack.i.h.bf16 %v4149_v14  ;;  %v4150_v8 = vunpack.i.l.bf16 %v4149_v14  ;;  %v6108_v39 = vpop.permute.xlu2 %4198 }
 0x1de   : > { %v4174_v37 = vpop.permute.xlu0 %4173 }
 0x1df   : > { %v2560_v24 = vsel %vm2547_vm13, %v2527_v5, %v4150_v8  ;;  %v2561_v47 = vsel %vm2547_vm13, %v2528_v44, %v4151_v28  ;;  %v4176_v7 = vunpack.i.h.bf16 %v4174_v37  ;;  %v4175_v32 = vunpack.i.l.bf16 %v4174_v37 }
 0x1e0   : > { %v2593_v51 = vsel %vm2580_vm14, %v2560_v24, %v4155_v33  ;;  %v2594_v62 = vsel %vm2580_vm14, %v2561_v47, %v4156_v54  ;;  %v4186_v28 = vunpack.i.h.bf16 %v6086_v63  ;;  %v4185_v8 = vunpack.i.l.bf16 %v6086_v63 }
 0x1e1   : > { %v2626_v40 = vsel %vm2613_vm15, %v2593_v51, %v4160_v17  ;;  %v2627_v11 = vsel %vm2613_vm15, %v2594_v62, %v4161_v49  ;;  %v2463_v6 = vsel %vm2448_vm10, %v2430_v25, %v4175_v32  ;;  %v2464_v10 = vsel %vm2448_vm10, %v2431_v59, %v4176_v7 }
 0x1e2   : > { %4373 = vrot.lane.b32.xlu1 %v6111_v58, %s6999_s24  ;;  %v4201_v44 = vunpack.i.h.bf16 %v6108_v39  ;;  %v4200_v33 = vunpack.i.l.bf16 %v6108_v39 }
 0x1e3   : > { %4378 = vrot.lane.b32.xlu2 %v6116_v15, %s7014_s12 }
 0x1e4   : > { %v4164_v19 = vpop.permute.xlu1 %4163  ;;  %4398 = vrot.lane.b32.xlu0 %v6120_v26, %s7013_s25 }
 0x1e5   : > { %v4166_v21 = vunpack.i.h.bf16 %v4164_v19  ;;  %v4165_v53 = vunpack.i.l.bf16 %v4164_v19  ;;  %v6132_v36 = vpop.permute.xlu2 %4213 }
 0x1e6   : > { %v4189_v38 = vpop.permute.xlu0 %4188 }
 0x1e7   : > { %v2659_v57 = vsel %vm2646_vm1, %v2626_v40, %v4165_v53  ;;  %v2660_v3 = vsel %vm2646_vm1, %v2627_v11, %v4166_v21  ;;  %v4191_v54 = vunpack.i.h.bf16 %v4189_v38  ;;  %v6180_v40 = vpop.f32.mrf.mxu1 }
 0x1e8   : > { %v2685_v30 = vpack.c.bf16 %v2660_v3, %v2659_v57  ;;  %v4216_v3 = vunpack.i.h.bf16 %v6132_v36 }
 0x1ea   : > { %4388 = vrot.lane.b32.xlu1 %v6130_v18, %s6999_s24  ;;  %3799 = vmatmul.msk.bf16.gmra.mxu1 %vm7005_vm2, %v2685_v30  ;;  %v4215_v30 = vunpack.i.l.bf16 %v6132_v36  ;;  %v6200_v36 = vld [vmem:[#allocation2 + $0x150] sm:$0xff] }
 0x1eb   : > { %4393 = vrot.lane.b32.xlu2 %v6140_v29, %s7015_s29 }
 0x1ec   : > { %v4179_v34 = vpop.permute.xlu1 %4178  ;;  %4413 = vrot.lane.b32.xlu0 %v5998_v12, %s7003_s16  ;;  %v4190_v12 = vunpack.i.l.bf16 %v4189_v38 }
 0x1ed   : > { %v4181_v13 = vunpack.i.h.bf16 %v4179_v34  ;;  %v4180_v43 = vunpack.i.l.bf16 %v4179_v34  ;;  %v6153_v14 = vpop.permute.xlu2 %4228  ;;  %v6202_v34 = vld [vmem:[#allocation2 + $0x158] sm:$0xff] }
 0x1ee   : > { %v4204_v45 = vpop.permute.xlu0 %4203 }
 0x1ef   : > { %v2496_v55 = vsel %vm2481_vm11, %v2463_v6, %v4180_v43  ;;  %v2497_v60 = vsel %vm2481_vm11, %v2464_v10, %v4181_v13  ;;  %v4206_v49 = vunpack.i.h.bf16 %v4204_v45  ;;  %v4205_v17 = vunpack.i.l.bf16 %v4204_v45  ;;  %v6204_v6 = vpop.f32.mrf.mxu1 }
 0x1f0   : > { %v2529_v37 = vsel %vm2514_vm12, %v2496_v55, %v4185_v8  ;;  %v2530_v5 = vsel %vm2514_vm12, %v2497_v60, %v4186_v28  ;;  %v4231_v45 = vunpack.i.h.bf16 %v6153_v14  ;;  %v4230_v55 = vunpack.i.l.bf16 %v6153_v14 }
 0x1f1   : > { %v2562_v0 = vsel %vm2547_vm13, %v2529_v37, %v4190_v12  ;;  %v2563_v51 = vsel %vm2547_vm13, %v2530_v5, %v4191_v54 }
 0x1f2   : > { %4403 = vrot.lane.b32.xlu1 %v4402_v35, %s7015_s29 }
 0x1f3   : > { %4408 = vrot.lane.b32.xlu2 %v6025_v52, %s7016_s15 }
 0x1f4   : > { %v4194_v63 = vpop.permute.xlu1 %4193  ;;  %4428 = vrot.lane.b32.xlu0 %v6116_v15, %s7003_s16 }
 0x1f5   : > { %v4196_v24 = vunpack.i.h.bf16 %v4194_v63  ;;  %v4195_v47 = vunpack.i.l.bf16 %v4194_v63  ;;  %v6168_v61 = vpop.permute.xlu2 %4243 }
 0x1f6   : > { %v4219_v62 = vpop.permute.xlu0 %4218  ;;  %v4246_v14 = vunpack.i.h.bf16 %v6168_v61 }
 0x1f7   : > { %v2595_v52 = vsel %vm2580_vm14, %v2562_v0, %v4195_v47  ;;  %v2596_v19 = vsel %vm2580_vm14, %v2563_v51, %v4196_v24  ;;  %v4221_v32 = vunpack.i.h.bf16 %v4219_v62  ;;  %v4220_v59 = vunpack.i.l.bf16 %v4219_v62  ;;  %v1326_v24 = vld [vmem:[#allocation2 + $0x198] sm:$0xff]  ;;  %v1327_v47 = vld [vmem:[#allocation2 + $0x1a0] sm:$0xff] }
 0x1f8   : > { %v2628_v39 = vsel %vm2613_vm15, %v2595_v52, %v4200_v33  ;;  %v2629_v42 = vsel %vm2613_vm15, %v2596_v19, %v4201_v44  ;;  %v4245_v33 = vunpack.i.l.bf16 %v6168_v61 }
 0x1f9   : > { %v2661_v4 = vsel %vm2646_vm1, %v2628_v39, %v4205_v17  ;;  %v2662_v21 = vsel %vm2646_vm1, %v2629_v42, %v4206_v49  ;;  %v6228_v49 = vpop.f32.mrf.mxu1  ;;  %v4467_v39 = vpack.i.bf16 %v1327_v47, %v1326_v24 }
 0x1fa   : > { %4418 = vrot.lane.b32.xlu1 %v6073_v41, %s7016_s15  ;;  %v2686_v53 = vpack.c.bf16 %v2662_v21, %v2661_v4 }
 0x1fb   : > { %4423 = vrot.lane.b32.xlu2 %v6111_v58, %s7001_s30 }
 0x1fc   : > { %v4209_v11 = vpop.permute.xlu1 %4208  ;;  %3800 = vmatmul.msk.bf16.gmra.mxu1 %vm7005_vm2, %v2686_v53  ;;  %4443 = vrot.lane.b32.xlu0 %v6140_v29, %s7014_s12  ;;  %v1121_v53 = vld [vmem:[#allocation2 + $0xd8] sm:$0xff] }
 0x1fd   : > { %v4211_v22 = vunpack.i.h.bf16 %v4209_v11  ;;  %v4210_v20 = vunpack.i.l.bf16 %v4209_v11  ;;  %v6187_v38 = vpop.permute.xlu2 %4258 }
 0x1fe   : > { %v4234_v57 = vpop.permute.xlu0 %4233 }
 0x1ff   : > { %v2433_v7 = vsel %vm435_vm0, %v1120_v2, %v4211_v22  ;;  %v2432_v58 = vsel %vm435_vm0, %v1119_v9, %v4210_v20  ;;  %v4236_v12 = vunpack.i.h.bf16 %v4234_v57  ;;  %v4235_v37 = vunpack.i.l.bf16 %v4234_v57  ;;  %v1122_v20 = vld [vmem:[#allocation2 + $0xe0] sm:$0xff] }
 0x200   : > { %v2465_v25 = vsel %vm2448_vm10, %v2432_v58, %v4215_v30  ;;  %v2466_v31 = vsel %vm2448_vm10, %v2433_v7, %v4216_v3  ;;  %v1358_v9 = vld [vmem:[#allocation2 + $0x199] sm:$0xff]  ;;  %v1359_v2 = vld [vmem:[#allocation2 + $0x1a1] sm:$0xff] }
 0x201   : > { %v2498_v28 = vsel %vm2481_vm11, %v2465_v25, %v4220_v59  ;;  %v2499_v8 = vsel %vm2481_vm11, %v2466_v31, %v4221_v32  ;;  %v1390_v3 = vld [vmem:[#allocation2 + $0x19a] sm:$0xff]  ;;  %v1391_v30 = vld [vmem:[#allocation2 + $0x1a2] sm:$0xff]  ;;  %v4477_v31 = vpack.i.bf16 %v1359_v2, %v1358_v9 }
 0x202   : > { %4433 = vrot.lane.b32.xlu1 %v6096_v16, %s6997_s22 }
 0x203   : > { %4438 = vrot.lane.b32.xlu2 %v6130_v18, %s7001_s30 }
 0x204   : > { %v4224_v46 = vpop.permute.xlu1 %4223  ;;  %4458 = vrot.lane.b32.xlu0 %v4402_v35, %s7014_s12  ;;  %v6214_v35 = vpack.i.bf16 %v6202_v34, %v6200_v36 }
 0x205   : > { %v4226_v10 = vunpack.i.h.bf16 %v4224_v46  ;;  %v4225_v13 = vunpack.i.l.bf16 %v4224_v46  ;;  %v6206_v43 = vpop.permute.xlu2 %4273 }
 0x206   : > { %v4249_v18 = vpop.permute.xlu0 %4248  ;;  %v4276_v24 = vunpack.i.h.bf16 %v6206_v43  ;;  %v4275_v47 = vunpack.i.l.bf16 %v6206_v43 }
 0x207   : > { %v2531_v60 = vsel %vm2514_vm12, %v2498_v28, %v4225_v13  ;;  %v2532_v54 = vsel %vm2514_vm12, %v2499_v8, %v4226_v10  ;;  %v4251_v11 = vunpack.i.h.bf16 %v4249_v18  ;;  %v4250_v22 = vunpack.i.l.bf16 %v4249_v18  ;;  %v6248_v10 = vpop.f32.mrf.mxu1 }
 0x208   : > { %v2564_v5 = vsel %vm2547_vm13, %v2531_v60, %v4230_v55  ;;  %v2565_v44 = vsel %vm2547_vm13, %v2532_v54, %v4231_v45  ;;  %v4482_v13 = vpack.i.bf16 %v1391_v30, %v1390_v3  ;;  %v4261_v45 = vunpack.i.h.bf16 %v6187_v38  ;;  %v4704_v3 = vld [vmem:[%s4938_s14 + $0xe8] sm:$0xff] }
 0x209   : > { %v2597_v51 = vsel %vm2580_vm14, %v2564_v5, %v4235_v37  ;;  %v2598_v62 = vsel %vm2580_vm14, %v2565_v44, %v4236_v12  ;;  %v2435_v59 = vsel %vm435_vm0, %v1122_v20, %v4251_v11  ;;  %v2434_v25 = vsel %vm435_vm0, %v1121_v53, %v4250_v22  ;;  %v1123_v11 = vld [vmem:[#allocation2 + $0xf0] sm:$0xff]  ;;  %v1124_v22 = vld [vmem:[#allocation2 + $0xf8] sm:$0xff] }
 0x20a   : > { %4448 = vrot.lane.b32.xlu1 %v6120_v26, %s6997_s22  ;;  %v4260_v18 = vunpack.i.l.bf16 %v6187_v38 }
 0x20b   : > { %4453 = vrot.lane.b32.xlu2 %v6214_v35, %s6999_s24 }
 0x20c   : > { %v4239_v63 = vpop.permute.xlu1 %4238  ;;  %4473 = vrot.lane.b32.xlu0 %v6069_v1, %s7015_s29 }
 0x20d   : > { %v4241_v26 = vunpack.i.h.bf16 %v4239_v63  ;;  %v4240_v17 = vunpack.i.l.bf16 %v4239_v63  ;;  %v6230_v0 = vpop.permute.xlu2 %4288 }
 0x20e   : > { %v4264_v52 = vpop.permute.xlu0 %4263  ;;  %v4291_v43 = vunpack.i.h.bf16 %v6230_v0 }
 0x20f   : > { %v2630_v19 = vsel %vm2613_vm15, %v2597_v51, %v4240_v17  ;;  %v2631_v61 = vsel %vm2613_vm15, %v2598_v62, %v4241_v26  ;;  %v4266_v8 = vunpack.i.h.bf16 %v4264_v52  ;;  %v4265_v55 = vunpack.i.l.bf16 %v4264_v52 }
 0x210   : > { %v2663_v42 = vsel %vm2646_vm1, %v2630_v19, %v4245_v33  ;;  %v2664_v4 = vsel %vm2646_vm1, %v2631_v61, %v4246_v14  ;;  %v6262_v14 = vpop.f32.mrf.mxu1 }
 0x211   : > { %v2687_v21 = vpack.c.bf16 %v2664_v4, %v2663_v42 }
 0x212   : > { %4463 = vrot.lane.b32.xlu1 %v6028_v23, %s7013_s25 }
 0x213   : > { %3801 = vmatmul.msk.bf16.gmra.mxu1 %vm7005_vm2, %v2687_v21  ;;  %4468 = vrot.lane.b32.xlu2 %v4467_v39, %s6999_s24 }
 0x214   : > { %v4254_v57 = vpop.permute.xlu1 %4253  ;;  %4488 = vrot.lane.b32.xlu0 %v6096_v16, %s7016_s15 }
 0x215   : > { %v4256_v7 = vunpack.i.h.bf16 %v4254_v57  ;;  %v4255_v58 = vunpack.i.l.bf16 %v4254_v57  ;;  %v6244_v32 = vpop.permute.xlu2 %4303  ;;  %v4703_v57 = vld [vmem:[%s4938_s14 + $0xe0] sm:$0xff] }
 0x216   : > { %v4279_v46 = vpop.permute.xlu0 %4278  ;;  %v432_v30 = vpack.c.bf16 %v4704_v3, %v4703_v57 }
 0x217   : > { %v2467_v16 = vsel %vm2448_vm10, %v2434_v25, %v4255_v58  ;;  %v2468_v28 = vsel %vm2448_vm10, %v2435_v59, %v4256_v7  ;;  %v4280_v51 = vunpack.i.l.bf16 %v4279_v46  ;;  %v2437_v59 = vsel %vm435_vm0, %v1124_v22, %v4291_v43 }
 0x218   : > { %v2500_v60 = vsel %vm2481_vm11, %v2467_v16, %v4260_v18  ;;  %v2501_v54 = vsel %vm2481_vm11, %v2468_v28, %v4261_v45  ;;  %v4306_v16 = vunpack.i.h.bf16 %v6244_v32  ;;  %v4305_v28 = vunpack.i.l.bf16 %v6244_v32 }
 0x219   : > { %v2533_v33 = vsel %vm2514_vm12, %v2500_v60, %v4265_v55  ;;  %v2534_v63 = vsel %vm2514_vm12, %v2501_v54, %v4266_v8  ;;  %v4706_v60 = vld [vmem:[%s7012_s1] sm:$0xff] }
 0x21a   : > { %4478 = vrot.lane.b32.xlu1 %v4477_v31, %s7013_s25 }
 0x21b   : > { %4483 = vrot.lane.b32.xlu2 %v4482_v13, %s7015_s29 }
 0x21c   : > { %v4269_v12 = vpop.permute.xlu1 %4268  ;;  %4503 = vrot.lane.b32.xlu0 %v6028_v23, %s6997_s22  ;;  %v4281_v23 = vunpack.i.h.bf16 %v4279_v46  ;;  %s7019_s22 = smov 12  }
 0x21d   : > { %v4271_v37 = vunpack.i.h.bf16 %v4269_v12  ;;  %v4270_v38 = vunpack.i.l.bf16 %v4269_v12  ;;  %v6260_v5 = vpop.permute.xlu2 %4318 }
 0x21e   : > { %v4294_v44 = vpop.permute.xlu0 %4293 }
 0x21f   : > { %v2566_v26 = vsel %vm2547_vm13, %v2533_v33, %v4270_v38  ;;  %v2567_v17 = vsel %vm2547_vm13, %v2534_v63, %v4271_v37  ;;  %v4296_v7 = vunpack.i.h.bf16 %v4294_v44  ;;  %v4295_v58 = vunpack.i.l.bf16 %v4294_v44 }
 0x220   : > { %v2599_v62 = vsel %vm2580_vm14, %v2566_v26, %v4275_v47  ;;  %v2600_v52 = vsel %vm2580_vm14, %v2567_v17, %v4276_v24  ;;  %v4321_v44 = vunpack.i.h.bf16 %v6260_v5  ;;  %v4320_v33 = vunpack.i.l.bf16 %v6260_v5  ;;  %v4707_v5 = vld [vmem:[%s4938_s14 + $0xf0] sm:$0xff] }
 0x221   : > { %v2632_v42 = vsel %vm2613_vm15, %v2599_v62, %v4280_v51  ;;  %v2633_v4 = vsel %vm2613_vm15, %v2600_v52, %v4281_v23  ;;  %v2470_v13 = vsel %vm2448_vm10, %v2437_v59, %v4296_v7  ;;  %v1126_v7 = vld [vmem:[#allocation2 + $0x110] sm:$0xff] }
 0x222   : > { %4493 = vrot.lane.b32.xlu1 %v6140_v29, %s7003_s16  ;;  %v434_v29 = vld [vmem:[%s6982_s5] sm:$0x3] }
 0x223   : > { %4498 = vrot.lane.b32.xlu2 %v6214_v35, %s7001_s30  ;;  %v4290_v35 = vunpack.i.l.bf16 %v6230_v0  ;;  %v6293_v0 = vpop.f32.mrf.mxu1  ;;  %s377_s30 = sand.u32 1, %s4791_s18  }
 0x224   : > { %v4284_v19 = vpop.permute.xlu1 %4283  ;;  %4518 = vrot.lane.b32.xlu0 %v6073_v41, %s7013_s25  ;;  %v486_v41 = vsel %vm484_vm5, %v434_v29, 0 }
 0x225   : > { %v4286_v61 = vunpack.i.h.bf16 %v4284_v19  ;;  %v4285_v39 = vunpack.i.l.bf16 %v4284_v19  ;;  %v6285_v53 = vpop.permute.xlu2 %4333  ;;  %3832 = vmatpush.bf16.msra.mxu3 %v486_v41  ;;  %495 = vmatpush.bf16.msra.mxu0 %v486_v41  ;;  %v2436_v25 = vsel %vm435_vm0, %v1123_v11, %v4290_v35 }
 0x226   : > { %v4309_v21 = vpop.permute.xlu0 %4308  ;;  %v2469_v46 = vsel %vm2448_vm10, %v2436_v25, %v4295_v58  ;;  %v4336_v58 = vunpack.i.h.bf16 %v6285_v53  ;;  %v4335_v59 = vunpack.i.l.bf16 %v6285_v53 }
 0x227   : > { %v2665_v20 = vsel %vm2646_vm1, %v2632_v42, %v4285_v39  ;;  %v2666_v9 = vsel %vm2646_vm1, %v2633_v4, %v4286_v61  ;;  %v4311_v12 = vunpack.i.h.bf16 %v4309_v21  ;;  %v4310_v37 = vunpack.i.l.bf16 %v4309_v21  ;;  %v4708_v61 = vld [vmem:[%s4938_s14 + $0xf8] sm:$0xff] }
 0x228   : > { %v2688_v2 = vpack.c.bf16 %v2666_v9, %v2665_v20  ;;  %3783 = vmatmul.msk.bf16.vlgmr.msra.gmra.mxu3 %vm435_vm0, %v432_v30  ;;  %v433_v39 = vpack.c.bf16 %v4708_v61, %v4707_v5  ;;  %v1125_v30 = vld [vmem:[#allocation2 + $0x108] sm:$0xff] }
 0x229   : > { %3833 = vmatpush.bf16.msrb.mxu3 %v5641_v48  ;;  %v4705_v48 = vld [vmem:[%s7012_s1 + $0x8] sm:$0xff] }
 0x22a   : > { %4508 = vrot.lane.b32.xlu1 %v6069_v1, %s7014_s12  ;;  %3802 = vmatmul.msk.bf16.gmra.mxu1 %vm7005_vm2, %v2688_v2 }
 0x22b   : > { %4513 = vrot.lane.b32.xlu2 %v6092_v27, %s6999_s24  ;;  %v6317_v54 = vpop.f32.mrf.mxu1  ;;  %s3766_s24 = sshll.u32 %s377_s30, 6 }
 0x22c   : > { %v4299_v31 = vpop.permute.xlu1 %4298  ;;  %s6924_s1 = scalar_lea.vmem [#allocation4], %s3766_s24 }
 0x22d   : > { %3834 = vmatpush.bf16.msrb.mxu3 %v4705_v48  ;;  %v4301_v45 = vunpack.i.h.bf16 %v4299_v31  ;;  %v4300_v18 = vunpack.i.l.bf16 %v4299_v31  ;;  %v6312_v55 = vpop.permute.xlu2 %4348 }
 0x22e   : > { %v4324_v1 = vpop.permute.xlu0 %4323 }
 0x22f   : > { %v2502_v27 = vsel %vm2481_vm11, %v2469_v46, %v4300_v18  ;;  %v2503_v8 = vsel %vm2481_vm11, %v2470_v13, %v4301_v45  ;;  %v4326_v26 = vunpack.i.h.bf16 %v4324_v1  ;;  %v4325_v17 = vunpack.i.l.bf16 %v4324_v1 }
 0x230   : > { %v2535_v32 = vsel %vm2514_vm12, %v2502_v27, %v4305_v28  ;;  %v2536_v38 = vsel %vm2514_vm12, %v2503_v8, %v4306_v16 }
 0x231   : > { %3835 = vmatpush.bf16.msrb.mxu3 %v4706_v60  ;;  %v2568_v23 = vsel %vm2547_vm13, %v2535_v32, %v4310_v37  ;;  %v2569_v51 = vsel %vm2547_vm13, %v2536_v38, %v4311_v12 }
 0x232   : > { %4523 = vrot.lane.b32.xlu1 %v6116_v15, %s7015_s29 }
 0x233   : > { %v6337_v21 = vpop.f32.mrf.mxu1 }
 0x234   : > { %v4314_v63 = vpop.permute.xlu1 %4313 }
 0x235   : > { %v4316_v24 = vunpack.i.h.bf16 %v4314_v63  ;;  %v4315_v47 = vunpack.i.l.bf16 %v4314_v63  ;;  %v4364_v35 = vpop.permute.xlu2 %4363 }
 0x236   : > { %v6327_v15 = vpop.permute.xlu0 %4338  ;;  %v4366_v12 = vunpack.i.h.bf16 %v4364_v35  ;;  %v4365_v37 = vunpack.i.l.bf16 %v4364_v35 }
 0x237   : > { %v2601_v62 = vsel %vm2580_vm14, %v2568_v23, %v4315_v47  ;;  %v2602_v52 = vsel %vm2580_vm14, %v2569_v51, %v4316_v24  ;;  %v4341_v32 = vunpack.i.h.bf16 %v6327_v15  ;;  %v4340_v38 = vunpack.i.l.bf16 %v6327_v15 }
 0x238   : > { %v2634_v19 = vsel %vm2613_vm15, %v2601_v62, %v4320_v33  ;;  %v2635_v43 = vsel %vm2613_vm15, %v2602_v52, %v4321_v44  ;;  %3784 = vmatmul.msk.bf16.gmra.mxu3 %vm435_vm0, %v433_v39  ;;  %v4351_v52 = vunpack.i.h.bf16 %v6312_v55 }
 0x239   : > { %v2667_v29 = vsel %vm2646_vm1, %v2634_v19, %v4325_v17  ;;  %v2668_v42 = vsel %vm2646_vm1, %v2635_v43, %v4326_v26  ;;  %v4350_v19 = vunpack.i.l.bf16 %v6312_v55  ;;  %v2445_v61 = vsel %vm435_vm0, %v6202_v34, %v4341_v32 }
 0x23a   : > { %v2689_v4 = vpack.c.bf16 %v2668_v42, %v2667_v29  ;;  %v2444_v39 = vsel %vm435_vm0, %v6200_v36, %v4340_v38  ;;  %v2478_v34 = vsel %vm2448_vm10, %v2445_v61, %v4351_v52  ;;  %v1127_v61 = vld [vmem:[#allocation2 + $0x120] sm:$0xff] }
 0x23b   : > { %v6341_v22 = vpop.f32.mrf.mxu1  ;;  %v2477_v36 = vsel %vm2448_vm10, %v2444_v39, %v4350_v19  ;;  %v1128_v39 = vld [vmem:[#allocation2 + $0x128] sm:$0xff] }
 0x23c   : > { %v4329_v41 = vpop.permute.xlu1 %4328  ;;  %3803 = vmatmul.msk.bf16.gmra.mxu1 %vm7005_vm2, %v2689_v4 }
 0x23d   : > { %v6343_v9 = vpop.permute.xlu2 %4378  ;;  %v4331_v57 = vunpack.i.h.bf16 %v4329_v41  ;;  %v4330_v3 = vunpack.i.l.bf16 %v4329_v41 }
 0x23e   : > { %v4354_v11 = vpop.permute.xlu0 %4353 }
 0x23f   : > { %v2439_v25 = vsel %vm435_vm0, %v1126_v7, %v4331_v57  ;;  %v2438_v31 = vsel %vm435_vm0, %v1125_v30, %v4330_v3  ;;  %v4356_v27 = vunpack.i.h.bf16 %v4354_v11  ;;  %v4355_v8 = vunpack.i.l.bf16 %v4354_v11 }
 0x240   : > { %v2471_v16 = vsel %vm2448_vm10, %v2438_v31, %v4335_v59  ;;  %v2472_v28 = vsel %vm2448_vm10, %v2439_v25, %v4336_v58  ;;  %v4381_v31 = vunpack.i.h.bf16 %v6343_v9 }
 0x243   : > { %v6351_v45 = vpop.f32.mrf.mxu1 }
 0x244   : > { %v4344_v20 = vpop.permute.xlu1 %4343 }
 0x245   : > { %v4346_v48 = vunpack.i.h.bf16 %v4344_v20  ;;  %v4345_v46 = vunpack.i.l.bf16 %v4344_v20  ;;  %v4394_v1 = vpop.permute.xlu2 %4393 }
 0x246   : > { %v6345_v2 = vpop.permute.xlu0 %4368  ;;  %v4396_v51 = vunpack.i.h.bf16 %v4394_v1  ;;  %v4395_v62 = vunpack.i.l.bf16 %v4394_v1 }
 0x247   : > { %v2504_v60 = vsel %vm2481_vm11, %v2471_v16, %v4345_v46  ;;  %v2505_v53 = vsel %vm2481_vm11, %v2472_v28, %v4346_v48  ;;  %v4371_v30 = vunpack.i.h.bf16 %v6345_v2  ;;  %v4370_v7 = vunpack.i.l.bf16 %v6345_v2 }
 0x248   : > { %v2537_v44 = vsel %vm2514_vm12, %v2504_v60, %v4355_v8  ;;  %v2538_v33 = vsel %vm2514_vm12, %v2505_v53, %v4356_v27  ;;  %v4380_v48 = vunpack.i.l.bf16 %v6343_v9 }
 0x249   : > { %v2570_v43 = vsel %vm2547_vm13, %v2537_v44, %v4365_v37  ;;  %v2571_v15 = vsel %vm2547_vm13, %v2538_v33, %v4366_v12 }
 0x24c   : > { %v4359_v13 = vpop.permute.xlu1 %4358 }
 0x24d   : > { %v4361_v4 = vunpack.i.h.bf16 %v4359_v13  ;;  %v4360_v35 = vunpack.i.l.bf16 %v4359_v13  ;;  %v4409_v11 = vpop.permute.xlu2 %4408 }
 0x24e   : > { %v4384_v18 = vpop.permute.xlu0 %4383 }
 0x24f   : > { %v4386_v24 = vunpack.i.h.bf16 %v4384_v18  ;;  %v4385_v47 = vunpack.i.l.bf16 %v4384_v18  ;;  %v2510_v58 = vsel %vm2481_vm11, %v2477_v36, %v4360_v35  ;;  %v2511_v59 = vsel %vm2481_vm11, %v2478_v34, %v4361_v4 }
 0x250   : > { %v6361_v26 = vpop.f32.mrf.mxu1  ;;  %v2543_v13 = vsel %vm2514_vm12, %v2510_v58, %v4370_v7  ;;  %v2544_v18 = vsel %vm2514_vm12, %v2511_v59, %v4371_v30 }
 0x251   : > { %v2576_v28 = vsel %vm2547_vm13, %v2543_v13, %v4380_v48  ;;  %v2577_v27 = vsel %vm2547_vm13, %v2544_v18, %v4381_v31 }
 0x254   : > { %v4374_v63 = vpop.permute.xlu1 %4373 }
 0x255   : > { %v4376_v17 = vunpack.i.h.bf16 %v4374_v63  ;;  %v4375_v23 = vunpack.i.l.bf16 %v4374_v63  ;;  %v4424_v53 = vpop.permute.xlu2 %4423 }
 0x256   : > { %v4399_v5 = vpop.permute.xlu0 %4398 }
 0x257   : > { %v2603_v29 = vsel %vm2580_vm14, %v2570_v43, %v4375_v23  ;;  %v2604_v42 = vsel %vm2580_vm14, %v2571_v15, %v4376_v17  ;;  %v4401_v8 = vunpack.i.h.bf16 %v4399_v5  ;;  %v4400_v60 = vunpack.i.l.bf16 %v4399_v5 }
 0x258   : > { %v2636_v41 = vsel %vm2613_vm15, %v2603_v29, %v4385_v47  ;;  %v2637_v55 = vsel %vm2613_vm15, %v2604_v42, %v4386_v24  ;;  %v6388_v1 = vpop.f32.mrf.mxu1  ;;  %v4411_v43 = vunpack.i.h.bf16 %v4409_v11  ;;  %v4410_v15 = vunpack.i.l.bf16 %v4409_v11 }
 0x259   : > { %v2669_v20 = vsel %vm2646_vm1, %v2636_v41, %v4395_v62  ;;  %v2670_v57 = vsel %vm2646_vm1, %v2637_v55, %v4396_v51 }
 0x25a   : > { %v2690_v3 = vpack.c.bf16 %v2670_v57, %v2669_v20  ;;  %v2441_v41 = vsel %vm435_vm0, %v1128_v39, %v4411_v43  ;;  %v2440_v55 = vsel %vm435_vm0, %v1127_v61, %v4410_v15  ;;  %v4426_v57 = vunpack.i.h.bf16 %v4424_v53 }
 0x25c   : > { %v4389_v25 = vpop.permute.xlu1 %4388  ;;  %3804 = vmatmul.msk.bf16.gmra.mxu1 %vm7005_vm2, %v2690_v3  ;;  %v4425_v3 = vunpack.i.l.bf16 %v4424_v53 }
 0x25d   : > { %v4391_v16 = vunpack.i.h.bf16 %v4389_v25  ;;  %v4390_v2 = vunpack.i.l.bf16 %v4389_v25  ;;  %v4439_v62 = vpop.permute.xlu2 %4438 }
 0x25e   : > { %v4414_v46 = vpop.permute.xlu0 %4413  ;;  %v4441_v53 = vunpack.i.h.bf16 %v4439_v62 }
 0x25f   : > { %v2609_v12 = vsel %vm2580_vm14, %v2576_v28, %v4390_v2  ;;  %v2610_v9 = vsel %vm2580_vm14, %v2577_v27, %v4391_v16  ;;  %v4416_v42 = vunpack.i.h.bf16 %v4414_v46  ;;  %v4415_v4 = vunpack.i.l.bf16 %v4414_v46  ;;  %v6412_v2 = vld [vmem:[%s7017_s2] ss:$0 sm:$0xff]  ;;  %s7018_s2 = smov 8  }
 0x260   : > { %v2642_v44 = vsel %vm2613_vm15, %v2609_v12, %v4400_v60  ;;  %v2643_v33 = vsel %vm2613_vm15, %v2610_v9, %v4401_v8  ;;  %v4440_v12 = vunpack.i.l.bf16 %v4439_v62 }
 0x261   : > { %v2473_v34 = vsel %vm2448_vm10, %v2440_v55, %v4415_v4  ;;  %v2474_v36 = vsel %vm2448_vm10, %v2441_v41, %v4416_v42 }
 0x262   : > { %v2506_v25 = vsel %vm2481_vm11, %v2473_v34, %v4425_v3  ;;  %v2507_v31 = vsel %vm2481_vm11, %v2474_v36, %v4426_v57 }
 0x264   : > { %v4404_v37 = vpop.permute.xlu1 %4403 }
 0x265   : > { %v4406_v32 = vunpack.i.h.bf16 %v4404_v37  ;;  %v4405_v38 = vunpack.i.l.bf16 %v4404_v37  ;;  %v4454_v29 = vpop.permute.xlu2 %4453 }
 0x266   : > { %v4429_v63 = vpop.permute.xlu0 %4428 }
 0x267   : > { %v2675_v24 = vsel %vm2646_vm1, %v2642_v44, %v4405_v38  ;;  %v2676_v47 = vsel %vm2646_vm1, %v2643_v33, %v4406_v32  ;;  %v2810_v17 = vpop.f32.mrf.mxu1  ;;  %v4431_v48 = vunpack.i.h.bf16 %v4429_v63  ;;  %v4430_v13 = vunpack.i.l.bf16 %v4429_v63 }
 0x268   : > { %v2693_v23 = vpack.c.bf16 %v2676_v47, %v2675_v24  ;;  %v4456_v32 = vunpack.i.h.bf16 %v4454_v29  ;;  %v4455_v38 = vunpack.i.l.bf16 %v4454_v29  ;;  %v2811_v43 = vadd.f32 %v6412_v2, %v2810_v17 }
 0x26a   : > { %3807 = vmatmul.msk.bf16.vlgmr.msrb.gmra.mxu3 %vm7005_vm2, %v2693_v23 }
 0x26c   : > { %v4419_v51 = vpop.permute.xlu1 %4418 }
 0x26d   : > { %v4421_v11 = vunpack.i.h.bf16 %v4419_v51  ;;  %v4420_v30 = vunpack.i.l.bf16 %v4419_v51  ;;  %v4469_v60 = vpop.permute.xlu2 %4468 }
 0x26e   : > { %v4444_v52 = vpop.permute.xlu0 %4443 }
 0x26f   : > { %v2812_v19 = vpop.f32.mrf.mxu1  ;;  %v2447_v46 = vsel %vm435_vm0, %v6080_v50, %v4421_v11  ;;  %v4446_v18 = vunpack.i.h.bf16 %v4444_v52  ;;  %v4445_v16 = vunpack.i.l.bf16 %v4444_v52  ;;  %v2446_v28 = vsel %vm435_vm0, %v6078_v56, %v4420_v30 }
 0x270   : > { %v2480_v37 = vsel %vm2448_vm10, %v2447_v46, %v4431_v48  ;;  %v2479_v33 = vsel %vm2448_vm10, %v2446_v28, %v4430_v13  ;;  %v2813_v15 = vadd.f32 %v6412_v2, %v2812_v19  ;;  %v2808_v30 = vadd.f32 %v6412_v2, %v6388_v1 }
 0x271   : > { %v2513_v39 = vsel %vm2481_vm11, %v2480_v37, %v4441_v53  ;;  %v2512_v29 = vsel %vm2481_vm11, %v2479_v33, %v4440_v12  ;;  %v2803_v1 = vadd.f32 %v6412_v2, %v6351_v45  ;;  %v2798_v45 = vadd.f32 %v6412_v2, %v6337_v21 }
 0x274   : > { %v4434_v5 = vpop.permute.xlu1 %4433 }
 0x275   : > { %v4436_v7 = vunpack.i.h.bf16 %v4434_v5  ;;  %v4435_v58 = vunpack.i.l.bf16 %v4434_v5  ;;  %v4484_v36 = vpop.permute.xlu2 %4483 }
 0x276   : > { %v6399_v35 = vpop.permute.xlu0 %4458  ;;  %v4486_v46 = vunpack.i.h.bf16 %v4484_v36  ;;  %v4485_v13 = vunpack.i.l.bf16 %v4484_v36 }
 0x277   : > { %v2539_v27 = vsel %vm2514_vm12, %v2506_v25, %v4435_v58  ;;  %v2540_v8 = vsel %vm2514_vm12, %v2507_v31, %v4436_v7  ;;  %v4461_v41 = vunpack.i.h.bf16 %v6399_v35  ;;  %v4460_v55 = vunpack.i.l.bf16 %v6399_v35 }
 0x278   : > { %v2572_v63 = vsel %vm2547_vm13, %v2539_v27, %v4445_v16  ;;  %v2573_v56 = vsel %vm2547_vm13, %v2540_v8, %v4446_v18  ;;  %v4471_v7 = vunpack.i.h.bf16 %v4469_v60  ;;  %v4470_v35 = vunpack.i.l.bf16 %v4469_v60 }
 0x279   : > { %v2815_v20 = vpop.f32.mrf.mxu1  ;;  %v2605_v42 = vsel %vm2580_vm14, %v2572_v63, %v4455_v38  ;;  %v2606_v4 = vsel %vm2580_vm14, %v2573_v56, %v4456_v32  ;;  %v2806_v31 = vadd.f32 %v6412_v2, %v6361_v26  ;;  %v2801_v26 = vadd.f32 %v6412_v2, %v6341_v22  ;;  %v1129_v38 = vld [vmem:[#allocation2 + $0x138] sm:$0xff] }
 0x27a   : > { %v2816_v24 = vadd.f32 %v6412_v2, %v2815_v20  ;;  %v2796_v22 = vadd.f32 %v6412_v2, %v6317_v54 }
 0x27c   : > { %v4449_v59 = vpop.permute.xlu1 %4448 }
 0x27d   : > { %v4451_v47 = vunpack.i.h.bf16 %v4449_v59  ;;  %v4450_v23 = vunpack.i.l.bf16 %v4449_v59  ;;  %v4499_v32 = vpop.permute.xlu2 %4498 }
 0x27e   : > { %v4474_v50 = vpop.permute.xlu0 %4473 }
 0x27f   : > { %v4476_v62 = vunpack.i.h.bf16 %v4474_v50  ;;  %v4475_v52 = vunpack.i.l.bf16 %v4474_v50  ;;  %v2545_v19 = vsel %vm2514_vm12, %v2512_v29, %v4450_v23  ;;  %v2546_v57 = vsel %vm2514_vm12, %v2513_v39, %v4451_v47 }
 0x280   : > { %v2578_v58 = vsel %vm2547_vm13, %v2545_v19, %v4460_v55  ;;  %v2579_v59 = vsel %vm2547_vm13, %v2546_v57, %v4461_v41  ;;  %v2793_v47 = vadd.f32 %v6412_v2, %v6293_v0  ;;  %v2783_v55 = vadd.f32 %v6412_v2, %v6204_v6 }
 0x281   : > { %v2817_v9 = vpop.f32.mrf.mxu1  ;;  %v2611_v28 = vsel %vm2580_vm14, %v2578_v58, %v4470_v35  ;;  %v2612_v27 = vsel %vm2580_vm14, %v2579_v59, %v4471_v7  ;;  %v2781_v57 = vadd.f32 %v6412_v2, %v6180_v40 }
 0x282   : > { %v2818_v44 = vadd.f32 %v6412_v2, %v2817_v9 }
 0x284   : > { %v4464_v51 = vpop.permute.xlu1 %4463  ;;  %2876 = vmatpush.msra.mxu2 %v2818_v44  ;;  %v1130_v44 = vld [vmem:[#allocation2 + $0x140] sm:$0xff] }
 0x285   : > { %v4466_v5 = vunpack.i.h.bf16 %v4464_v51  ;;  %v4465_v61 = vunpack.i.l.bf16 %v4464_v51  ;;  %v2791_v51 = vadd.f32 %v6412_v2, %v6262_v14 }
 0x286   : > { %2877 = vmatpush.msra.mxu2 %v2816_v24  ;;  %v4489_v25 = vpop.permute.xlu0 %4488 }
 0x287   : > { %v2638_v20 = vsel %vm2613_vm15, %v2605_v42, %v4465_v61  ;;  %v2639_v17 = vsel %vm2613_vm15, %v2606_v4, %v4466_v5  ;;  %v4491_v50 = vunpack.i.h.bf16 %v4489_v25  ;;  %v4490_v37 = vunpack.i.l.bf16 %v4489_v25  ;;  %v4514_v42 = vpop.permute.xlu2 %4513 }
 0x288   : > { %v2671_v3 = vsel %vm2646_vm1, %v2638_v20, %v4475_v52  ;;  %v2672_v34 = vsel %vm2646_vm1, %v2639_v17, %v4476_v62  ;;  %2878 = vmatpush.msra.mxu2 %v2813_v15  ;;  %v4501_v62 = vunpack.i.h.bf16 %v4499_v32  ;;  %v4500_v52 = vunpack.i.l.bf16 %v4499_v32  ;;  %v4709_v32 = vld [vmem:[%s4938_s14] sm:$0xff] }
 0x289   : > { %v2691_v11 = vpack.c.bf16 %v2672_v34, %v2671_v3  ;;  %v2443_v21 = vsel %vm435_vm0, %v1130_v44, %v4491_v50  ;;  %v2442_v23 = vsel %vm435_vm0, %v1129_v38, %v4490_v37  ;;  %v2788_v15 = vadd.f32 %v6412_v2, %v6248_v10  ;;  %v4710_v38 = vld [vmem:[%s4938_s14 + $0x8] sm:$0xff] }
 0x28a   : > { %2879 = vmatpush.msra.mxu2 %v2811_v43  ;;  %v2786_v61 = vadd.f32 %v6412_v2, %v6228_v49  ;;  %v4516_v17 = vunpack.i.h.bf16 %v4514_v42  ;;  %v4515_v19 = vunpack.i.l.bf16 %v4514_v42  ;;  %v418_v44 = vpack.c.bf16 %v4710_v38, %v4709_v32  ;;  %v6524_v42 = vld [vmem:[%s6987_s10 + $0x10] sm:$0xff]  ;;  %v2873_v32 = vld [vmem:[%s6987_s10 + $0x68] sm:$0xff]  ;;  %v2875_v38 = vld [vmem:[%s6987_s10 + $0x78] sm:$0xff] }
 0x28b   : > { %3805 = vmatmul.msk.bf16.gmra.mxu1 %vm7005_vm2, %v2691_v11 }
 0x28c   : > { %v4479_v48 = vpop.permute.xlu1 %4478  ;;  %2880 = vmatpush.msra.mxu2 %v2808_v30  ;;  %3769 = vmatmul.msk.bf16.vlgmr.msra.gmra.mxu0 %vm435_vm0, %v418_v44 }
 0x28d   : > { %v4481_v18 = vunpack.i.h.bf16 %v4479_v48  ;;  %v4480_v16 = vunpack.i.l.bf16 %v4479_v48 }
 0x28e   : > { %2881 = vmatpush.msra.mxu2 %v2806_v31  ;;  %v4504_v24 = vpop.permute.xlu0 %4503 }
 0x28f   : > { %v2644_v8 = vsel %vm2613_vm15, %v2611_v28, %v4480_v16  ;;  %v2645_v60 = vsel %vm2613_vm15, %v2612_v27, %v4481_v18  ;;  %v4506_v0 = vunpack.i.h.bf16 %v4504_v24  ;;  %v4505_v5 = vunpack.i.l.bf16 %v4504_v24  ;;  %v3522_v18 = vld [vmem:[%s6980_s3 + $0x10] sm:$0x3]  ;;  %v4712_v24 = vld [vmem:[%s4938_s14 + $0x18] sm:$0xff] }
 0x290   : > { %2882 = vmatpush.msra.mxu2 %v2803_v1  ;;  %v2677_v53 = vsel %vm2646_vm1, %v2644_v8, %v4485_v13  ;;  %v2678_v12 = vsel %vm2646_vm1, %v2645_v60, %v4486_v46  ;;  %v3536_v16 = vunpack.c.l.b16 %v3522_v18  ;;  %v3830_v8 = vld [vmem:[%s6980_s3 + $0x8] sm:$0xff]  ;;  %v2860_v60 = vld [vmem:[%s6987_s10] sm:$0xff]  ;;  %v4720_v18 = vld [vmem:[%s4938_s14 + $0x58] sm:$0xff] }
 0x291   : > { %v2694_v9 = vpack.c.bf16 %v2678_v12, %v2677_v53  ;;  %v6502_v12 = vpop.f32.mrf.mxu1 }
 0x292   : > { %2883 = vmatpush.msra.mxu2 %v2801_v26  ;;  %v3539_v1 = vpack.c.b16 %v3536_v16, %v3536_v16  ;;  %v3829_v26 = vld [vmem:[%s6980_s3] sm:$0xff] }
 0x293   : > { %3808 = vmatmul.msk.bf16.gmra.mxu3 %vm7005_vm2, %v2694_v9 }
 0x294   : > { %v4494_v33 = vpop.permute.xlu1 %4493  ;;  %2884 = vmatpush.msra.mxu2 %v2798_v45  ;;  %v3555_v27 = vsel %vm484_vm5, %v3539_v1, 0  ;;  %v2872_v1 = vld [vmem:[%s6987_s10 + $0x60] sm:$0xff] }
 0x295   : > { %v4496_v63 = vunpack.i.h.bf16 %v4494_v33  ;;  %v4495_v56 = vunpack.i.l.bf16 %v4494_v33 }
 0x296   : > { %2885 = vmatpush.msra.mxu2 %v2796_v22  ;;  %v4519_v49 = vpop.permute.xlu0 %4518 }
 0x297   : > { %v2475_v54 = vsel %vm2448_vm10, %v2442_v23, %v4495_v56  ;;  %v2476_v43 = vsel %vm2448_vm10, %v2443_v21, %v4496_v63  ;;  %v4521_v36 = vunpack.i.h.bf16 %v4519_v49  ;;  %v4520_v11 = vunpack.i.l.bf16 %v4519_v49  ;;  %v4711_v56 = vld [vmem:[%s4938_s14 + $0x10] sm:$0xff] }
 0x298   : > { %2886 = vmatpush.msra.mxu2 %v2793_v47  ;;  %v2509_v39 = vsel %vm2481_vm11, %v2476_v43, %v4501_v62  ;;  %v2508_v14 = vsel %vm2481_vm11, %v2475_v54, %v4500_v52  ;;  %v419_v47 = vpack.c.bf16 %v4712_v24, %v4711_v56  ;;  %v4713_v52 = vld [vmem:[%s4938_s14 + $0x20] sm:$0xff]  ;;  %v4714_v54 = vld [vmem:[%s4938_s14 + $0x28] sm:$0xff] }
 0x299   : > { %v2541_v10 = vsel %vm2514_vm12, %v2508_v14, %v4505_v5  ;;  %v2542_v20 = vsel %vm2514_vm12, %v2509_v39, %v4506_v0  ;;  %v6504_v9 = vpop.f32.mrf.mxu1  ;;  %v420_v43 = vpack.c.bf16 %v4714_v54, %v4713_v52 }
 0x29a   : > { %2887 = vmatpush.msra.mxu2 %v2791_v51 }
 0x29c   : > { %v4509_v29 = vpop.permute.xlu1 %4508  ;;  %2888 = vmatpush.msra.mxu2 %v2788_v15  ;;  %3770 = vmatmul.msk.bf16.gmra.mxu0 %vm435_vm0, %v419_v47 }
 0x29d   : > { %v4511_v4 = vunpack.i.h.bf16 %v4509_v29  ;;  %v4510_v41 = vunpack.i.l.bf16 %v4509_v29 }
 0x29e   : > { %2889 = vmatpush.msra.mxu2 %v2786_v61 }
 0x29f   : > { %v2574_v3 = vsel %vm2547_vm13, %v2541_v10, %v4510_v41  ;;  %v2575_v34 = vsel %vm2547_vm13, %v2542_v20, %v4511_v4  ;;  %v4715_v4 = vld [vmem:[%s4938_s14 + $0x30] sm:$0xff]  ;;  %v4716_v41 = vld [vmem:[%s4938_s14 + $0x38] sm:$0xff] }
 0x2a0   : > { %2890 = vmatpush.msra.mxu2 %v2783_v55  ;;  %v2607_v6 = vsel %vm2580_vm14, %v2574_v3, %v4515_v19  ;;  %v2608_v30 = vsel %vm2580_vm14, %v2575_v34, %v4516_v17  ;;  %v421_v55 = vpack.c.bf16 %v4716_v41, %v4715_v4  ;;  %v6534_v17 = vld [vmem:[%s6987_s10 + $0x20] sm:$0xff]  ;;  %v2866_v34 = vld [vmem:[%s6987_s10 + $0x30] sm:$0xff] }
 0x2a1   : > { %v2640_v59 = vsel %vm2613_vm15, %v2607_v6, %v4520_v11  ;;  %v2641_v25 = vsel %vm2613_vm15, %v2608_v30, %v4521_v36  ;;  %v4717_v11 = vld [vmem:[%s4938_s14 + $0x40] sm:$0xff]  ;;  %v4718_v6 = vld [vmem:[%s4938_s14 + $0x48] sm:$0xff] }
 0x2a2   : > { %2891 = vmatpush.msra.mxu2 %v2781_v57  ;;  %v422_v30 = vpack.c.bf16 %v4718_v6, %v4717_v11 }
 0x2a3   : > { %2892 = vmatmul.f32.vlgmr.msra.gmra.mxu2 %v2860_v60  ;;  %v4722_v60 = vld [vmem:[%s4938_s14 + $0x68] sm:$0xff] }
 0x2a4   : > { %v4524_v7 = vpop.permute.xlu1 %4523  ;;  %3562 = vmatpush.bf16.msrb.mxu2 %v3555_v27  ;;  %v2874_v27 = vld [vmem:[%s6987_s10 + $0x70] sm:$0xff] }
 0x2a5   : > { %v4526_v35 = vunpack.i.h.bf16 %v4524_v7  ;;  %v4525_v58 = vunpack.i.l.bf16 %v4524_v7 }
 0x2a7   : > { %v2673_v40 = vsel %vm2646_vm1, %v2640_v59, %v4525_v58  ;;  %v2674_v31 = vsel %vm2646_vm1, %v2641_v25, %v4526_v35  ;;  %v6506_v45 = vpop.f32.mrf.mxu1  ;;  %v2868_v59 = vld [vmem:[%s6987_s10 + $0x40] sm:$0xff] }
 0x2a8   : > { %v2692_v48 = vpack.c.bf16 %v2674_v31, %v2673_v40  ;;  %3563 = vmatpush.bf16.msrb.mxu2 %v3830_v8  ;;  %v2826_v25 = vadd.f32 %v6412_v2, %v6506_v45  ;;  %v2823_v40 = vadd.f32 %v6412_v2, %v6504_v9  ;;  %v2821_v31 = vadd.f32 %v6412_v2, %v6502_v12  ;;  %v4721_v8 = vld [vmem:[%s4938_s14 + $0x60] sm:$0xff]  ;;  %v2869_v12 = vld [vmem:[%s6987_s10 + $0x48] sm:$0xff]  ;;  %v4723_v9 = vld [vmem:[%s4938_s14 + $0x70] sm:$0xff] }
 0x2a9   : > { %v4724_v45 = vld [vmem:[%s4938_s14 + $0x78] sm:$0xff] }
 0x2aa   : > { %3806 = vmatmul.msk.bf16.gmra.mxu1 %vm7005_vm2, %v2692_v48  ;;  %v2861_v48 = vld [vmem:[%s6987_s10 + $0x8] sm:$0xff] }
 0x2ab   : > { %v567_v46 = vpop.f32.mrf.mxu3  ;;  %2895 = vmatmul.f32.gmra.mxu2 %v6524_v42 }
 0x2ac   : > { %3564 = vmatpush.bf16.msrb.mxu2 %v3829_v26  ;;  %3771 = vmatmul.msk.bf16.gmra.mxu0 %vm435_vm0, %v420_v43  ;;  %v424_v26 = vpack.c.bf16 %v4722_v60, %v4721_v8 }
 0x2af   : > { %v2827_v50 = vpop.f32.mrf.mxu1 }
 0x2b0   : > { %v2828_v58 = vadd.f32 %v6412_v2, %v2827_v50  ;;  %v425_v50 = vpack.c.bf16 %v4724_v45, %v4723_v9 }
 0x2b3   : > { %v569_v13 = vpop.f32.mrf.mxu3  ;;  %2898 = vmatmul.f32.gmra.mxu2 %v6534_v17 }
 0x2b9   : > { %v2830_v37 = vpop.f32.mrf.mxu1 }
 0x2ba   : > { %v2831_v35 = vadd.f32 %v6412_v2, %v2830_v37  ;;  %v2871_v37 = vld [vmem:[%s6987_s10 + $0x58] sm:$0xff] }
 0x2bb   : > { %v572_v28 = vpop.f32.mrf.mxu3  ;;  %2901 = vmatmul.f32.gmra.mxu2 %v2866_v34 }
 0x2bc   : > { %3772 = vmatmul.msk.bf16.gmra.mxu0 %vm435_vm0, %v421_v55  ;;  %v4731_v55 = vld [vmem:[%s4938_s14 + $0xb0] sm:$0xff] }
 0x2c1   : > { %v2832_v22 = vpop.f32.mrf.mxu1 }
 0x2c2   : > { %v2833_v7 = vadd.f32 %v6412_v2, %v2832_v22  ;;  %v4725_v22 = vld [vmem:[%s4938_s14 + $0x80] sm:$0xff] }
 0x2c3   : > { %v574_v53 = vpop.f32.mrf.mxu3  ;;  %2904 = vmatmul.f32.gmra.mxu2 %v2868_v59 }
 0x2c4   : > { %3627 = vmatpush.msra.mxu2 %v574_v53  ;;  %v2867_v53 = vld [vmem:[%s6987_s10 + $0x38] sm:$0xff] }
 0x2c6   : > { %3628 = vmatpush.msra.mxu2 %v572_v28  ;;  %v2865_v28 = vld [vmem:[%s6987_s10 + $0x28] sm:$0xff] }
 0x2c8   : > { %3629 = vmatpush.msra.mxu2 %v569_v13  ;;  %v4719_v13 = vld [vmem:[%s4938_s14 + $0x50] sm:$0xff] }
 0x2c9   : > { %v423_v16 = vpack.c.bf16 %v4720_v18, %v4719_v13 }
 0x2ca   : > { %3630 = vmatpush.msra.mxu2 %v567_v46  ;;  %v2870_v46 = vld [vmem:[%s6987_s10 + $0x50] sm:$0xff] }
 0x2cb   : > { %2907 = vmatmul.f32.gmra.mxu2 %v2870_v46  ;;  %v4811_v46 = vmov 64.0  }
 0x2cc   : > { %3773 = vmatmul.msk.bf16.gmra.mxu0 %vm435_vm0, %v422_v30  ;;  %4697 = vrcp.f32 %v4811_v46 }
 0x2d3   : > { %2910 = vmatmul.f32.gmra.mxu2 %v2872_v1 }
 0x2d9   : > { %v2835_v33 = vpop.f32.mrf.mxu1 }
 0x2da   : > { %v2836_v36 = vadd.f32 %v6412_v2, %v2835_v33  ;;  %v4726_v33 = vld [vmem:[%s4938_s14 + $0x88] sm:$0xff] }
 0x2db   : > { %2913 = vmatmul.f32.gmra.mxu2 %v2874_v27 }
 0x2dc   : > { %3774 = vmatmul.msk.bf16.gmra.mxu0 %vm435_vm0, %v423_v16 }
 0x2e1   : > { %v2837_v21 = vpop.f32.mrf.mxu1 }
 0x2e2   : > { %v2838_v3 = vadd.f32 %v6412_v2, %v2837_v21 }
 0x2ec   : > { %3775 = vmatmul.msk.bf16.gmra.mxu0 %vm435_vm0, %v424_v26 }
 0x2ed   : > { %v2850_v63 = vpop.f32.mrf.mxu3 }
 0x2ee   : > { %v2851_v14 = vadd.f32 %v6412_v2, %v2850_v63  ;;  %v426_v63 = vpack.c.bf16 %v4726_v33, %v4725_v22 }
 0x2f5   : > { %v2852_v23 = vpop.f32.mrf.mxu3 }
 0x2f6   : > { %v2853_v39 = vadd.f32 %v6412_v2, %v2852_v23 }
 0x2fc   : > { %3776 = vmatmul.msk.bf16.gmra.mxu0 %vm435_vm0, %v425_v50 }
 0x308   : > { %v2840_v51 = vpop.f32.mrf.mxu1 }
 0x309   : > { %v2841_v57 = vadd.f32 %v6412_v2, %v2840_v51  ;;  %v6602_v44 = vpop.f32.mrf.mxu0  ;;  %v4727_v51 = vld [vmem:[%s4938_s14 + $0x90] sm:$0xff] }
 0x30c   : > { %3777 = vmatmul.msk.bf16.gmra.mxu0 %vm435_vm0, %v426_v63  ;;  %v4733_v63 = vld [vmem:[%s4938_s14 + $0xc0] sm:$0xff] }
 0x310   : > { %v2842_v0 = vpop.f32.mrf.mxu1 }
 0x311   : > { %v2843_v49 = vadd.f32 %v6412_v2, %v2842_v0  ;;  %v6607_v56 = vpop.f32.mrf.mxu0 }
 0x316   : > { %v2855_v62 = vpop.f32.mrf.mxu3 }
 0x317   : > { %v2856_v61 = vadd.f32 %v6412_v2, %v2855_v62  ;;  %v4728_v62 = vld [vmem:[%s4938_s14 + $0x98] sm:$0xff] }
 0x318   : > { %v427_v52 = vpack.c.bf16 %v4728_v62, %v4727_v51  ;;  %v4734_v51 = vld [vmem:[%s4938_s14 + $0xc8] sm:$0xff] }
 0x319   : > { %v6609_v24 = vpop.f32.mrf.mxu0  ;;  %v430_v62 = vpack.c.bf16 %v4734_v51, %v4733_v63 }
 0x31c   : > { %3778 = vmatmul.msk.bf16.gmra.mxu0 %vm435_vm0, %v427_v52 }
 0x31e   : > { %v2857_v15 = vpop.f32.mrf.mxu3 }
 0x31f   : > { %v2858_v5 = vadd.f32 %v6412_v2, %v2857_v15 }
 0x321   : > { %2917 = vmatpush.msra.mxu3 %v2858_v5  ;;  %v6611_v47 = vpop.f32.mrf.mxu0  ;;  %v4729_v5 = vld [vmem:[%s4938_s14 + $0xa0] sm:$0xff] }
 0x323   : > { %2918 = vmatpush.msra.mxu3 %v2856_v61  ;;  %v4730_v61 = vld [vmem:[%s4938_s14 + $0xa8] sm:$0xff] }
 0x325   : > { %2919 = vmatpush.msra.mxu3 %v2853_v39  ;;  %v428_v39 = vpack.c.bf16 %v4730_v61, %v4729_v5 }
 0x326   : > { %v2893_v43 = vpop.f32.mrf.mxu2 }
 0x327   : > { %v2845_v29 = vpop.f32.mrf.mxu1  ;;  %2920 = vmatpush.msra.mxu3 %v2851_v14 }
 0x328   : > { %v2846_v19 = vadd.f32 %v6412_v2, %v2845_v29 }
 0x329   : > { %v6613_v21 = vpop.f32.mrf.mxu0 }
 0x32c   : > { %3779 = vmatmul.msk.bf16.gmra.mxu0 %vm435_vm0, %v428_v39 }
 0x32e   : > { %v2896_v0 = vpop.f32.mrf.mxu2 }
 0x32f   : > { %v2847_v10 = vpop.f32.mrf.mxu1 }
 0x330   : > { %v2848_v20 = vadd.f32 %v6412_v2, %v2847_v10  ;;  %v2863_v2 = vld [vmem:[%s6987_s10 + $0x18] sm:$0xff] }
 0x331   : > { %v6615_v23 = vpop.f32.mrf.mxu0  ;;  %v4732_v10 = vld [vmem:[%s4938_s14 + $0xb8] sm:$0xff] }
 0x332   : > { %2921 = vmatpush.msra.mxu3 %v2848_v20  ;;  %v429_v20 = vpack.c.bf16 %v4732_v10, %v4731_v55 }
 0x334   : > { %2922 = vmatpush.msra.mxu3 %v2846_v19 }
 0x336   : > { %2923 = vmatpush.msra.mxu3 %v2843_v49  ;;  %v2899_v4 = vpop.f32.mrf.mxu2 }
 0x338   : > { %2924 = vmatpush.msra.mxu3 %v2841_v57 }
 0x339   : > { %v6620_v54 = vpop.f32.mrf.mxu0 }
 0x33a   : > { %2925 = vmatpush.msra.mxu3 %v2838_v3 }
 0x33c   : > { %2926 = vmatpush.msra.mxu3 %v2836_v36  ;;  %3780 = vmatmul.msk.bf16.gmra.mxu0 %vm435_vm0, %v429_v20 }
 0x33e   : > { %2927 = vmatpush.msra.mxu3 %v2833_v7  ;;  %v2902_v49 = vpop.f32.mrf.mxu2 }
 0x340   : > { %2928 = vmatpush.msra.mxu3 %v2831_v35 }
 0x341   : > { %v6622_v15 = vpop.f32.mrf.mxu0 }
 0x342   : > { %2929 = vmatpush.msra.mxu3 %v2828_v58 }
 0x344   : > { %2930 = vmatpush.msra.mxu3 %v2826_v25 }
 0x346   : > { %2931 = vmatpush.msra.mxu3 %v2823_v40  ;;  %v2905_v36 = vpop.f32.mrf.mxu2 }
 0x348   : > { %2932 = vmatpush.msra.mxu3 %v2821_v31 }
 0x349   : > { %2933 = vmatmul.f32.vlgmr.msra.gmra.mxu3 %v2861_v48  ;;  %v6627_v29 = vpop.f32.mrf.mxu0 }
 0x34c   : > { %3781 = vmatmul.msk.bf16.gmra.mxu0 %vm435_vm0, %v430_v62 }
 0x34e   : > { %v2908_v30 = vpop.f32.mrf.mxu2 }
 0x351   : > { %2936 = vmatmul.f32.gmra.mxu3 %v2863_v2  ;;  %v6631_v19 = vpop.f32.mrf.mxu0 }
 0x356   : > { %v2911_v40 = vpop.f32.mrf.mxu2 }
 0x359   : > { %2939 = vmatmul.f32.gmra.mxu3 %v2865_v28  ;;  %v6634_v3 = vpop.f32.mrf.mxu0 }
 0x361   : > { %2942 = vmatmul.f32.gmra.mxu3 %v2867_v53  ;;  %v6636_v6 = vpop.f32.mrf.mxu0  ;;  %v4698_v53 = vpop.eup %4697 }
 0x362   : > { %vm2986_vm5 = vweird.f32 %v4698_v53 }
 0x369   : > { %2945 = vmatmul.f32.gmra.mxu3 %v2869_v12  ;;  %v6638_v25 = vpop.f32.mrf.mxu0 }
 0x371   : > { %2948 = vmatmul.f32.gmra.mxu3 %v2871_v37  ;;  %v529_v45 = vpop.f32.mrf.mxu0  ;;  %v2914_v37 = vpop.f32.mrf.mxu2 }
 0x379   : > { %2951 = vmatmul.f32.gmra.mxu3 %v2873_v32 }
 0x381   : > { %2954 = vmatmul.f32.gmra.mxu3 %v2875_v38  ;;  %v2982_v38 = vmul.f32 64.0, %v4698_v53 }
 0x383   : > { %v2983_v5 = vsub.f32 1.0, %v2982_v38 }
 0x3cc   : > { %v2934_v14 = vpop.f32.mrf.mxu3 }
 0x3cd   : > { %v2935_v58 = vadd.f32 %v2934_v14, %v2893_v43  ;;  %v2984_v14 = vmul.f32 %v4698_v53, %v2983_v5 }
 0x3cf   : > { %v2960_v13 = vsel %vm435_vm0, %v2935_v58, 0.0  ;;  %v2985_v10 = vadd.f32 %v4698_v53, %v2984_v14 }
 0x3d4   : > { %v2937_v41 = vpop.f32.mrf.mxu3 }
 0x3d5   : > { %v2938_v35 = vadd.f32 %v2937_v41, %v2896_v0 }
 0x3d7   : > { %v2961_v31 = vsel %vm435_vm0, %v2938_v35, 0.0 }
 0x3d8   : > { %v2962_v2 = vadd.f32 %v2961_v31, %v2960_v13 }
 0x3dc   : > { %v2940_v57 = vpop.f32.mrf.mxu3 }
 0x3dd   : > { %v2941_v59 = vadd.f32 %v2940_v57, %v2899_v4  ;;  %v532_v4 = vpop.f32.mrf.mxu0  ;;  %v2987_v57 = vsel %vm2986_vm5, %v4698_v53, %v2985_v10 }
 0x3df   : > { %v2963_v18 = vsel %vm435_vm0, %v2941_v59, 0.0 }
 0x3e0   : > { %v2964_v8 = vadd.f32 %v2963_v18, %v2962_v2 }
 0x3e4   : > { %v2943_v34 = vpop.f32.mrf.mxu3 }
 0x3e5   : > { %v2944_v48 = vadd.f32 %v2943_v34, %v2902_v49  ;;  %v534_v34 = vpop.f32.mrf.mxu0 }
 0x3e6   : > { %3586 = vmatpush.msrb.mxu3 %v534_v34 }
 0x3e7   : > { %v2965_v28 = vsel %vm435_vm0, %v2944_v48, 0.0 }
 0x3e8   : > { %v2966_v12 = vadd.f32 %v2965_v28, %v2964_v8  ;;  %3587 = vmatpush.msrb.mxu3 %v532_v4 }
 0x3ea   : > { %3588 = vmatpush.msrb.mxu3 %v529_v45 }
 0x3ec   : > { %v2946_v11 = vpop.f32.mrf.mxu3  ;;  %3589 = vmatpush.msrb.mxu3 %v6638_v25 }
 0x3ed   : > { %v2947_v16 = vadd.f32 %v2946_v11, %v2905_v36  ;;  %v4735_v11 = vld [vmem:[%s4938_s14 + $0xd0] sm:$0xff] }
 0x3ee   : > { %3590 = vmatpush.msrb.mxu3 %v6636_v6 }
 0x3ef   : > { %v2967_v60 = vsel %vm435_vm0, %v2947_v16, 0.0 }
 0x3f0   : > { %v2968_v50 = vadd.f32 %v2967_v60, %v2966_v12  ;;  %3591 = vmatpush.msrb.mxu3 %v6634_v3 }
 0x3f2   : > { %3592 = vmatpush.msrb.mxu3 %v6631_v19 }
 0x3f4   : > { %v2949_v7 = vpop.f32.mrf.mxu3  ;;  %3593 = vmatpush.msrb.mxu3 %v6627_v29 }
 0x3f5   : > { %v2950_v27 = vadd.f32 %v2949_v7, %v2908_v30  ;;  %v4736_v30 = vld [vmem:[%s4938_s14 + $0xd8] sm:$0xff] }
 0x3f6   : > { %v431_v7 = vpack.c.bf16 %v4736_v30, %v4735_v11  ;;  %3594 = vmatpush.msrb.mxu3 %v6622_v15 }
 0x3f7   : > { %v2969_v9 = vsel %vm435_vm0, %v2950_v27, 0.0 }
 0x3f8   : > { %v2970_v22 = vadd.f32 %v2969_v9, %v2968_v50  ;;  %3782 = vmatmul.msk.bf16.gmra.mxu0 %vm435_vm0, %v431_v7  ;;  %3595 = vmatpush.msrb.mxu3 %v6620_v54 }
 0x3fa   : > { %3596 = vmatpush.msrb.mxu3 %v6615_v23  ;;  %v6699_v23 = vpop.f32.mrf.mxu0 }
 0x3fc   : > { %v2952_v1 = vpop.f32.mrf.mxu3  ;;  %3597 = vmatpush.msrb.mxu3 %v6613_v21 }
 0x3fd   : > { %v2953_v26 = vadd.f32 %v2952_v1, %v2911_v40 }
 0x3fe   : > { %3598 = vmatpush.msrb.mxu3 %v6611_v47 }
 0x3ff   : > { %v2971_v32 = vsel %vm435_vm0, %v2953_v26, 0.0 }
 0x400   : > { %v2972_v43 = vadd.f32 %v2971_v32, %v2970_v22  ;;  %3599 = vmatpush.msrb.mxu3 %v6609_v24 }
 0x402   : > { %3600 = vmatpush.msrb.mxu3 %v6607_v56 }
 0x404   : > { %v2955_v33 = vpop.f32.mrf.mxu3  ;;  %3601 = vmatpush.msrb.mxu3 %v6602_v44  ;;  %v4690_v44 = vld [vmem:[%s6985_s8] ss:$0 sm:$0xff] }
 0x405   : > { %v2956_v52 = vadd.f32 %v2955_v33, %v2914_v37 }
 0x407   : > { %v2973_v0 = vsel %vm435_vm0, %v2956_v52, 0.0 }
 0x408   : > { %v2974_v61 = vadd.f32 %v2973_v0, %v2972_v43 }
 0x40a   : > { %v2975_v39 = vrot.slane %v2974_v61, 4 }
 0x40c   : > { %v2976_v41 = vadd.f32 %v2975_v39, %v2974_v61  ;;  %v6701_v39 = vpop.f32.mrf.mxu0 }
 0x40e   : > { %v2977_v55 = vrot.slane %v2976_v41, 2 }
 0x410   : > { %v2978_v20 = vadd.f32 %v2977_v55, %v2976_v41 }
 0x412   : > { %v2979_v49 = vrot.slane %v2978_v20, 1 }
 0x414   : > { %v2980_v36 = vadd.f32 %v2979_v49, %v2978_v20  ;;  %v4691_v20 = vld [vmem:[%s6986_s9] ss:$0 sm:$0xff] }
 0x416   : > { %v2988_v40 = vmul.f32 %v2987_v57, %v2980_v36 }
 0x418   : > { %v6654_v31 = vsub.f32 %v2935_v58, %v2988_v40  ;;  %v6656_v46 = vsub.f32 %v2938_v35, %v2988_v40  ;;  %v6658_v13 = vsub.f32 %v2941_v59, %v2988_v40  ;;  %v6660_v18 = vsub.f32 %v2944_v48, %v2988_v40 }
 0x419   : > { %v6662_v2 = vsub.f32 %v2947_v16, %v2988_v40  ;;  %v6671_v35 = vsub.f32 %v2950_v27, %v2988_v40  ;;  %v2995_v60 = vsub.f32 %v2953_v26, %v2988_v40  ;;  %v2996_v27 = vsub.f32 %v2956_v52, %v2988_v40 }
 0x41a   : > { %v2997_v1 = vmul.f32 %v6654_v31, %v6654_v31  ;;  %v2998_v28 = vmul.f32 %v6656_v46, %v6656_v46  ;;  %v2999_v8 = vmul.f32 %v6658_v13, %v6658_v13  ;;  %v3000_v58 = vmul.f32 %v6660_v18, %v6660_v18 }
 0x41b   : > { %v3001_v53 = vmul.f32 %v6662_v2, %v6662_v2  ;;  %v3002_v9 = vmul.f32 %v6671_v35, %v6671_v35  ;;  %v3003_v6 = vmul.f32 %v2995_v60, %v2995_v60  ;;  %v3004_v32 = vmul.f32 %v2996_v27, %v2996_v27 }
 0x41c   : > { %v3005_v59 = vsel %vm435_vm0, %v2997_v1, 0.0  ;;  %v3006_v48 = vsel %vm435_vm0, %v2998_v28, 0.0  ;;  %v3008_v12 = vsel %vm435_vm0, %v2999_v8, 0.0  ;;  %v3010_v45 = vsel %vm435_vm0, %v3000_v58, 0.0 }
 0x41d   : > { %v3007_v16 = vadd.f32 %v3006_v48, %v3005_v59  ;;  %v3012_v26 = vsel %vm435_vm0, %v3001_v53, 0.0  ;;  %v3014_v38 = vsel %vm435_vm0, %v3002_v9, 0.0  ;;  %v3016_v22 = vsel %vm435_vm0, %v3003_v6, 0.0 }
 0x41e   : > { %v3018_v19 = vsel %vm435_vm0, %v3004_v32, 0.0 }
 0x41f   : > { %v3009_v25 = vadd.f32 %v3008_v12, %v3007_v16 }
 0x421   : > { %v3011_v50 = vadd.f32 %v3010_v45, %v3009_v25 }
 0x423   : > { %v3013_v37 = vadd.f32 %v3012_v26, %v3011_v50 }
 0x425   : > { %v3015_v3 = vadd.f32 %v3014_v38, %v3013_v37 }
 0x427   : > { %v3017_v33 = vadd.f32 %v3016_v22, %v3015_v3 }
 0x429   : > { %v3019_v63 = vadd.f32 %v3018_v19, %v3017_v33 }
 0x42b   : > { %v3020_v29 = vrot.slane %v3019_v63, 4 }
 0x42d   : > { %v3021_v51 = vadd.f32 %v3020_v29, %v3019_v63  ;;  %v3137_v63 = vld [vmem:[#allocation3 + $0x2] sm:$0xff] }
 0x42e   : > { %v3129_v29 = vld [vmem:[#allocation3 + $0x1] sm:$0xff] }
 0x42f   : > { %v3022_v15 = vrot.slane %v3021_v51, 2 }
 0x431   : > { %v3023_v62 = vadd.f32 %v3022_v15, %v3021_v51 }
 0x433   : > { %v3024_v54 = vrot.slane %v3023_v62, 1 }
 0x435   : > { %v3025_v52 = vadd.f32 %v3024_v54, %v3023_v62 }
 0x437   : > { %v3026_v43 = vmul.f32 %v3025_v52, %v2987_v57 }
 0x439   : > { %v3027_v0 = vadd.f32 1e-05, %v3026_v43 }
 0x43b   : > { %4699 = vrsqrt.f32 %v3027_v0  ;;  %vm3034_vm7 = vweird.f32 %v3027_v0 }
 0x441   : > { %v4700_v21 = vpop.eup %4699 }
 0x442   : > { %v3029_v5 = vmul.f32 %v4700_v21, %v3027_v0  ;;  %vm3035_vm6 = vweird.f32 %v4700_v21 }
 0x443   : > { %vm3036_vm8 = vmor %vm3034_vm7, %vm3035_vm6 }
 0x444   : > { %v3030_v61 = vmul.f32 %v4700_v21, %v3029_v5 }
 0x446   : > { %v3031_v47 = vmul.f32 0.5, %v3030_v61 }
 0x448   : > { %v3032_v24 = vsub.f32 1.5, %v3031_v47 }
 0x44a   : > { %v3033_v14 = vmul.f32 %v4700_v21, %v3032_v24 }
 0x44c   : > { %v3037_v56 = vsel %vm3036_vm8, %v4700_v21, %v3033_v14 }
 0x44d   : > { %v3038_v4 = vmul.f32 %v3037_v56, %v6654_v31  ;;  %v3039_v41 = vmul.f32 %v3037_v56, %v6656_v46  ;;  %v3040_v55 = vmul.f32 %v3037_v56, %v6658_v13  ;;  %v3041_v10 = vmul.f32 %v3037_v56, %v6660_v18  ;;  %v6715_v31 = vpop.f32.mrf.mxu0 }
 0x44e   : > { %v3042_v49 = vmul.f32 %v3037_v56, %v6662_v2  ;;  %v3043_v57 = vmul.f32 %v3037_v56, %v6671_v35  ;;  %v3044_v34 = vmul.f32 %v3037_v56, %v2995_v60  ;;  %v3045_v36 = vmul.f32 %v3037_v56, %v2996_v27 }
 0x44f   : > { %v3049_v11 = vmul.f32 %v4690_v44, %v3038_v4  ;;  %v3050_v30 = vmul.f32 %v4690_v44, %v3039_v41  ;;  %v3051_v7 = vmul.f32 %v4690_v44, %v3040_v55  ;;  %v3052_v40 = vmul.f32 %v4690_v44, %v3041_v10 }
 0x450   : > { %v3053_v46 = vmul.f32 %v4690_v44, %v3042_v49  ;;  %v3054_v13 = vmul.f32 %v4690_v44, %v3043_v57  ;;  %v3055_v1 = vmul.f32 %v4690_v44, %v3044_v34  ;;  %v3056_v18 = vmul.f32 %v4690_v44, %v3045_v36 }
 0x451   : > { %v3060_v28 = vadd.f32 %v4691_v20, %v3049_v11  ;;  %v3061_v8 = vadd.f32 %v4691_v20, %v3050_v30  ;;  %v3063_v58 = vadd.f32 %v4691_v20, %v3052_v40  ;;  %v3062_v35 = vadd.f32 %v4691_v20, %v3051_v7 }
 0x452   : > { %v3064_v59 = vadd.f32 %v4691_v20, %v3053_v46  ;;  %v3065_v48 = vadd.f32 %v4691_v20, %v3054_v13  ;;  %v3066_v2 = vadd.f32 %v4691_v20, %v3055_v1  ;;  %v3067_v16 = vadd.f32 %v4691_v20, %v3056_v18 }
 0x453   : > { %vm3068_vm9 = vcmp.gt.f32.partialorder %v3060_v28, 0.0  ;;  %vm3069_vm3 = vcmp.gt.f32.partialorder %v3061_v8, 0.0  ;;  %vm3071_vm4 = vcmp.gt.f32.partialorder %v3063_v58, 0.0  ;;  %v3076_v60 = vmul.f32 0.2, %v3060_v28 }
 0x454   : > { %vm3072_vm5 = vcmp.gt.f32.partialorder %v3064_v59, 0.0  ;;  %vm3073_vm6 = vcmp.gt.f32.partialorder %v3065_v48, 0.0  ;;  %vm3074_vm7 = vcmp.gt.f32.partialorder %v3066_v2, 0.0  ;;  %vm3075_vm8 = vcmp.gt.f32.partialorder %v3067_v16, 0.0 }
 0x455   : > { %v3079_v53 = vmul.f32 0.2, %v3063_v58  ;;  %v3080_v12 = vmul.f32 0.2, %v3064_v59  ;;  %v3081_v25 = vmul.f32 0.2, %v3065_v48  ;;  %v3084_v50 = vsel %vm3068_vm9, %v3060_v28, %v3076_v60  ;;  %v6717_v6 = vpop.f32.mrf.mxu0 }
 0x456   : > { %v3077_v27 = vmul.f32 0.2, %v3061_v8  ;;  %v3082_v9 = vmul.f32 0.2, %v3066_v2  ;;  %v3083_v45 = vmul.f32 0.2, %v3067_v16 }
 0x457   : > { %v3078_v26 = vmul.f32 0.2, %v3062_v35  ;;  %v3087_v37 = vsel %vm3071_vm4, %v3063_v58, %v3079_v53  ;;  %v3088_v32 = vsel %vm3072_vm5, %v3064_v59, %v3080_v12  ;;  %v3089_v38 = vsel %vm3073_vm6, %v3065_v48, %v3081_v25  ;;  %3113 = vst.msk [vmem:[#allocation3 + $0x11] sm:$0xff] %vm435_vm0, %v3084_v50 }
 0x458   : > { %vm3070_vm2 = vcmp.gt.f32.partialorder %v3062_v35, 0.0  ;;  %v3090_v3 = vsel %vm3074_vm7, %v3066_v2, %v3082_v9  ;;  %3116 = vst.msk [vmem:[#allocation3 + $0x41] sm:$0xff] %vm435_vm0, %v3087_v37  ;;  %v3091_v22 = vsel %vm3075_vm8, %v3067_v16, %v3083_v45  ;;  %v3085_v33 = vsel %vm3069_vm3, %v3061_v8, %v3077_v27 }
 0x459   : > { %3117 = vst.msk [vmem:[#allocation3 + $0x51] sm:$0xff] %vm435_vm0, %v3088_v32  ;;  %v3086_v19 = vsel %vm3070_vm2, %v3062_v35, %v3078_v26  ;;  %vm7022_vm2 = vcmask 293888  }
 0x45a   : > { %3118 = vst.msk [vmem:[#allocation3 + $0x61] sm:$0xff] %vm435_vm0, %v3089_v38  ;;  %vm7023_vm9 = vmmov %vm7022_vm2 }
 0x45b   : > { %3119 = vst.msk [vmem:[#allocation3 + $0x71] sm:$0xff] %vm435_vm0, %v3090_v3  ;;  %vm7024_vm3 = vmmov %vm7022_vm2 }
 0x45c   : > { %3120 = vst.msk [vmem:[#allocation3 + $0x81] sm:$0xff] %vm435_vm0, %v3091_v22 }
 0x45d   : > { %3114 = vst.msk [vmem:[#allocation3 + $0x21] sm:$0xff] %vm435_vm0, %v3085_v33  ;;  %v6730_v62 = vpop.f32.mrf.mxu0 }
 0x45e   : > { %3115 = vst.msk [vmem:[#allocation3 + $0x31] sm:$0xff] %vm435_vm0, %v3086_v19  ;;  %v3138_v51 = vld [vmem:[#allocation3 + $0x12] sm:$0xff] }
 0x45f   : > { %v3130_v15 = vld [vmem:[#allocation3 + $0x11] sm:$0xff]  ;;  %v4532_v54 = vpack.i.bf16 %v3138_v51, %v3137_v63  ;;  %v6752_v49 = vld [vmem:[#allocation3 + $0x40] sm:$0xff] }
 0x460   : > { %v4527_v52 = vpack.i.bf16 %v3130_v15, %v3129_v29  ;;  %v6734_v43 = vld [vmem:[#allocation3 + $0x10] sm:$0xff]  ;;  %v3156_v36 = vld [vmem:[#allocation3 + $0x41] sm:$0xff] }
 0x461   : > { %4533 = vrot.lane.b32.xlu0 %v4532_v54, %s7018_s2  ;;  %v6759_v11 = vld [vmem:[#allocation3 + $0x50] sm:$0xff]  ;;  %v3164_v30 = vld [vmem:[#allocation3 + $0x42] sm:$0xff] }
 0x462   : > { %4528 = vrot.lane.b32.xlu2 %v4527_v52, %s7016_s15  ;;  %v4592_v40 = vpack.i.bf16 %v6759_v11, %v6752_v49  ;;  %v3181_v13 = vld [vmem:[#allocation3 + $0x51] sm:$0xff]  ;;  %v3158_v59 = vld [vmem:[#allocation3 + $0x61] sm:$0xff] }
 0x463   : > { %v3142_v18 = vld [vmem:[#allocation3 + $0x52] sm:$0xff]  ;;  %v4597_v28 = vpack.i.bf16 %v3181_v13, %v3156_v36  ;;  %v6769_v48 = vld [vmem:[#allocation3 + $0x60] sm:$0xff]  ;;  %v4622_v2 = vpack.i.bf16 %v3158_v59, %v3181_v13 }
 0x464   : > { %v6736_v0 = vld [vmem:[#allocation3 + $0x20] sm:$0xff]  ;;  %v4612_v8 = vpack.i.bf16 %v3142_v18, %v3164_v30  ;;  %v4617_v16 = vpack.i.bf16 %v6769_v48, %v6759_v11  ;;  %v3183_v53 = vld [vmem:[#allocation3 + $0x71] sm:$0xff] }
 0x465   : > { %v3162_v21 = vld [vmem:[#allocation3 + $0x22] sm:$0xff]  ;;  %v4537_v61 = vpack.i.bf16 %v6736_v0, %v6734_v43  ;;  %v6740_v47 = vpop.f32.mrf.mxu0  ;;  %v6745_v44 = vld [vmem:[#allocation3 + $0x30] sm:$0xff]  ;;  %v4637_v27 = vpack.i.bf16 %v3183_v53, %v3158_v59 }
 0x466   : > { %v3154_v5 = vld [vmem:[#allocation3 + $0x21] sm:$0xff]  ;;  %v4547_v24 = vpack.i.bf16 %v3162_v21, %v3138_v51  ;;  %v3132_v56 = vld [vmem:[#allocation3 + $0x31] sm:$0xff]  ;;  %v4552_v41 = vpack.i.bf16 %v6745_v44, %v6736_v0  ;;  %v4577_v57 = vpack.i.bf16 %v6752_v49, %v6745_v44 }
 0x467   : > { %4538 = vrot.lane.b32.xlu1 %v4537_v61, %s7019_s22  ;;  %v4542_v14 = vpack.i.bf16 %v3154_v5, %v3130_v15  ;;  %v3187_v4 = vld [vmem:[#allocation3 + $0x32] sm:$0xff]  ;;  %v4567_v10 = vpack.i.bf16 %v3132_v56, %v3154_v5  ;;  %v4582_v7 = vpack.i.bf16 %v3156_v36, %v3132_v56  ;;  %v3166_v35 = vld [vmem:[#allocation3 + $0x62] sm:$0xff] }
 0x468   : > { %v4562_v20 = vpack.i.bf16 %v3187_v4, %v3162_v21  ;;  %v4587_v46 = vpack.i.bf16 %v3164_v30, %v3187_v4  ;;  %v6776_v12 = vld [vmem:[#allocation3 + $0x70] sm:$0xff]  ;;  %v4627_v25 = vpack.i.bf16 %v3166_v35, %v3142_v18  ;;  %v3152_v37 = vld [vmem:[#allocation3 + $0x80] sm:$0xff] }
 0x469   : > { %4548 = vrot.lane.b32.xlu0 %v4547_v24, %s7014_s12  ;;  %v4632_v9 = vpack.i.bf16 %v6776_v12, %v6769_v48  ;;  %v3191_v45 = vld [vmem:[#allocation3 + $0x72] sm:$0xff]  ;;  %v3168_v32 = vld [vmem:[#allocation3 + $0x82] sm:$0xff]  ;;  %v4657_v3 = vpack.i.bf16 %v3152_v37, %v6776_v12 }
 0x46a   : > { %4543 = vrot.lane.b32.xlu2 %v4542_v14, %s7020_s13  ;;  %v4642_v26 = vpack.i.bf16 %v3191_v45, %v3166_v35  ;;  %v3160_v38 = vld [vmem:[#allocation3 + $0x81] sm:$0xff]  ;;  %v4667_v22 = vpack.i.bf16 %v3168_v32, %v3191_v45  ;;  %v3177_v19 = vld [vmem:[#allocation3 + $0x90] sm:$0xff] }
 0x46b   : > { %v4662_v33 = vpack.i.bf16 %v3160_v38, %v3183_v53  ;;  %v3193_v63 = vld [vmem:[#allocation3 + $0x92] sm:$0xff]  ;;  %v4672_v51 = vpack.i.bf16 %v3177_v19, %v3152_v37 }
 0x46c   : > { %v3185_v29 = vld [vmem:[#allocation3 + $0x91] sm:$0xff]  ;;  %v4682_v15 = vpack.i.bf16 %v3193_v63, %v3168_v32 }
 0x46d   : > { %v552_v55 = vpop.f32.mrf.mxu0  ;;  %v4677_v54 = vpack.i.bf16 %v3185_v29, %v3160_v38  ;;  %v577_v21 = vld [vmem:[%s6987_s10] sm:$0xff] }
 0x46e   : > { %3602 = vmatmul.f32.vlgmr.msrb.gmra.mxu3 %v577_v21 }
 0x46f   : > { %4553 = vrot.lane.b32.xlu1 %v4552_v41, %s7021_s0 }
 0x471   : > { %4563 = vrot.lane.b32.xlu0 %v4562_v20, %s7015_s29 }
 0x472   : > { %4558 = vrot.lane.b32.xlu2 %v4567_v10, %s7013_s25 }
 0x475   : > { %v554_v34 = vpop.f32.mrf.mxu0 }
 0x476   : > { %3605 = vmatmul.f32.gmra.mxu3 %v6524_v42 }
 0x477   : > { %4568 = vrot.lane.b32.xlu1 %v4567_v10, %s7016_s15 }
 0x479   : > { %4578 = vrot.lane.b32.xlu0 %v4577_v57, %s7019_s22 }
 0x47a   : > { %4573 = vrot.lane.b32.xlu2 %v4562_v20, %s7018_s2 }
 0x47d   : > { %v557_v1 = vpop.f32.mrf.mxu0 }
 0x47e   : > { %3608 = vmatmul.f32.gmra.mxu3 %v6534_v17 }
 0x47f   : > { %4583 = vrot.lane.b32.xlu1 %v4582_v7, %s7020_s13 }
 0x481   : > { %4593 = vrot.lane.b32.xlu0 %v4592_v40, %s7021_s0 }
 0x482   : > { %4588 = vrot.lane.b32.xlu2 %v4587_v46, %s7014_s12 }
 0x485   : > { %v559_v58 = vpop.f32.mrf.mxu0 }
 0x487   : > { %4598 = vrot.lane.b32.xlu1 %v4597_v28, %s7013_s25 }
 0x489   : > { %4608 = vrot.lane.b32.xlu0 %v4597_v28, %s7016_s15 }
 0x48a   : > { %4603 = vrot.lane.b32.xlu2 %v4612_v8, %s7015_s29 }
 0x48d   : > { %v562_v60 = vpop.f32.mrf.mxu0 }
 0x48f   : > { %4613 = vrot.lane.b32.xlu1 %v4612_v8, %s7018_s2 }
 0x491   : > { %4623 = vrot.lane.b32.xlu0 %v4622_v2, %s7020_s13 }
 0x492   : > { %4618 = vrot.lane.b32.xlu2 %v4617_v16, %s7019_s22 }
 0x495   : > { %v564_v50 = vpop.f32.mrf.mxu0 }
 0x496   : > { %3631 = vmatpush.msra.mxu2 %v564_v50 }
 0x497   : > { %4628 = vrot.lane.b32.xlu1 %v4627_v25, %s7014_s12 }
 0x498   : > { %3632 = vmatpush.msra.mxu2 %v562_v60 }
 0x499   : > { %4638 = vrot.lane.b32.xlu0 %v4637_v27, %s7013_s25 }
 0x49a   : > { %4633 = vrot.lane.b32.xlu2 %v4632_v9, %s7021_s0  ;;  %3633 = vmatpush.msra.mxu2 %v559_v58 }
 0x49c   : > { %3634 = vmatpush.msra.mxu2 %v557_v1 }
 0x49e   : > { %3635 = vmatpush.msra.mxu2 %v554_v34 }
 0x49f   : > { %4643 = vrot.lane.b32.xlu1 %v4642_v26, %s7015_s29 }
 0x4a0   : > { %3636 = vmatpush.msra.mxu2 %v552_v55 }
 0x4a1   : > { %4653 = vrot.lane.b32.xlu0 %v4642_v26, %s7018_s2 }
 0x4a2   : > { %4648 = vrot.lane.b32.xlu2 %v4637_v27, %s7016_s15  ;;  %3637 = vmatpush.msra.mxu2 %v6740_v47  ;;  %v3121_v47 = vld [vmem:[#allocation3] sm:$0xff]  ;;  %s3697_s15 = sshll.u32 %s6924_s1, 4  ;;  %s3698_s15 = int_to_ptr.vmem [resolvable:$true] %s3697_s15 }
 0x4a4   : > { %3638 = vmatpush.msra.mxu2 %v6730_v62 }
 0x4a6   : > { %3639 = vmatpush.msra.mxu2 %v6717_v6 }
 0x4a7   : > { %4658 = vrot.lane.b32.xlu1 %v4657_v3, %s7019_s22  ;;  %v583_v3 = vld [vmem:[%s6987_s10 + $0x30] sm:$0xff]  ;;  %s3831_s22 = sshll.u32 %s4894_s21, 6  ;;  %s3685_s21 = scalar_lea.sflag [#allocation5], %s377_s30 }
 0x4a8   : > { %3640 = vmatpush.msra.mxu2 %v6715_v31  ;;  %3611 = vmatmul.f32.gmra.mxu3 %v583_v3 }
 0x4a9   : > { %4668 = vrot.lane.b32.xlu0 %v4667_v22, %s7014_s12  ;;  %s3696_s12 = scalar_lea.hbm %s6988_s11, %s3831_s22  ;;  %s4757_s22 = scalar_lea.hbm %s6988_s11, 128 }
 0x4aa   : > { %4663 = vrot.lane.b32.xlu2 %v4662_v33, %s7020_s13  ;;  %3641 = vmatpush.msra.mxu2 %v6701_v39 }
 0x4ac   : > { %3642 = vmatpush.msra.mxu2 %v6699_v23 }
 0x4af   : > { %4673 = vrot.lane.b32.xlu1 %v4672_v51, %s7021_s0 }
 0x4b1   : > { %4683 = vrot.lane.b32.xlu0 %v4682_v15, %s7015_s29 }
 0x4b2   : > { %4678 = vrot.lane.b32.xlu2 %v4677_v54, %s7013_s25  ;;  %s3699_s25 = sshll.u32 %s3696_s12, 4  ;;  %s3700_s25 = int_to_ptr.hbm [resolvable:$true] %s3699_s25 }
 0x4b3   : > { %s4751_s29 = sshra.s32 %s3700_s25, 4  ;;  %s4752_s29 = int_to_ptr.hbm [resolvable:$true] %s4751_s29 }
 0x4b4   : > { %s4753_s16 = scalar_lea.hbm %s4752_s29, 64  ;;  %p4758_p0 = scmp.lt.s32.totalorder %s4752_s29, %s6988_s11 }
 0x4b5   : > { %p4754_p11 = scmp.ne.s32.totalorder %s4752_s29, %s4753_s16  ;;  %p4759_p1 = scmp.lt.s32.totalorder %s4757_s22, %s4753_s16 }
 0x4b7   : > { %p4755_p12 = pnand %p4754_p11, %p4911_p5  ;;  %p4760_p2 = por %p4759_p1, %p4758_p0 }
 0x4b9   : > { %p4756_p13 = pneg %p4755_p12 }
 0x4bb   : > { %p4761_p3 = pnand %p4760_p2, %p4756_p13 }
 0x4bc   : > { %v4529_v62 = vpop.permute.xlu2 %4528 }
 0x4bd   : > { %v4531_v5 = vunpack.i.h.bf16 %v4529_v62  ;;  %v4530_v61 = vunpack.i.l.bf16 %v4529_v62 }
 0x4bf   : > { %v3450_v14 = vsel %vm435_vm0, %v3121_v47, %v4530_v61  ;;  %v3451_v56 = vsel %vm435_vm0, %v6734_v43, %v4531_v5 }
 0x4c4   : > { %v4544_v52 = vpop.permute.xlu2 %4543 }
 0x4c5   : > { %v4546_v40 = vunpack.i.h.bf16 %v4544_v52  ;;  %v4545_v46 = vunpack.i.l.bf16 %v4544_v52 }
 0x4cc   : > { %v4559_v6 = vpop.permute.xlu2 %4558 }
 0x4cd   : > { %v4561_v42 = vunpack.i.h.bf16 %v4559_v6  ;;  %v4560_v59 = vunpack.i.l.bf16 %v4559_v6 }
 0x4d3   : > { %v4534_v31 = vpop.permute.xlu0 %4533 }
 0x4d4   : > { %v4536_v24 = vunpack.i.h.bf16 %v4534_v31  ;;  %v4535_v39 = vunpack.i.l.bf16 %v4534_v31  ;;  %v4574_v20 = vpop.permute.xlu2 %4573 }
 0x4d5   : > { %v4576_v51 = vunpack.i.h.bf16 %v4574_v20  ;;  %v4575_v15 = vunpack.i.l.bf16 %v4574_v20 }
 0x4d6   : > { %v3458_v55 = vsel %vm2448_vm10, %v3450_v14, %v4535_v39  ;;  %v3459_v10 = vsel %vm2448_vm10, %v3451_v56, %v4536_v24 }
 0x4d9   : > { %v4539_v23 = vpop.permute.xlu1 %4538 }
 0x4da   : > { %v4541_v4 = vunpack.i.h.bf16 %v4539_v23  ;;  %v4540_v41 = vunpack.i.l.bf16 %v4539_v23 }
 0x4db   : > { %v4549_v57 = vpop.permute.xlu0 %4548 }
 0x4dc   : > { %v3466_v34 = vsel %vm2481_vm11, %v3458_v55, %v4540_v41  ;;  %v3467_v36 = vsel %vm2481_vm11, %v3459_v10, %v4541_v4  ;;  %v4551_v30 = vunpack.i.h.bf16 %v4549_v57  ;;  %v4550_v7 = vunpack.i.l.bf16 %v4549_v57  ;;  %v4589_v60 = vpop.permute.xlu2 %4588 }
 0x4dd   : > { %v3474_v43 = vsel %vm2514_vm12, %v3466_v34, %v4545_v46  ;;  %v3475_v13 = vsel %vm2514_vm12, %v3467_v36, %v4546_v40  ;;  %v4591_v39 = vunpack.i.h.bf16 %v4589_v60  ;;  %v4590_v14 = vunpack.i.l.bf16 %v4589_v60  ;;  %v585_v36 = vld [vmem:[%s6987_s10 + $0x40] sm:$0xff]  ;;  %v587_v60 = vld [vmem:[%s6987_s10 + $0x50] sm:$0xff] }
 0x4de   : > { %v3482_v18 = vsel %vm2547_vm13, %v3474_v43, %v4550_v7  ;;  %v3483_v28 = vsel %vm2547_vm13, %v3475_v13, %v4551_v30  ;;  %3614 = vmatmul.f32.gmra.mxu3 %v585_v36 }
 0x4e1   : > { %v4554_v1 = vpop.permute.xlu1 %4553 }
 0x4e2   : > { %v4556_v8 = vunpack.i.h.bf16 %v4554_v1  ;;  %v4555_v58 = vunpack.i.l.bf16 %v4554_v1 }
 0x4e3   : > { %v4564_v2 = vpop.permute.xlu0 %4563 }
 0x4e4   : > { %v3490_v16 = vsel %vm2580_vm14, %v3482_v18, %v4555_v58  ;;  %v3491_v35 = vsel %vm2580_vm14, %v3483_v28, %v4556_v8  ;;  %v4566_v53 = vunpack.i.h.bf16 %v4564_v2  ;;  %v4565_v25 = vunpack.i.l.bf16 %v4564_v2  ;;  %v4604_v22 = vpop.permute.xlu2 %4603 }
 0x4e5   : > { %v3498_v27 = vsel %vm2613_vm15, %v3490_v16, %v4560_v59  ;;  %v3499_v9 = vsel %vm2613_vm15, %v3491_v35, %v4561_v42  ;;  %v4606_v30 = vunpack.i.h.bf16 %v4604_v22  ;;  %v4605_v7 = vunpack.i.l.bf16 %v4604_v22 }
 0x4e6   : > { %v3506_v45 = vsel %vm2646_vm1, %v3498_v27, %v4565_v25  ;;  %v3507_v50 = vsel %vm2646_vm1, %v3499_v9, %v4566_v53  ;;  %3617 = vmatmul.f32.gmra.mxu3 %v587_v60 }
 0x4e7   : > { %v3514_v26 = vpack.c.bf16 %v3507_v50, %v3506_v45 }
 0x4e9   : > { %v4569_v37 = vpop.permute.xlu1 %4568  ;;  %3817 = vmatmul.msk.bf16.vlgmr.msrb.gmra.mxu2 %vm7022_vm2, %v3514_v26 }
 0x4ea   : > { %v4571_v17 = vunpack.i.h.bf16 %v4569_v37  ;;  %v4570_v32 = vunpack.i.l.bf16 %v4569_v37 }
 0x4eb   : > { %v4579_v38 = vpop.permute.xlu0 %4578 }
 0x4ec   : > { %v3453_v33 = vsel %vm435_vm0, %v6745_v44, %v4571_v17  ;;  %v3452_v19 = vsel %vm435_vm0, %v6736_v0, %v4570_v32  ;;  %v4581_v63 = vunpack.i.h.bf16 %v4579_v38  ;;  %v4580_v29 = vunpack.i.l.bf16 %v4579_v38  ;;  %v4619_v56 = vpop.permute.xlu2 %4618 }
 0x4ed   : > { %v3460_v6 = vsel %vm2448_vm10, %v3452_v19, %v4575_v15  ;;  %v3461_v21 = vsel %vm2448_vm10, %v3453_v33, %v4576_v51  ;;  %v4621_v45 = vunpack.i.h.bf16 %v4619_v56  ;;  %v4620_v50 = vunpack.i.l.bf16 %v4619_v56 }
 0x4ee   : > { %v3468_v31 = vsel %vm2481_vm11, %v3460_v6, %v4580_v29  ;;  %v3469_v5 = vsel %vm2481_vm11, %v3461_v21, %v4581_v63 }
 0x4f1   : > { %v4584_v54 = vpop.permute.xlu1 %4583 }
 0x4f2   : > { %v4586_v62 = vunpack.i.h.bf16 %v4584_v54  ;;  %v4585_v52 = vunpack.i.l.bf16 %v4584_v54 }
 0x4f3   : > { %v4594_v61 = vpop.permute.xlu0 %4593 }
 0x4f4   : > { %v3476_v44 = vsel %vm2514_vm12, %v3468_v31, %v4585_v52  ;;  %v3477_v0 = vsel %vm2514_vm12, %v3469_v5, %v4586_v62  ;;  %v4596_v47 = vunpack.i.h.bf16 %v4594_v61  ;;  %v4595_v24 = vunpack.i.l.bf16 %v4594_v61  ;;  %v4634_v58 = vpop.permute.xlu2 %4633  ;;  %v591_v5 = vld [vmem:[%s6987_s10 + $0x70] sm:$0xff] }
 0x4f5   : > { %v3484_v4 = vsel %vm2547_vm13, %v3476_v44, %v4590_v14  ;;  %v3485_v41 = vsel %vm2547_vm13, %v3477_v0, %v4591_v39  ;;  %v4636_v15 = vunpack.i.h.bf16 %v4634_v58  ;;  %v4635_v54 = vunpack.i.l.bf16 %v4634_v58 }
 0x4f6   : > { %v3492_v20 = vsel %vm2580_vm14, %v3484_v4, %v4595_v24  ;;  %v3493_v57 = vsel %vm2580_vm14, %v3485_v41, %v4596_v47 }
 0x4f9   : > { %v4599_v23 = vpop.permute.xlu1 %4598 }
 0x4fa   : > { %v4601_v55 = vunpack.i.h.bf16 %v4599_v23  ;;  %v4600_v10 = vunpack.i.l.bf16 %v4599_v23 }
 0x4fb   : > { %v4609_v34 = vpop.permute.xlu0 %4608 }
 0x4fc   : > { %v3500_v40 = vsel %vm2613_vm15, %v3492_v20, %v4600_v10  ;;  %v3501_v46 = vsel %vm2613_vm15, %v3493_v57, %v4601_v55  ;;  %v4611_v43 = vunpack.i.h.bf16 %v4609_v34  ;;  %v4610_v13 = vunpack.i.l.bf16 %v4609_v34  ;;  %v4649_v33 = vpop.permute.xlu2 %4648 }
 0x4fd   : > { %v3508_v1 = vsel %vm2646_vm1, %v3500_v40, %v4605_v7  ;;  %v3509_v18 = vsel %vm2646_vm1, %v3501_v46, %v4606_v30  ;;  %v4651_v39 = vunpack.i.h.bf16 %v4649_v33  ;;  %v4650_v14 = vunpack.i.l.bf16 %v4649_v33  ;;  %v590_v33 = vld [vmem:[%s6987_s10 + $0x68] sm:$0xff] }
 0x4fe   : > { %v3515_v28 = vpack.c.bf16 %v3509_v18, %v3508_v1  ;;  %v3455_v2 = vsel %vm435_vm0, %v6759_v11, %v4611_v43  ;;  %v3454_v16 = vsel %vm435_vm0, %v6752_v49, %v4610_v13  ;;  %v589_v49 = vld [vmem:[%s6987_s10 + $0x60] sm:$0xff] }
 0x4ff   : > { %3620 = vmatmul.f32.gmra.mxu3 %v589_v49  ;;  %v3457_v55 = vsel %vm435_vm0, %v6776_v12, %v4651_v39  ;;  %v3456_v10 = vsel %vm435_vm0, %v6769_v48, %v4650_v14  ;;  %vm7025_vm0 = vmmov %vm7022_vm2  ;;  %v578_v49 = vld [vmem:[%s6987_s10 + $0x8] sm:$0xff] }
 0x500   : > { %3818 = vmatmul.msk.bf16.gmra.mxu2 %vm7023_vm9, %v3515_v28 }
 0x501   : > { %v4614_v8 = vpop.permute.xlu1 %4613 }
 0x502   : > { %v4616_v42 = vunpack.i.h.bf16 %v4614_v8  ;;  %v4615_v59 = vunpack.i.l.bf16 %v4614_v8 }
 0x503   : > { %v4624_v35 = vpop.permute.xlu0 %4623 }
 0x504   : > { %v3463_v53 = vsel %vm2448_vm10, %v3455_v2, %v4616_v42  ;;  %v3462_v25 = vsel %vm2448_vm10, %v3454_v16, %v4615_v59  ;;  %v4626_v27 = vunpack.i.h.bf16 %v4624_v35  ;;  %v4625_v9 = vunpack.i.l.bf16 %v4624_v35  ;;  %v4664_v23 = vpop.permute.xlu2 %4663 }
 0x505   : > { %v3470_v11 = vsel %vm2481_vm11, %v3462_v25, %v4620_v50  ;;  %v3471_v37 = vsel %vm2481_vm11, %v3463_v53, %v4621_v45  ;;  %v4666_v1 = vunpack.i.h.bf16 %v4664_v23  ;;  %v4665_v18 = vunpack.i.l.bf16 %v4664_v23 }
 0x506   : > { %v3478_v38 = vsel %vm2514_vm12, %v3470_v11, %v4625_v9  ;;  %v3479_v3 = vsel %vm2514_vm12, %v3471_v37, %v4626_v27 }
 0x507   : > { %3623 = vmatmul.f32.gmra.mxu3 %v591_v5 }
 0x509   : > { %v4629_v26 = vpop.permute.xlu1 %4628 }
 0x50a   : > { %v4631_v17 = vunpack.i.h.bf16 %v4629_v26  ;;  %v4630_v32 = vunpack.i.l.bf16 %v4629_v26 }
 0x50b   : > { %v4639_v22 = vpop.permute.xlu0 %4638 }
 0x50c   : > { %v3486_v19 = vsel %vm2547_vm13, %v3478_v38, %v4630_v32  ;;  %v3487_v63 = vsel %vm2547_vm13, %v3479_v3, %v4631_v17  ;;  %v4641_v29 = vunpack.i.h.bf16 %v4639_v22  ;;  %v4640_v51 = vunpack.i.l.bf16 %v4639_v22  ;;  %v4679_v12 = vpop.permute.xlu2 %4678  ;;  %v580_v17 = vld [vmem:[%s6987_s10 + $0x18] sm:$0xff]  ;;  %v582_v32 = vld [vmem:[%s6987_s10 + $0x28] sm:$0xff] }
 0x50d   : > { %v3494_v62 = vsel %vm2580_vm14, %v3486_v19, %v4635_v54  ;;  %v3495_v52 = vsel %vm2580_vm14, %v3487_v63, %v4636_v15  ;;  %v4681_v16 = vunpack.i.h.bf16 %v4679_v12  ;;  %v4680_v35 = vunpack.i.l.bf16 %v4679_v12  ;;  %v584_v38 = vld [vmem:[%s6987_s10 + $0x38] sm:$0xff]  ;;  %v586_v3 = vld [vmem:[%s6987_s10 + $0x48] sm:$0xff] }
 0x50e   : > { %v3502_v21 = vsel %vm2613_vm15, %v3494_v62, %v4640_v51  ;;  %v3503_v31 = vsel %vm2613_vm15, %v3495_v52, %v4641_v29  ;;  %v588_v22 = vld [vmem:[%s6987_s10 + $0x58] sm:$0xff] }
 0x50f   : > { %v592_v19 = vld [vmem:[%s6987_s10 + $0x78] sm:$0xff] }
 0x511   : > { %v4644_v6 = vpop.permute.xlu1 %4643 }
 0x512   : > { %v4646_v61 = vunpack.i.h.bf16 %v4644_v6  ;;  %v4645_v44 = vunpack.i.l.bf16 %v4644_v6  ;;  %v3603_v6 = vpop.f32.mrf.mxu3 }
 0x513   : > { %v4654_v0 = vpop.permute.xlu0 %4653 }
 0x514   : > { %v3510_v47 = vsel %vm2646_vm1, %v3502_v21, %v4645_v44  ;;  %v3511_v24 = vsel %vm2646_vm1, %v3503_v31, %v4646_v61  ;;  %v4656_v4 = vunpack.i.h.bf16 %v4654_v0  ;;  %v4655_v41 = vunpack.i.l.bf16 %v4654_v0  ;;  %v4692_v21 = vld [vmem:[%s6981_s4] ss:$0 sm:$0xff] }
 0x515   : > { %v3516_v56 = vpack.c.bf16 %v3511_v24, %v3510_v47 }
 0x516   : > { %v3464_v36 = vsel %vm2448_vm10, %v3456_v10, %v4655_v41  ;;  %v3465_v30 = vsel %vm2448_vm10, %v3457_v55, %v4656_v4 }
 0x517   : > { %3819 = vmatmul.msk.bf16.gmra.mxu2 %vm7024_vm3, %v3516_v56 }
 0x519   : > { %v4659_v20 = vpop.permute.xlu1 %4658 }
 0x51a   : > { %v4661_v57 = vunpack.i.h.bf16 %v4659_v20  ;;  %v4660_v34 = vunpack.i.l.bf16 %v4659_v20  ;;  %v3606_v61 = vpop.f32.mrf.mxu3 }
 0x51b   : > { %v4669_v7 = vpop.permute.xlu0 %4668 }
 0x51c   : > { %v3472_v40 = vsel %vm2481_vm11, %v3464_v36, %v4660_v34  ;;  %v3473_v46 = vsel %vm2481_vm11, %v3465_v30, %v4661_v57  ;;  %v4671_v43 = vunpack.i.h.bf16 %v4669_v7  ;;  %v4670_v13 = vunpack.i.l.bf16 %v4669_v7 }
 0x51d   : > { %v3480_v28 = vsel %vm2514_vm12, %v3472_v40, %v4665_v18  ;;  %v3481_v48 = vsel %vm2514_vm12, %v3473_v46, %v4666_v1 }
 0x51e   : > { %v3488_v58 = vsel %vm2547_vm13, %v3480_v28, %v4670_v13  ;;  %v3489_v42 = vsel %vm2547_vm13, %v3481_v48, %v4671_v43 }
 0x521   : > { %v4674_v8 = vpop.permute.xlu1 %4673 }
 0x522   : > { %v4676_v59 = vunpack.i.h.bf16 %v4674_v8  ;;  %v4675_v2 = vunpack.i.l.bf16 %v4674_v8  ;;  %v3609_v14 = vpop.f32.mrf.mxu3 }
 0x523   : > { %v4684_v60 = vpop.permute.xlu0 %4683 }
 0x524   : > { %v3496_v53 = vsel %vm2580_vm14, %v3488_v58, %v4675_v2  ;;  %v3497_v25 = vsel %vm2580_vm14, %v3489_v42, %v4676_v59  ;;  %v4686_v27 = vunpack.i.h.bf16 %v4684_v60  ;;  %v4685_v9 = vunpack.i.l.bf16 %v4684_v60 }
 0x525   : > { %v3504_v45 = vsel %vm2613_vm15, %v3496_v53, %v4680_v35  ;;  %v3505_v50 = vsel %vm2613_vm15, %v3497_v25, %v4681_v16 }
 0x526   : > { %v3512_v26 = vsel %vm2646_vm1, %v3504_v45, %v4685_v9  ;;  %v3513_v11 = vsel %vm2646_vm1, %v3505_v50, %v4686_v27 }
 0x527   : > { %v3517_v37 = vpack.c.bf16 %v3513_v11, %v3512_v26 }
 0x529   : > { %3820 = vmatmul.msk.bf16.gmra.mxu2 %vm7025_vm0, %v3517_v37 }
 0x52b   : > { %v3612_v20 = vpop.f32.mrf.mxu3 }
 0x539   : > { %3643 = vmatmul.f32.vlgmr.msra.gmra.mxu2 %v578_v49 }
 0x541   : > { %3646 = vmatmul.f32.gmra.mxu2 %v580_v17 }
 0x549   : > { %3649 = vmatmul.f32.gmra.mxu2 %v582_v32 }
 0x551   : > { %3652 = vmatmul.f32.gmra.mxu2 %v584_v38 }
 0x559   : > { %3655 = vmatmul.f32.gmra.mxu2 %v586_v3 }
 0x561   : > { %3658 = vmatmul.f32.gmra.mxu2 %v588_v22  ;;  %v3615_v40 = vpop.f32.mrf.mxu3 }
 0x569   : > { %3661 = vmatmul.f32.gmra.mxu2 %v590_v33  ;;  %v3618_v48 = vpop.f32.mrf.mxu3 }
 0x56c   : > { %v3566_v63 = vpop.f32.mrf.mxu2 }
 0x56d   : > { %v3567_v5 = vadd.f32 %v4692_v21, %v3566_v63 }
 0x56f   : > { %v3604_v44 = vadd.f32 %v3603_v6, %v3567_v5 }
 0x571   : > { %3664 = vmatmul.f32.gmra.mxu2 %v592_v19 }
 0x574   : > { %v3568_v29 = vpop.f32.mrf.mxu2 }
 0x575   : > { %v3569_v24 = vadd.f32 %v4692_v21, %v3568_v29 }
 0x577   : > { %v3607_v56 = vadd.f32 %v3606_v61, %v3569_v24 }
 0x582   : > { %v3621_v16 = vpop.f32.mrf.mxu3 }
 0x583   : > { %v3571_v51 = vpop.f32.mrf.mxu2 }
 0x584   : > { %v3572_v41 = vadd.f32 %v4692_v21, %v3571_v51 }
 0x586   : > { %v3610_v10 = vadd.f32 %v3609_v14, %v3572_v41 }
 0x58a   : > { %v3624_v50 = vpop.f32.mrf.mxu3 }
 0x58b   : > { %v3573_v15 = vpop.f32.mrf.mxu2 }
 0x58c   : > { %v3574_v36 = vadd.f32 %v4692_v21, %v3573_v15 }
 0x58e   : > { %v3613_v7 = vadd.f32 %v3612_v20, %v3574_v36 }
 0x59a   : > { %v3576_v54 = vpop.f32.mrf.mxu2 }
 0x59b   : > { %v3577_v13 = vadd.f32 %v4692_v21, %v3576_v54 }
 0x59d   : > { %v3616_v18 = vadd.f32 %v3615_v40, %v3577_v13 }
 0x5a2   : > { %v3578_v62 = vpop.f32.mrf.mxu2 }
 0x5a3   : > { %v3579_v8 = vadd.f32 %v4692_v21, %v3578_v62 }
 0x5a5   : > { %v3619_v42 = vadd.f32 %v3618_v48, %v3579_v8 }
 0x5ac   : > { %v3581_v52 = vpop.f32.mrf.mxu2 }
 0x5ad   : > { %v3582_v35 = vadd.f32 %v4692_v21, %v3581_v52 }
 0x5af   : > { %v3622_v53 = vadd.f32 %v3621_v16, %v3582_v35 }
 0x5b4   : > { %v3583_v31 = vpop.f32.mrf.mxu2 }
 0x5b5   : > { %v3584_v9 = vadd.f32 %v4692_v21, %v3583_v31 }
 0x5b7   : > { %v3625_v26 = vadd.f32 %v3624_v50, %v3584_v9 }
 0x5bc   : > { %v3644_v0 = vpop.f32.mrf.mxu2 }
 0x5bd   : > { %v3645_v47 = vadd.f32 %v3644_v0, %v3604_v44 }
 0x5bf   : > { %v3668_v39 = vmul.f32 0.70710677, %v3645_v47 }
 0x5c1   : > { %3676 = vst.msk [vmem:[%s6924_s1] sm:$0xff] %vm2448_vm10, %v3668_v39 }
 0x5c4   : > { %v3647_v23 = vpop.f32.mrf.mxu2 }
 0x5c5   : > { %v3648_v4 = vadd.f32 %v3647_v23, %v3607_v56 }
 0x5c7   : > { %v3669_v55 = vmul.f32 0.70710677, %v3648_v4 }
 0x5c9   : > { %3677 = vst.msk [vmem:[%s6924_s1 + $0x8] sm:$0xff] %vm2448_vm10, %v3669_v55 }
 0x5cc   : > { %v3650_v57 = vpop.f32.mrf.mxu2 }
 0x5cd   : > { %v3651_v34 = vadd.f32 %v3650_v57, %v3610_v10 }
 0x5cf   : > { %v3670_v30 = vmul.f32 0.70710677, %v3651_v34 }
 0x5d1   : > { %3678 = vst.msk [vmem:[%s6924_s1 + $0x10] sm:$0xff] %vm2448_vm10, %v3670_v30 }
 0x5d4   : > { %v3653_v46 = vpop.f32.mrf.mxu2 }
 0x5d5   : > { %v3654_v43 = vadd.f32 %v3653_v46, %v3613_v7 }
 0x5d7   : > { %v3671_v1 = vmul.f32 0.70710677, %v3654_v43 }
 0x5d9   : > { %3679 = vst.msk [vmem:[%s6924_s1 + $0x18] sm:$0xff] %vm2448_vm10, %v3671_v1 }
 0x5dc   : > { %v3656_v12 = vpop.f32.mrf.mxu2 }
 0x5dd   : > { %v3657_v28 = vadd.f32 %v3656_v12, %v3616_v18 }
 0x5df   : > { %v3672_v58 = vmul.f32 0.70710677, %v3657_v28 }
 0x5e1   : > { %3680 = vst.msk [vmem:[%s6924_s1 + $0x20] sm:$0xff] %vm2448_vm10, %v3672_v58 }
 0x5e4   : > { %v3659_v59 = vpop.f32.mrf.mxu2 }
 0x5e5   : > { %v3660_v2 = vadd.f32 %v3659_v59, %v3619_v42 }
 0x5e7   : > { %v3673_v60 = vmul.f32 0.70710677, %v3660_v2 }
 0x5e9   : > { %3681 = vst.msk [vmem:[%s6924_s1 + $0x28] sm:$0xff] %vm2448_vm10, %v3673_v60 }
 0x5ec   : > { %v3662_v25 = vpop.f32.mrf.mxu2 }
 0x5ed   : > { %v3663_v27 = vadd.f32 %v3662_v25, %v3622_v53 }
 0x5ef   : > { %v3674_v45 = vmul.f32 0.70710677, %v3663_v27 }
 0x5f1   : > { %3682 = vst.msk [vmem:[%s6924_s1 + $0x30] sm:$0xff] %vm2448_vm10, %v3674_v45 }
 0x5f4   : > { %v3665_v11 = vpop.f32.mrf.mxu2 }
 0x5f5   : > { %v3666_v37 = vadd.f32 %v3665_v11, %v3625_v26 }
 0x5f7   : > { %v3675_v49 = vmul.f32 0.70710677, %v3666_v37 }
 0x5f9   : > { %3683 = vst.msk [vmem:[%s6924_s1 + $0x38] sm:$0xff] %vm2448_vm10, %v3675_v49 }
 0x5fa   : > { %4764 = shalt.err (!%p4761_p3)
}
 0x5fb   : > { %s4812_s30 = smov 128  }
 0x5fc   : > { %3836 = dma.vmem_to_hbm [thread:$0]  (%p4911_p5), %s3698_s15, 1024, %s3700_s25, %s3685_s21, %s4812_s30, %s4812_s30, %s7018_s2  }
 0x5fd PF: > { %p3842_p4 = scmp.ge.s32.totalorder %s4799_s20, 2  ;;  %s3714_s1 = sand.u32 1, %s4787_s17  }
 0x5fe   : > { %s3715_s12 = scalar_lea.sflag [#allocation5], %s3714_s1 }
 0x5ff   : > { %p3839_p7 = pnand %p3842_p4, %p4915_p6 }
 0x601   : > { %p3840_p8 = pneg %p3839_p7 }
 0x603   : > { %4782 = dma.done.wait (%p3840_p8), %s3715_s12, 1024  }
 0x604   : > { %4784 = vsyncadd (%p3840_p8), %s3715_s12, 4294966272  ;;  %p21_p9 = scmp.ge.s32.totalorder %s4898_s23, 4   ;;  %s7026_s17 = smov %s4791_s18 }
 0x605   : > { %s7027_s18 = smov %s4795_s19  ;;  %s7028_s19 = smov %s4909_s26 }
 0x606   : > { %s7029_s20 = smov %s4898_s23  ;;  %23 = sbr.rel (!%p21_p9) target bundleno = 7 (0x7), region = 103 }
 0x60b   :  { %3721 = vsyncpa [#allocation5], 1 }
 0x60c   :  { %3723 = vsyncpa [#allocation5 + $0x1], 1 }

</bundles_post_ra>
